<compile_context>
chip_gen: v6e
topology: v6e:2x2x1
jax: 0.10.0
libtpu: 0.0.40
codegen_flags: <defaults>
</compile_context>

<pallas_src>
from functools import partial

import jax
import jax.numpy as jnp
from jax.experimental import pallas as pl
from jax.experimental.pallas import tpu as pltpu


def _round_up(x, m):
    return ((x + m - 1) // m) * m


def _padded_tile_bytes(rows, cols, dtype):
    """VMEM bytes of a 2-D tile after (sublane, lane) layout padding."""
    itemsize = jnp.dtype(dtype).itemsize
    sublane = max(8, 32 // itemsize)          # 8 for f32, 16 for bf16, 32 for int8/fp8
    return _round_up(rows, sublane) * _round_up(cols, 128) * itemsize


def _vmem_budget_bytes():
    """Generation-aware usable VMEM budget for this kernel's tiles."""
    try:
        info = pltpu.get_tpu_info()
        phys = int(getattr(info, "vmem_capacity_bytes", 64 << 20))
    except Exception:
        phys = 64 << 20                       # conservative: assume v7x-sized VMEM
    if phys <= (64 << 20):                    # v7x: 64 MiB physical -> leave headroom
        return min(phys - (12 << 20), 52 << 20)
    return min(int(phys * 0.8), 104 << 20)    # v5e / v6e: 128 MiB physical


def _choose_tiles(N, C, S, Kp, x_dtype, budget):
    """Pick (tb, ts, needed_bytes): largest padded, double-buffered block under budget."""
    # spatial (reduction) tile: largest divisor of S that is a multiple of 128
    if S % 128 == 0:
        ts_cands = sorted(
            (t for t in range(128, min(S, 1024) + 1, 128) if S % t == 0),
            reverse=True)
    else:
        ts_cands = [S]

    # batch (parallel) tile: multiples of 8 dividing N (output-block (8,128) rule),
    # plus N itself (a full-extent block is always legal)
    tb_cands = sorted({t for t in range(8, N + 1, 8) if N % t == 0} | {N},
                      reverse=True)

    def needed(tb, ts):
        x_blk = tb * _padded_tile_bytes(C, ts, x_dtype)             # one x buffer
        resident = (2 * _padded_tile_bytes(C, Kp, jnp.float32)      # weight (dbl-buf)
                    + 2 * _padded_tile_bytes(1, Kp, jnp.float32)    # bias  (dbl-buf)
                    + 2 * _padded_tile_bytes(tb, Kp, jnp.float32)   # output block
                    + _padded_tile_bytes(tb, C, jnp.float32))       # f32 accumulator
        return 2 * x_blk + resident                                 # x double-buffered

    tb, ts = tb_cands[-1], ts_cands[-1]                             # smallest fallback
    for ts_c in ts_cands:
        hit = next((t for t in tb_cands if needed(t, ts_c) <= budget), None)
        if hit is not None:
            tb, ts = hit, ts_c
            break

    # v7x has 2 TensorCores: prefer >=2 steps on the "parallel" batch axis whenever the
    # per-step x block stays big enough (>=1 MiB) to hold HBM roofline.  Near-neutral
    # on single-core v5e/v6e.
    if N // tb < 2:
        alt = next((t for t in tb_cands
                    if N // t >= 2 and needed(t, ts) <= budget
                    and t * _padded_tile_bytes(C, ts, x_dtype) >= (1 << 20)), None)
        if alt is not None:
            tb = alt

    return tb, ts, needed(tb, ts)


# ------------------------- Pallas kernel -------------------------

def _decoder_kernel(x_ref, w_ref, b_ref, o_ref, acc_ref, *, inv_s):
    """Fused global-avg-pool + Linear.

    x_ref : (tb, C, ts)  native dtype  spatial slab of the input (NCHW -> (N, C, S))
    w_ref : (C, Kp)      f32           Linear weight^T, Cout zero-padded to Kp
    b_ref : (1, Kp)      f32           bias, zero-padded
    o_ref : (tb, Kp)     f32           logits (padded)
    acc_ref:(tb, C)      f32           running spatial sum (VMEM scratch)
    """
    s = pl.program_id(1)

    @pl.when(s == 0)
    def _():
        acc_ref[...] = jnp.zeros_like(acc_ref)

    # spatial-sum accumulation in f32 (input streamed in its native dtype)
    acc_ref[...] += jnp.sum(x_ref[...].astype(jnp.float32), axis=-1)

    @pl.when(s == pl.num_programs(1) - 1)
    def _():
        pooled = acc_ref[...] * inv_s                         # f32 global mean
        logits = jnp.dot(pooled, w_ref[...],                  # f32 matmul, HIGHEST
                         preferred_element_type=jnp.float32,
                         precision=jax.lax.Precision.HIGHEST)
        o_ref[...] = (logits + b_ref[...]).astype(o_ref.dtype)


# ------------------------- wrapper -------------------------

def resnet_decoder(x_nchw, w, b):
    """PyTorch ResnetDecoder forward: AdaptiveAvgPool2d((1,1)) + flatten + Linear.

    x_nchw : (N, C, H, W)  f32 or bf16 (streamed in its native dtype)
    w      : (n_classes, C)            (PyTorch nn.Linear weight layout)
    b      : (n_classes,)
    returns: (N, n_classes) float32
    """
    N, C, H, W = x_nchw.shape
    n_classes = w.shape[0]
    S = H * W

    x = x_nchw.reshape(N, C, S)                    # free reshape, keep native dtype

    # lane-dense padded Linear params (zero columns; sliced off after the call);
    # kept in f32 so the matmul matches the f32 PyTorch Linear.
    Kp = _round_up(max(n_classes, 128), 128)
    w_p = jnp.zeros((C, Kp), jnp.float32).at[:, :n_classes].set(
        jnp.transpose(w).astype(jnp.float32))
    b_p = jnp.zeros((1, Kp), jnp.float32).at[0, :n_classes].set(
        b.astype(jnp.float32))

    budget = _vmem_budget_bytes()
    tb, ts, needed = _choose_tiles(N, C, S, Kp, x.dtype, budget)
    grid = (N // tb, S // ts)                      # reduction (spatial) axis innermost

    vmem_bytes = int(min(max(needed + (4 << 20), 32 << 20), budget))
    vmem_bytes = max(vmem_bytes, int(needed))      # never below true (padded) usage

    out = pl.pallas_call(
        partial(_decoder_kernel, inv_s=1.0 / S),
        out_shape=jax.ShapeDtypeStruct((N, Kp), jnp.float32),
        grid=grid,
        in_specs=[
            pl.BlockSpec((tb, C, ts), lambda i, s: (i, 0, s)),
            pl.BlockSpec((C, Kp), lambda i, s: (0, 0)),   # constant -> fetched once
            pl.BlockSpec((1, Kp), lambda i, s: (0, 0)),
        ],
        out_specs=pl.BlockSpec((tb, Kp), lambda i, s: (i, 0)),
        scratch_shapes=[pltpu.VMEM((tb, C), jnp.float32)],
        compiler_params=pltpu.CompilerParams(
            dimension_semantics=("parallel", "arbitrary"),
            vmem_limit_bytes=vmem_bytes,
        ),
    )(x, w_p, b_p)

    return out[:, :n_classes]


# pure-JAX reference for a sanity check (same precision settings as the kernel)
def _decoder_ref(x_nchw, w, b):
    pooled = jnp.mean(x_nchw.astype(jnp.float32), axis=(2, 3))   # (N, C)
    return jnp.dot(pooled, jnp.transpose(w).astype(jnp.float32),
                   precision=jax.lax.Precision.HIGHEST) + b.astype(jnp.float32)


# ------------------------- main -------------------------

if __name__ == "__main__":
    key = jax.random.PRNGKey(0)
    kx, kw, kb = jax.random.split(key, 3)

    # small shapes consistent with a ResNet tail: feature map (N, C, H, W) -> (N, n_classes)
    N, C, H, W = 8, 256, 8, 8
    n_classes = 10

    x = jax.random.normal(kx, (N, C, H, W), jnp.float32)
    w = jax.random.normal(kw, (n_classes, C), jnp.float32) / jnp.sqrt(float(C))
    b = 0.1 * jax.random.normal(kb, (n_classes,), jnp.float32)

    fwd = jax.jit(resnet_decoder)

    # f32 activations (PyTorch default) — f32 matmul path, tight tolerance
    out = fwd(x, w, b)
    jax.block_until_ready(out)
    ref = _decoder_ref(x, w, b)
    assert out.shape == (N, n_classes)
    assert bool(jnp.all(jnp.isfinite(out)))
    assert bool(jnp.allclose(out, ref, atol=1e-3, rtol=1e-3))

    # bf16 activations streamed natively (half the HBM bytes, no pre-kernel convert)
    x_bf16 = x.astype(jnp.bfloat16)
    out_bf16 = fwd(x_bf16, w, b)
    jax.block_until_ready(out_bf16)
    ref_bf16 = _decoder_ref(x_bf16, w, b)
    assert bool(jnp.all(jnp.isfinite(out_bf16)))
    assert bool(jnp.allclose(out_bf16, ref_bf16, atol=2e-3, rtol=2e-3))

    print("KERNEL_OK")
</pallas_src>

<mosaic_0001>
module attributes {stable_mosaic.version = 11 : i64} {
  func.func @_decoder_kernel(%arg0: i32, %arg1: i32, %arg2: memref<8x256x64xf32, #tpu.memory_space<vmem>>, %arg3: memref<256x128xf32, #tpu.memory_space<vmem>>, %arg4: memref<1x128xf32, #tpu.memory_space<vmem>>, %arg5: memref<8x128xf32, #tpu.memory_space<vmem>>, %arg6: memref<8x256xf32, #tpu.memory_space<vmem>>) attributes {dimension_semantics = [#tpu.dimension_semantics<parallel>, #tpu.dimension_semantics<arbitrary>], iteration_bounds = array<i64: 1, 1>, scalar_prefetch = 0 : i64, scratch_operands = 1 : i64, tpu.core_type = #tpu.core_type<tc>, window_params = [{transform_indices = @transform_0, window_bounds = array<i64: 8, 256, 64>}, {pipeline_mode = #tpu.pipeline_mode<synchronous>, transform_indices = @transform_1, window_bounds = array<i64: 256, 128>}, {pipeline_mode = #tpu.pipeline_mode<synchronous>, transform_indices = @transform_2, window_bounds = array<i64: 1, 128>}, {transform_indices = @transform_3, window_bounds = array<i64: 8, 128>}]} {
    %c0_i32 = arith.constant 0 : i32
    %0 = arith.cmpi eq, %arg1, %c0_i32 : i32
    %1 = arith.extui %0 : i1 to i32
    %c0_i32_0 = arith.constant 0 : i32
    %2 = arith.cmpi ne, %1, %c0_i32_0 : i32
    scf.if %2 {
      %cst_9 = arith.constant 0.000000e+00 : f32
      %11 = vector.broadcast %cst_9 : f32 to vector<8x256xf32>
      %c0_10 = arith.constant 0 : index
      %c0_11 = arith.constant 0 : index
      %12 = vector.load %arg6[%c0_10, %c0_11] : memref<8x256xf32, #tpu.memory_space<vmem>>, vector<8x256xf32>
      tpu.vector_store %arg6[%c0_10, %c0_11], %11 {strides = array<i32>} : memref<8x256xf32, #tpu.memory_space<vmem>>, vector<8x256xf32>,
    } else {
    }
    %c0 = arith.constant 0 : index
    %c0_1 = arith.constant 0 : index
    %3 = vector.load %arg6[%c0, %c0_1] : memref<8x256xf32, #tpu.memory_space<vmem>>, vector<8x256xf32>
    %c0_2 = arith.constant 0 : index
    %c0_3 = arith.constant 0 : index
    %c0_4 = arith.constant 0 : index
    %4 = vector.load %arg2[%c0_2, %c0_3, %c0_4] : memref<8x256x64xf32, #tpu.memory_space<vmem>>, vector<8x256x64xf32>
    %cst = arith.constant dense<0.000000e+00> : vector<8x256xf32>
    %5 = vector.multi_reduction <add>, %4, %cst [2] : vector<8x256x64xf32> to vector<8x256xf32>
    %6 = arith.addf %3, %5 : vector<8x256xf32>
    %c0_5 = arith.constant 0 : index
    %c0_6 = arith.constant 0 : index
    %7 = vector.load %arg6[%c0_5, %c0_6] : memref<8x256xf32, #tpu.memory_space<vmem>>, vector<8x256xf32>
    tpu.vector_store %arg6[%c0_5, %c0_6], %6 {strides = array<i32>} : memref<8x256xf32, #tpu.memory_space<vmem>>, vector<8x256xf32>,
    %c0_i32_7 = arith.constant 0 : i32
    %8 = arith.cmpi eq, %arg1, %c0_i32_7 : i32
    %9 = arith.extui %8 : i1 to i32
    %c0_i32_8 = arith.constant 0 : i32
    %10 = arith.cmpi ne, %9, %c0_i32_8 : i32
    scf.if %10 {
      %c0_9 = arith.constant 0 : index
      %c0_10 = arith.constant 0 : index
      %11 = vector.load %arg6[%c0_9, %c0_10] : memref<8x256xf32, #tpu.memory_space<vmem>>, vector<8x256xf32>
      %cst_11 = arith.constant 1.562500e-02 : f32
      %12 = vector.broadcast %cst_11 : f32 to vector<8x256xf32>
      %13 = arith.mulf %11, %12 : vector<8x256xf32>
      %c0_12 = arith.constant 0 : index
      %c0_13 = arith.constant 0 : index
      %14 = vector.load %arg3[%c0_12, %c0_13] : memref<256x128xf32, #tpu.memory_space<vmem>>, vector<256x128xf32>
      %cst_14 = arith.constant dense<0.000000e+00> : vector<8x128xf32>
      %15 = tpu.matmul %13, %14, %cst_14 {dimension_numbers = #tpu.dot_dimension_numbers<[1], [0], [0], [1], [0, 0, 1, 1], [], []>, precision = #tpu.contract_precision<fp32>} : vector<8x256xf32>, vector<256x128xf32>, vector<8x128xf32> -> vector<8x128xf32>
      %c0_15 = arith.constant 0 : index
      %c0_16 = arith.constant 0 : index
      %16 = vector.load %arg4[%c0_15, %c0_16] : memref<1x128xf32, #tpu.memory_space<vmem>>, vector<1x128xf32>
      %17 = vector.broadcast %16 : vector<1x128xf32> to vector<8x128xf32>
      %18 = arith.addf %15, %17 : vector<8x128xf32>
      %c0_17 = arith.constant 0 : index
      %c0_18 = arith.constant 0 : index
      %19 = vector.load %arg5[%c0_17, %c0_18] : memref<8x128xf32, #tpu.memory_space<vmem>>, vector<8x128xf32>
      tpu.vector_store %arg5[%c0_17, %c0_18], %18 {strides = array<i32>} : memref<8x128xf32, #tpu.memory_space<vmem>>, vector<8x128xf32>,
    } else {
    }
    return
  }
  func.func @transform_0(%arg0: i32, %arg1: i32) -> (i32, i32, i32) {
    %c0_i32 = arith.constant 0 : i32
    %c0_i32_0 = arith.constant 0 : i32
    return %arg0, %c0_i32, %arg1 : i32, i32, i32
  }
  func.func @transform_1(%arg0: i32, %arg1: i32) -> (i32, i32) {
    %c0_i32 = arith.constant 0 : i32
    %c0_i32_0 = arith.constant 0 : i32
    %c0_i32_1 = arith.constant 0 : i32
    return %c0_i32, %c0_i32_0 : i32, i32
  }
  func.func @transform_2(%arg0: i32, %arg1: i32) -> (i32, i32) {
    %c0_i32 = arith.constant 0 : i32
    %c0_i32_0 = arith.constant 0 : i32
    %c0_i32_1 = arith.constant 0 : i32
    return %c0_i32, %c0_i32_0 : i32, i32
  }
  func.func @transform_3(%arg0: i32, %arg1: i32) -> (i32, i32) {
    %c0_i32 = arith.constant 0 : i32
    %c0_i32_0 = arith.constant 0 : i32
    return %arg0, %c0_i32 : i32, i32
  }
}

</mosaic_0001>

<bundles_post_ra>
// kernel: resnet_decoder.1
= control target key start
LH: loop header
LB: loop body
LE: loop exit
PB: predicated region body
PF: predicated region fallthrough
CT: control target
= control target key end

     0   :  { %vm279_vm0 = vcmask 523264   ;;  %s6361_s0 = inlined_call_operand.vmem [shape: f32[8,256,64], index: 0, kind: input, shape index: {}]   ;;  %s6362_s1 = inlined_call_operand.vmem [shape: f32[256,128], index: 1, kind: input, shape index: {}]   ;;  %s6363_s2 = inlined_call_operand.vmem [shape: f32[1,128], index: 2, kind: input, shape index: {}]   ;;  %s6364_s3 = inlined_call_operand.hbm [shape: f32[8,128], index: 3, kind: output, shape index: {}]  }
   0x1   :  { %v25_v0 = vld [vmem:[%s6361_s0 + $0x10] sm:$0xff]  ;;  %v23_v1 = vld [vmem:[%s6361_s0] sm:$0xff]  ;;  %v26_v2 = vld [vmem:[%s6361_s0 + $0x18] sm:$0xff] }
   0x2   :  { %v286_v3 = vsel %vm279_vm0, %v25_v0, 0.0  ;;  %v280_v4 = vsel %vm279_vm0, %v23_v1, 0.0  ;;  %v24_v5 = vld [vmem:[%s6361_s0 + $0x8] sm:$0xff]  ;;  %v289_v6 = vsel %vm279_vm0, %v26_v2, 0.0  ;;  %v27_v9 = vld [vmem:[%s6361_s0 + $0x20] sm:$0xff]  ;;  %v30_v12 = vld [vmem:[%s6361_s0 + $0x38] sm:$0xff] }
   0x3   :  { %287 = vadd.xlane.f32.xlu1 %v286_v3  ;;  %281 = vadd.xlane.f32.xlu0 %v280_v4  ;;  %v283_v7 = vsel %vm279_vm0, %v24_v5, 0.0  ;;  %v28_v8 = vld [vmem:[%s6361_s0 + $0x28] sm:$0xff]  ;;  %v292_v11 = vsel %vm279_vm0, %v27_v9, 0.0  ;;  %v29_v13 = vld [vmem:[%s6361_s0 + $0x30] sm:$0xff]  ;;  %v301_v14 = vsel %vm279_vm0, %v30_v12, 0.0  ;;  %v31_v17 = vld [vmem:[%s6361_s0 + $0x40] sm:$0xff] }
   0x4   :  { %v295_v10 = vsel %vm279_vm0, %v28_v8, 0.0  ;;  %v298_v15 = vsel %vm279_vm0, %v29_v13, 0.0  ;;  %v32_v16 = vld [vmem:[%s6361_s0 + $0x48] sm:$0xff]  ;;  %v304_v19 = vsel %vm279_vm0, %v31_v17, 0.0  ;;  %v34_v20 = vld [vmem:[%s6361_s0 + $0x58] sm:$0xff]  ;;  %v33_v21 = vld [vmem:[%s6361_s0 + $0x50] sm:$0xff] }
   0x5   :  { %v307_v18 = vsel %vm279_vm0, %v32_v16, 0.0  ;;  %v313_v22 = vsel %vm279_vm0, %v34_v20, 0.0  ;;  %v310_v23 = vsel %vm279_vm0, %v33_v21, 0.0  ;;  %v36_v24 = vld [vmem:[%s6361_s0 + $0x68] sm:$0xff]  ;;  %v35_v25 = vld [vmem:[%s6361_s0 + $0x60] sm:$0xff]  ;;  %v38_v28 = vld [vmem:[%s6361_s0 + $0x78] sm:$0xff] }
   0x6   :  { %v319_v26 = vsel %vm279_vm0, %v36_v24, 0.0  ;;  %v316_v27 = vsel %vm279_vm0, %v35_v25, 0.0  ;;  %v37_v29 = vld [vmem:[%s6361_s0 + $0x70] sm:$0xff]  ;;  %v325_v30 = vsel %vm279_vm0, %v38_v28, 0.0 }
   0x7   :  { %290 = vadd.xlane.f32.xlu1 %v289_v6  ;;  %284 = vadd.xlane.f32.xlu0 %v283_v7  ;;  %v322_v31 = vsel %vm279_vm0, %v37_v29, 0.0 }
   0xb   :  { %296 = vadd.xlane.f32.xlu1 %v295_v10  ;;  %293 = vadd.xlane.f32.xlu0 %v292_v11 }
   0xf   :  { %302 = vadd.xlane.f32.xlu1 %v301_v14  ;;  %299 = vadd.xlane.f32.xlu0 %v298_v15 }
  0x13   :  { %308 = vadd.xlane.f32.xlu1 %v307_v18  ;;  %305 = vadd.xlane.f32.xlu0 %v304_v19 }
  0x17   :  { %314 = vadd.xlane.f32.xlu1 %v313_v22  ;;  %311 = vadd.xlane.f32.xlu0 %v310_v23 }
  0x1b   :  { %320 = vadd.xlane.f32.xlu1 %v319_v26  ;;  %317 = vadd.xlane.f32.xlu0 %v316_v27 }
  0x1c   :  { %8 = vsyncpa [#allocation4], 0  ;;  %v40_v32 = vld [vmem:[%s6361_s0 + $0x88] sm:$0xff]  ;;  %v39_v33 = vld [vmem:[%s6361_s0 + $0x80] sm:$0xff]  ;;  %vm1315_vm1 = vcmask 130112   ;;  %vm1322_vm2 = vcmask 195712  }
  0x1d   :  { %v331_v34 = vsel %vm279_vm0, %v40_v32, 0.0  ;;  %v328_v35 = vsel %vm279_vm0, %v39_v33, 0.0  ;;  %v42_v36 = vld [vmem:[%s6361_s0 + $0x98] sm:$0xff]  ;;  %v41_v37 = vld [vmem:[%s6361_s0 + $0x90] sm:$0xff]  ;;  %v44_v40 = vld [vmem:[%s6361_s0 + $0xa8] sm:$0xff]  ;;  %vm1329_vm3 = vcmask 261312  }
  0x1e   :  { %v337_v38 = vsel %vm279_vm0, %v42_v36, 0.0  ;;  %v334_v39 = vsel %vm279_vm0, %v41_v37, 0.0  ;;  %v43_v41 = vld [vmem:[%s6361_s0 + $0xa0] sm:$0xff]  ;;  %v343_v42 = vsel %vm279_vm0, %v44_v40, 0.0  ;;  %v46_v44 = vld [vmem:[%s6361_s0 + $0xb8] sm:$0xff]  ;;  %v45_v45 = vld [vmem:[%s6361_s0 + $0xb0] sm:$0xff] }
  0x1f   :  { %326 = vadd.xlane.f32.xlu1 %v325_v30  ;;  %323 = vadd.xlane.f32.xlu0 %v322_v31  ;;  %v340_v43 = vsel %vm279_vm0, %v43_v41, 0.0  ;;  %v349_v46 = vsel %vm279_vm0, %v46_v44, 0.0  ;;  %v346_v47 = vsel %vm279_vm0, %v45_v45, 0.0  ;;  %v48_v48 = vld [vmem:[%s6361_s0 + $0xc8] sm:$0xff]  ;;  %v47_v49 = vld [vmem:[%s6361_s0 + $0xc0] sm:$0xff]  ;;  %v50_v52 = vld [vmem:[%s6361_s0 + $0xd8] sm:$0xff] }
  0x20   :  { %v355_v50 = vsel %vm279_vm0, %v48_v48, 0.0  ;;  %v352_v51 = vsel %vm279_vm0, %v47_v49, 0.0  ;;  %v49_v53 = vld [vmem:[%s6361_s0 + $0xd0] sm:$0xff]  ;;  %v361_v54 = vsel %vm279_vm0, %v50_v52, 0.0  ;;  %v52_v56 = vld [vmem:[%s6361_s0 + $0xe8] sm:$0xff]  ;;  %v51_v57 = vld [vmem:[%s6361_s0 + $0xe0] sm:$0xff] }
  0x21   :  { %v358_v55 = vsel %vm279_vm0, %v49_v53, 0.0  ;;  %v367_v58 = vsel %vm279_vm0, %v52_v56, 0.0  ;;  %v364_v59 = vsel %vm279_vm0, %v51_v57, 0.0  ;;  %v54_v60 = vld [vmem:[%s6361_s0 + $0xf8] sm:$0xff]  ;;  %v53_v61 = vld [vmem:[%s6361_s0 + $0xf0] sm:$0xff]  ;;  %v56_v0 = vld [vmem:[%s6361_s0 + $0x108] sm:$0xff] }
  0x22   :  { %v373_v62 = vsel %vm279_vm0, %v54_v60, 0.0  ;;  %v370_v63 = vsel %vm279_vm0, %v53_v61, 0.0  ;;  %v55_v1 = vld [vmem:[%s6361_s0 + $0x100] sm:$0xff]  ;;  %v379_v2 = vsel %vm279_vm0, %v56_v0, 0.0  ;;  %v58_v4 = vld [vmem:[%s6361_s0 + $0x118] sm:$0xff]  ;;  %v57_v5 = vld [vmem:[%s6361_s0 + $0x110] sm:$0xff] }
  0x23   :  { %332 = vadd.xlane.f32.xlu1 %v331_v34  ;;  %329 = vadd.xlane.f32.xlu0 %v328_v35  ;;  %v376_v3 = vsel %vm279_vm0, %v55_v1, 0.0  ;;  %v385_v6 = vsel %vm279_vm0, %v58_v4, 0.0  ;;  %v382_v7 = vsel %vm279_vm0, %v57_v5, 0.0  ;;  %v60_v8 = vld [vmem:[%s6361_s0 + $0x128] sm:$0xff]  ;;  %v59_v9 = vld [vmem:[%s6361_s0 + $0x120] sm:$0xff]  ;;  %v62_v12 = vld [vmem:[%s6361_s0 + $0x138] sm:$0xff] }
  0x24   :  { %v391_v10 = vsel %vm279_vm0, %v60_v8, 0.0  ;;  %v388_v11 = vsel %vm279_vm0, %v59_v9, 0.0  ;;  %v61_v13 = vld [vmem:[%s6361_s0 + $0x130] sm:$0xff]  ;;  %v397_v14 = vsel %vm279_vm0, %v62_v12, 0.0  ;;  %v64_v16 = vld [vmem:[%s6361_s0 + $0x148] sm:$0xff]  ;;  %v63_v17 = vld [vmem:[%s6361_s0 + $0x140] sm:$0xff] }
  0x25   :  { %v394_v15 = vsel %vm279_vm0, %v61_v13, 0.0  ;;  %v403_v18 = vsel %vm279_vm0, %v64_v16, 0.0  ;;  %v400_v19 = vsel %vm279_vm0, %v63_v17, 0.0  ;;  %v66_v20 = vld [vmem:[%s6361_s0 + $0x158] sm:$0xff]  ;;  %v65_v21 = vld [vmem:[%s6361_s0 + $0x150] sm:$0xff]  ;;  %v68_v24 = vld [vmem:[%s6361_s0 + $0x168] sm:$0xff] }
  0x26   :  { %v409_v22 = vsel %vm279_vm0, %v66_v20, 0.0  ;;  %v406_v23 = vsel %vm279_vm0, %v65_v21, 0.0  ;;  %v67_v25 = vld [vmem:[%s6361_s0 + $0x160] sm:$0xff]  ;;  %v415_v26 = vsel %vm279_vm0, %v68_v24, 0.0  ;;  %v70_v28 = vld [vmem:[%s6361_s0 + $0x178] sm:$0xff]  ;;  %v69_v29 = vld [vmem:[%s6361_s0 + $0x170] sm:$0xff] }
  0x27   :  { %338 = vadd.xlane.f32.xlu1 %v337_v38  ;;  %335 = vadd.xlane.f32.xlu0 %v334_v39  ;;  %v412_v27 = vsel %vm279_vm0, %v67_v25, 0.0  ;;  %v421_v30 = vsel %vm279_vm0, %v70_v28, 0.0  ;;  %v418_v31 = vsel %vm279_vm0, %v69_v29, 0.0  ;;  %v72_v32 = vld [vmem:[%s6361_s0 + $0x188] sm:$0xff]  ;;  %v71_v33 = vld [vmem:[%s6361_s0 + $0x180] sm:$0xff]  ;;  %v74_v36 = vld [vmem:[%s6361_s0 + $0x198] sm:$0xff] }
  0x28   :  { %v427_v34 = vsel %vm279_vm0, %v72_v32, 0.0  ;;  %v424_v35 = vsel %vm279_vm0, %v71_v33, 0.0  ;;  %v73_v37 = vld [vmem:[%s6361_s0 + $0x190] sm:$0xff]  ;;  %v433_v38 = vsel %vm279_vm0, %v74_v36, 0.0  ;;  %v76_v40 = vld [vmem:[%s6361_s0 + $0x1a8] sm:$0xff]  ;;  %v75_v41 = vld [vmem:[%s6361_s0 + $0x1a0] sm:$0xff] }
  0x29   :  { %v430_v39 = vsel %vm279_vm0, %v73_v37, 0.0  ;;  %v78_v44 = vld [vmem:[%s6361_s0 + $0x1b8] sm:$0xff]  ;;  %v77_v45 = vld [vmem:[%s6361_s0 + $0x1b0] sm:$0xff]  ;;  %v80_v48 = vld [vmem:[%s6361_s0 + $0x1c8] sm:$0xff]  ;;  %vm1336_vm4 = vcmask 326912   ;;  %vm1343_vm5 = vcmask 392512  }
  0x2a   :  { %v79_v49 = vld [vmem:[%s6361_s0 + $0x1c0] sm:$0xff]  ;;  %v82_v52 = vld [vmem:[%s6361_s0 + $0x1d8] sm:$0xff]  ;;  %v81_v53 = vld [vmem:[%s6361_s0 + $0x1d0] sm:$0xff]  ;;  %vm1350_vm6 = vcmask 458112   ;;  %vm1357_vm7 = vcmask 523712   ;;  %vm1364_vm8 = vcmask 589312  }
  0x2b   :  { %344 = vadd.xlane.f32.xlu1 %v343_v42  ;;  %341 = vadd.xlane.f32.xlu0 %v340_v43  ;;  %v439_v42 = vsel %vm279_vm0, %v76_v40, 0.0  ;;  %v436_v43 = vsel %vm279_vm0, %v75_v41, 0.0  ;;  %v84_v56 = vld [vmem:[%s6361_s0 + $0x1e8] sm:$0xff]  ;;  %v83_v57 = vld [vmem:[%s6361_s0 + $0x1e0] sm:$0xff]  ;;  %v86_v60 = vld [vmem:[%s6361_s0 + $0x1f8] sm:$0xff]  ;;  %vm1371_vm9 = vcmask 654912  }
  0x2c   :  { %v85_v61 = vld [vmem:[%s6361_s0 + $0x1f0] sm:$0xff]  ;;  %v88_v0 = vld [vmem:[%s6361_s0 + $0x208] sm:$0xff]  ;;  %v87_v1 = vld [vmem:[%s6361_s0 + $0x200] sm:$0xff]  ;;  %vm6366_vm10 = vcmask 720512   ;;  %vm1385_vm11 = vcmask 786112   ;;  %vm6365_vm12 = vcmask 851712  }
  0x2d   :  { %v90_v4 = vld [vmem:[%s6361_s0 + $0x218] sm:$0xff]  ;;  %v89_v5 = vld [vmem:[%s6361_s0 + $0x210] sm:$0xff]  ;;  %v92_v9 = vld [vmem:[%s6361_s0 + $0x228] sm:$0xff]  ;;  %vm1399_vm13 = vcmask 917312   ;;  %vm1406_vm14 = vcmask 982912   ;;  %vm1413_vm15 = vcmask 1048512  }
  0x2e   :  { %v478_v8 = vsel %vm279_vm0, %v89_v5, 0.0  ;;  %v487_v12 = vsel %vm279_vm0, %v92_v9, 0.0  ;;  %v93_v16 = vld [vmem:[%s6361_s0 + $0x230] sm:$0xff]  ;;  %v104_v29 = vld [vmem:[%s6361_s0 + $0x288] sm:$0xff]  ;;  %s3784_s20 = smov [#allocation3]  }
  0x2f   :  { %350 = vadd.xlane.f32.xlu1 %v349_v46  ;;  %347 = vadd.xlane.f32.xlu0 %v346_v47  ;;  %v445_v46 = vsel %vm279_vm0, %v78_v44, 0.0  ;;  %v442_v47 = vsel %vm279_vm0, %v77_v45, 0.0  ;;  %v105_v24 = vld [vmem:[%s6361_s0 + $0x290] sm:$0xff]  ;;  %v136_v37 = vld [vmem:[%s6361_s0 + $0x388] sm:$0xff]  ;;  %s3542_s21 = sshll.u32 %s3784_s20, 4  ;;  %s3543_s21 = int_to_ptr.vmem [resolvable:$true] %s3542_s21 }
  0x30   :  { %v526_v32 = vsel %vm279_vm0, %v105_v24, 0.0  ;;  %v120_v5 = vld [vmem:[%s6361_s0 + $0x308] sm:$0xff]  ;;  %p3767_p1 = scmp.lt.s32.totalorder %s3543_s21, %s3543_s21 }
  0x33   :  { %356 = vadd.xlane.f32.xlu1 %v355_v50  ;;  %353 = vadd.xlane.f32.xlu0 %v352_v51  ;;  %v451_v50 = vsel %vm279_vm0, %v80_v48, 0.0  ;;  %v448_v51 = vsel %vm279_vm0, %v79_v49, 0.0 }
  0x37   :  { %362 = vadd.xlane.f32.xlu1 %v361_v54  ;;  %359 = vadd.xlane.f32.xlu0 %v358_v55  ;;  %v457_v54 = vsel %vm279_vm0, %v82_v52, 0.0  ;;  %v454_v55 = vsel %vm279_vm0, %v81_v53, 0.0 }
  0x3b   :  { %368 = vadd.xlane.f32.xlu1 %v367_v58  ;;  %365 = vadd.xlane.f32.xlu0 %v364_v59  ;;  %v463_v58 = vsel %vm279_vm0, %v84_v56, 0.0  ;;  %v460_v59 = vsel %vm279_vm0, %v83_v57, 0.0 }
  0x3f   :  { %374 = vadd.xlane.f32.xlu1 %v373_v62  ;;  %371 = vadd.xlane.f32.xlu0 %v370_v63  ;;  %v469_v62 = vsel %vm279_vm0, %v86_v60, 0.0  ;;  %v466_v63 = vsel %vm279_vm0, %v85_v61, 0.0 }
  0x43   :  { %380 = vadd.xlane.f32.xlu1 %v379_v2  ;;  %377 = vadd.xlane.f32.xlu0 %v376_v3  ;;  %v475_v2 = vsel %vm279_vm0, %v88_v0, 0.0  ;;  %v472_v3 = vsel %vm279_vm0, %v87_v1, 0.0 }
  0x47   :  { %386 = vadd.xlane.f32.xlu1 %v385_v6  ;;  %383 = vadd.xlane.f32.xlu0 %v382_v7  ;;  %v1304_v6 = vlaneseq  ;;  %v481_v7 = vsel %vm279_vm0, %v90_v4, 0.0  ;;  %v137_v4 = vld [vmem:[%s6361_s0 + $0x390] sm:$0xff] }
  0x4b   :  { %392 = vadd.xlane.f32.xlu1 %v391_v10  ;;  %389 = vadd.xlane.f32.xlu0 %v388_v11  ;;  %v91_v10 = vld [vmem:[%s6361_s0 + $0x220] sm:$0xff]  ;;  %v4083_v11 = vand.u32 127, %v1304_v6 }
  0x4c   :  { %v484_v13 = vsel %vm279_vm0, %v91_v10, 0.0 }
  0x4d   :  { %v1324_v17 = vadd.s32 4294967272, %v4083_v11  ;;  %v1338_v25 = vadd.s32 4294967256, %v4083_v11  ;;  %v1345_v40 = vadd.s32 4294967248, %v4083_v11  ;;  %v1366_v56 = vadd.s32 4294967224, %v4083_v11 }
  0x4e   :  { %v1359_v60 = vadd.s32 4294967232, %v4083_v11  ;;  %v1373_v10 = vadd.s32 4294967216, %v4083_v11 }
  0x4f   :  { %398 = vadd.xlane.f32.xlu1 %v397_v14  ;;  %395 = vadd.xlane.f32.xlu0 %v394_v15  ;;  %v4087_v14 = vshrl.u32 %v1304_v6, 7  ;;  %v103_v15 = vld [vmem:[%s6361_s0 + $0x280] sm:$0xff]  ;;  %v1380_v6 = vadd.s32 4294967208, %v4083_v11 }
  0x51   :  { %v4124_v36 = vsub.s32 %v1338_v25, %v4087_v14  ;;  %v4149_v53 = vsub.s32 %v1345_v40, %v4087_v14  ;;  %v4179_v9 = vsub.s32 %v1359_v60, %v4087_v14  ;;  %v4199_v25 = vsub.s32 %v1373_v10, %v4087_v14 }
  0x53   :  { %404 = vadd.xlane.f32.xlu1 %v403_v18  ;;  %401 = vadd.xlane.f32.xlu0 %v400_v19  ;;  %v1310_v18 = vadd.s32 4294967288, %v4083_v11  ;;  %v1317_v19 = vadd.s32 4294967280, %v4083_v11 }
  0x55   :  { %v4112_v28 = vsub.s32 %v1310_v18, %v4087_v14 }
  0x57   :  { %410 = vadd.xlane.f32.xlu1 %v409_v22  ;;  %407 = vadd.xlane.f32.xlu0 %v406_v23  ;;  %v520_v22 = vsel %vm279_vm0, %v103_v15, 0.0  ;;  %v490_v23 = vsel %vm279_vm0, %v93_v16, 0.0  ;;  %v571_v15 = vsel %vm279_vm0, %v120_v5, 0.0  ;;  %v152_v5 = vld [vmem:[%s6361_s0 + $0x408] sm:$0xff] }
  0x5b   :  { %416 = vadd.xlane.f32.xlu1 %v415_v26  ;;  %413 = vadd.xlane.f32.xlu0 %v412_v27  ;;  %v4106_v26 = vsub.s32 %v4083_v11, %v4087_v14  ;;  %v4109_v27 = vsub.s32 %v1324_v17, %v4087_v14 }
  0x5f   :  { %422 = vadd.xlane.f32.xlu1 %v421_v30  ;;  %419 = vadd.xlane.f32.xlu0 %v418_v31  ;;  %v1331_v30 = vadd.s32 4294967264, %v4083_v11  ;;  %v4119_v31 = vsub.s32 %v1317_v19, %v4087_v14  ;;  %v4187_v19 = vsub.s32 %v1380_v6, %v4087_v14 }
  0x61   :  { %v4138_v44 = vsub.s32 %v1331_v30, %v4087_v14 }
  0x63   :  { %428 = vadd.xlane.f32.xlu1 %v427_v34  ;;  %425 = vadd.xlane.f32.xlu0 %v424_v35  ;;  %v523_v35 = vsel %vm279_vm0, %v104_v29, 0.0  ;;  %v1387_v29 = vadd.s32 4294967200, %v4083_v11 }
  0x67   :  { %434 = vadd.xlane.f32.xlu1 %v433_v38  ;;  %431 = vadd.xlane.f32.xlu0 %v430_v39  ;;  %v135_v38 = vld [vmem:[%s6361_s0 + $0x380] sm:$0xff]  ;;  %v1352_v39 = vadd.s32 4294967240, %v4083_v11 }
  0x68   :  { %v616_v48 = vsel %vm279_vm0, %v135_v38, 0.0 }
  0x69   :  { %v4146_v52 = vsub.s32 %v1352_v39, %v4087_v14  ;;  %v1401_v39 = vadd.s32 4294967184, %v4083_v11 }
  0x6b   :  { %440 = vadd.xlane.f32.xlu1 %v439_v42  ;;  %437 = vadd.xlane.f32.xlu0 %v436_v43 }
  0x6f   :  { %446 = vadd.xlane.f32.xlu1 %v445_v46  ;;  %443 = vadd.xlane.f32.xlu0 %v442_v47  ;;  %v619_v47 = vsel %vm279_vm0, %v136_v37, 0.0 }
  0x73   :  { %452 = vadd.xlane.f32.xlu1 %v451_v50  ;;  %449 = vadd.xlane.f32.xlu0 %v448_v51 }
  0x77   :  { %458 = vadd.xlane.f32.xlu1 %v457_v54  ;;  %455 = vadd.xlane.f32.xlu0 %v454_v55  ;;  %v119_v54 = vld [vmem:[%s6361_s0 + $0x300] sm:$0xff]  ;;  %v106_v55 = vld [vmem:[%s6361_s0 + $0x298] sm:$0xff] }
  0x7b   :  { %464 = vadd.xlane.f32.xlu1 %v463_v58  ;;  %461 = vadd.xlane.f32.xlu0 %v460_v59 }
  0x7f   :  { %470 = vadd.xlane.f32.xlu1 %v469_v62  ;;  %467 = vadd.xlane.f32.xlu0 %v466_v63  ;;  %v568_v62 = vsel %vm279_vm0, %v119_v54, 0.0  ;;  %v529_v63 = vsel %vm279_vm0, %v106_v55, 0.0 }
  0x83   :  { %476 = vadd.xlane.f32.xlu1 %v475_v2  ;;  %473 = vadd.xlane.f32.xlu0 %v472_v3  ;;  %v4167_v3 = vsub.s32 %v1366_v56, %v4087_v14 }
  0x87   :  { %482 = vadd.xlane.f32.xlu1 %v481_v7  ;;  %479 = vadd.xlane.f32.xlu0 %v478_v8 }
  0x8b   :  { %488 = vadd.xlane.f32.xlu1 %v487_v12  ;;  %485 = vadd.xlane.f32.xlu0 %v484_v13  ;;  %v622_v13 = vsel %vm279_vm0, %v137_v4, 0.0  ;;  %v169_v4 = vld [vmem:[%s6361_s0 + $0x490] sm:$0xff] }
  0x8c   :  { %v288_v20 = vpop.xlane.xlu1 %287  ;;  %v282_v21 = vpop.xlane.xlu0 %281 }
  0x8d   :  { %v1309_v41 = vrot.slane %v282_v21, %v4106_v26  ;;  %v1321_v45 = vrot.slane %v288_v20, %v4119_v31  ;;  %v168_v20 = vld [vmem:[%s6361_s0 + $0x488] sm:$0xff]  ;;  %v167_v21 = vld [vmem:[%s6361_s0 + $0x480] sm:$0xff] }
  0x8f   :  { %521 = vadd.xlane.f32.xlu1 %v520_v22  ;;  %491 = vadd.xlane.f32.xlu0 %v490_v23  ;;  %v1394_v22 = vadd.s32 4294967192, %v4083_v11 }
  0x90   :  { %v291_v33 = vpop.xlane.xlu1 %290  ;;  %v285_v34 = vpop.xlane.xlu0 %284 }
  0x91   :  { %v1328_v42 = vrot.slane %v291_v33, %v4109_v27  ;;  %v1314_v43 = vrot.slane %v285_v34, %v4112_v28  ;;  %v712_v33 = vsel %vm279_vm0, %v167_v21, 0.0  ;;  %v4207_v38 = vsub.s32 %v1394_v22, %v4087_v14 }
  0x93   :  { %v1316_v46 = vsel %vm1315_vm1, %v1314_v43, %v1309_v41  ;;  %527 = vadd.xlane.f32.xlu1 %v526_v32  ;;  %524 = vadd.xlane.f32.xlu0 %v523_v35  ;;  %v715_v32 = vsel %vm279_vm0, %v168_v20, 0.0  ;;  %v121_v43 = vld [vmem:[%s6361_s0 + $0x310] sm:$0xff] }
  0x94   :  { %v1323_v49 = vsel %vm1322_vm2, %v1321_v45, %v1316_v46  ;;  %v297_v50 = vpop.xlane.xlu1 %296  ;;  %v294_v51 = vpop.xlane.xlu0 %293  ;;  %v107_v45 = vld [vmem:[%s6361_s0 + $0x2a0] sm:$0xff]  ;;  %v1408_v46 = vadd.s32 4294967176, %v4083_v11 }
  0x95   :  { %v1342_v57 = vrot.slane %v297_v50, %v4124_v36  ;;  %v1330_v58 = vsel %vm1329_vm3, %v1328_v42, %v1323_v49  ;;  %v1335_v59 = vrot.slane %v294_v51, %v4138_v44  ;;  %v4213_v42 = vsub.s32 %v1387_v29, %v4087_v14 }
  0x96   :  { %v574_v51 = vsel %vm279_vm0, %v121_v43, 0.0  ;;  %v532_v54 = vsel %vm279_vm0, %v107_v45, 0.0  ;;  %v4229_v11 = vsub.s32 %v1408_v46, %v4087_v14  ;;  %v153_v46 = vld [vmem:[%s6361_s0 + $0x410] sm:$0xff] }
  0x97   :  { %v1337_v61 = vsel %vm1336_vm4, %v1335_v59, %v1330_v58  ;;  %620 = vadd.xlane.f32.xlu1 %v619_v47  ;;  %617 = vadd.xlane.f32.xlu0 %v616_v48  ;;  %v151_v58 = vld [vmem:[%s6361_s0 + $0x400] sm:$0xff]  ;;  %v138_v59 = vld [vmem:[%s6361_s0 + $0x398] sm:$0xff] }
  0x98   :  { %v303_v0 = vpop.xlane.xlu1 %302  ;;  %v1344_v1 = vsel %vm1343_vm5, %v1342_v57, %v1337_v61  ;;  %v300_v2 = vpop.xlane.xlu0 %299  ;;  %v4232_v57 = vsub.s32 %v1401_v39, %v4087_v14  ;;  %v664_v14 = vsel %vm279_vm0, %v151_v58, 0.0 }
  0x99   :  { %v1356_v7 = vrot.slane %v303_v0, %v4146_v52  ;;  %v1349_v8 = vrot.slane %v300_v2, %v4149_v53  ;;  %v625_v0 = vsel %vm279_vm0, %v138_v59, 0.0  ;;  %v183_v59 = vld [vmem:[%s6361_s0 + $0x500] sm:$0xff] }
  0x9b   :  { %v1351_v12 = vsel %vm1350_vm6, %v1349_v8, %v1344_v1  ;;  %569 = vadd.xlane.f32.xlu1 %v568_v62  ;;  %530 = vadd.xlane.f32.xlu0 %v529_v63 }
  0x9c   :  { %v309_v16 = vpop.xlane.xlu1 %308  ;;  %v1358_v17 = vsel %vm1357_vm7, %v1356_v7, %v1351_v12  ;;  %v306_v18 = vpop.xlane.xlu0 %305  ;;  %v718_v12 = vsel %vm279_vm0, %v169_v4, 0.0 }
  0x9d   :  { %v1370_v23 = vrot.slane %v309_v16, %v4167_v3  ;;  %v1363_v24 = vrot.slane %v306_v18, %v4179_v9  ;;  %v199_v18 = vld [vmem:[%s6361_s0 + $0x580] sm:$0xff] }
  0x9f   :  { %v1365_v30 = vsel %vm1364_vm8, %v1363_v24, %v1358_v17  ;;  %623 = vadd.xlane.f32.xlu1 %v622_v13  ;;  %572 = vadd.xlane.f32.xlu0 %v571_v15  ;;  %v667_v13 = vsel %vm279_vm0, %v152_v5, 0.0  ;;  %v200_v17 = vld [vmem:[%s6361_s0 + $0x588] sm:$0xff]  ;;  %v808_v24 = vsel %vm279_vm0, %v199_v18, 0.0  ;;  %v201_v5 = vld [vmem:[%s6361_s0 + $0x590] sm:$0xff] }
  0xa0   :  { %v315_v34 = vpop.xlane.xlu1 %314  ;;  %v1372_v35 = vsel %vm1371_vm9, %v1370_v23, %v1365_v30  ;;  %v312_v37 = vpop.xlane.xlu0 %311  ;;  %v811_v23 = vsel %vm279_vm0, %v200_v17, 0.0 }
  0xa1   :  { %v1384_v40 = vrot.slane %v315_v34, %v4187_v19  ;;  %v1377_v41 = vrot.slane %v312_v37, %v4199_v25 }
  0xa3   :  { %v1379_v47 = vsel %vm6366_vm10, %v1377_v41, %v1372_v35  ;;  %716 = vadd.xlane.f32.xlu1 %v715_v32  ;;  %713 = vadd.xlane.f32.xlu0 %v712_v33  ;;  %v122_v32 = vld [vmem:[%s6361_s0 + $0x318] sm:$0xff]  ;;  %v108_v33 = vld [vmem:[%s6361_s0 + $0x2a8] sm:$0xff] }
  0xa4   :  { %v321_v48 = vpop.xlane.xlu1 %320  ;;  %v1386_v49 = vsel %vm1385_vm11, %v1384_v40, %v1379_v47  ;;  %v318_v50 = vpop.xlane.xlu0 %317  ;;  %v577_v40 = vsel %vm279_vm0, %v122_v32, 0.0  ;;  %v535_v41 = vsel %vm279_vm0, %v108_v33, 0.0  ;;  %v139_v47 = vld [vmem:[%s6361_s0 + $0x3a0] sm:$0xff] }
  0xa5   :  { %v1398_v55 = vrot.slane %v321_v48, %v4207_v38  ;;  %v1391_v56 = vrot.slane %v318_v50, %v4213_v42 }
  0xa7   :  { %v1393_v60 = vsel %vm6365_vm12, %v1391_v56, %v1386_v49  ;;  %575 = vadd.xlane.f32.xlu1 %v574_v51  ;;  %533 = vadd.xlane.f32.xlu0 %v532_v54  ;;  %v670_v54 = vsel %vm279_vm0, %v153_v46, 0.0 }
  0xa8   :  { %v327_v61 = vpop.xlane.xlu1 %326  ;;  %v1400_v62 = vsel %vm1399_vm13, %v1398_v55, %v1393_v60  ;;  %v324_v63 = vpop.xlane.xlu0 %323  ;;  %v628_v55 = vsel %vm279_vm0, %v139_v47, 0.0  ;;  %v170_v60 = vld [vmem:[%s6361_s0 + $0x498] sm:$0xff] }
  0xa9   :  { %v1412_v1 = vrot.slane %v327_v61, %v4229_v11  ;;  %v1405_v2 = vrot.slane %v324_v63, %v4232_v57 }
  0xab   :  { %v1407_v6 = vsel %vm1406_vm14, %v1405_v2, %v1400_v62  ;;  %665 = vadd.xlane.f32.xlu1 %v664_v14  ;;  %626 = vadd.xlane.f32.xlu0 %v625_v0  ;;  %v760_v0 = vsel %vm279_vm0, %v183_v59, 0.0 }
  0xac   :  { %v4254_v7 = vsel %vm1413_vm15, %v1412_v1, %v1407_v6  ;;  %v333_v8 = vpop.xlane.xlu1 %332  ;;  %v330_v10 = vpop.xlane.xlu0 %329  ;;  %v721_v1 = vsel %vm279_vm0, %v170_v60, 0.0  ;;  %v184_v6 = vld [vmem:[%s6361_s0 + $0x508] sm:$0xff] }
  0xad   :  { %v1422_v15 = vrot.slane %v333_v8, %v4112_v28  ;;  %v1418_v16 = vrot.slane %v330_v10, %v4106_v26 }
  0xaf   :  { %v1423_v20 = vsel %vm1315_vm1, %v1422_v15, %v1418_v16  ;;  %719 = vadd.xlane.f32.xlu1 %v718_v12  ;;  %668 = vadd.xlane.f32.xlu0 %v667_v13  ;;  %v814_v15 = vsel %vm279_vm0, %v201_v5, 0.0  ;;  %v763_v16 = vsel %vm279_vm0, %v184_v6, 0.0 }
  0xb0   :  { %v339_v21 = vpop.xlane.xlu1 %338  ;;  %v336_v22 = vpop.xlane.xlu0 %335 }
  0xb1   :  { %v1432_v29 = vrot.slane %v339_v21, %v4109_v27  ;;  %v1427_v30 = vrot.slane %v336_v22, %v4119_v31  ;;  %v231_v21 = vld [vmem:[%s6361_s0 + $0x680] sm:$0xff] }
  0xb2   :  { %v904_v32 = vsel %vm279_vm0, %v231_v21, 0.0 }
  0xb3   :  { %v1428_v34 = vsel %vm1322_vm2, %v1427_v30, %v1423_v20  ;;  %812 = vadd.xlane.f32.xlu1 %v811_v23  ;;  %809 = vadd.xlane.f32.xlu0 %v808_v24  ;;  %v232_v20 = vld [vmem:[%s6361_s0 + $0x688] sm:$0xff] }
  0xb4   :  { %v345_v35 = vpop.xlane.xlu1 %344  ;;  %v1433_v37 = vsel %vm1329_vm3, %v1432_v29, %v1428_v34  ;;  %v342_v39 = vpop.xlane.xlu0 %341  ;;  %v907_v30 = vsel %vm279_vm0, %v232_v20, 0.0 }
  0xb5   :  { %v1442_v43 = vrot.slane %v345_v35, %v4124_v36  ;;  %v1437_v45 = vrot.slane %v342_v39, %v4138_v44  ;;  %v123_v35 = vld [vmem:[%s6361_s0 + $0x320] sm:$0xff] }
  0xb7   :  { %v1438_v48 = vsel %vm1336_vm4, %v1437_v45, %v1433_v37  ;;  %578 = vadd.xlane.f32.xlu1 %v577_v40  ;;  %536 = vadd.xlane.f32.xlu0 %v535_v41  ;;  %v109_v37 = vld [vmem:[%s6361_s0 + $0x2b0] sm:$0xff]  ;;  %v580_v45 = vsel %vm279_vm0, %v123_v35, 0.0 }
  0xb8   :  { %v351_v49 = vpop.xlane.xlu1 %350  ;;  %v1443_v50 = vsel %vm1343_vm5, %v1442_v43, %v1438_v48  ;;  %v348_v51 = vpop.xlane.xlu0 %347  ;;  %v538_v46 = vsel %vm279_vm0, %v109_v37, 0.0 }
  0xb9   :  { %v1452_v56 = vrot.slane %v351_v49, %v4146_v52  ;;  %v1447_v58 = vrot.slane %v348_v51, %v4149_v53  ;;  %v154_v49 = vld [vmem:[%s6361_s0 + $0x418] sm:$0xff] }
  0xbb   :  { %v1448_v61 = vsel %vm1350_vm6, %v1447_v58, %v1443_v50  ;;  %671 = vadd.xlane.f32.xlu1 %v670_v54  ;;  %629 = vadd.xlane.f32.xlu0 %v628_v55  ;;  %v140_v50 = vld [vmem:[%s6361_s0 + $0x3a8] sm:$0xff]  ;;  %v673_v58 = vsel %vm279_vm0, %v154_v49, 0.0 }
  0xbc   :  { %v357_v62 = vpop.xlane.xlu1 %356  ;;  %v1453_v63 = vsel %vm1357_vm7, %v1452_v56, %v1448_v61  ;;  %v354_v14 = vpop.xlane.xlu0 %353  ;;  %v631_v59 = vsel %vm279_vm0, %v140_v50, 0.0 }
  0xbd   :  { %v1462_v2 = vrot.slane %v357_v62, %v4167_v3  ;;  %v1457_v4 = vrot.slane %v354_v14, %v4179_v9  ;;  %v185_v62 = vld [vmem:[%s6361_s0 + $0x510] sm:$0xff] }
  0xbf   :  { %v1458_v8 = vsel %vm1364_vm8, %v1457_v4, %v1453_v63  ;;  %761 = vadd.xlane.f32.xlu1 %v760_v0  ;;  %722 = vadd.xlane.f32.xlu0 %v721_v1  ;;  %v171_v63 = vld [vmem:[%s6361_s0 + $0x4a0] sm:$0xff] }
  0xc0   :  { %v363_v10 = vpop.xlane.xlu1 %362  ;;  %v1463_v12 = vsel %vm1371_vm9, %v1462_v2, %v1458_v8  ;;  %v360_v13 = vpop.xlane.xlu0 %359  ;;  %v766_v2 = vsel %vm279_vm0, %v185_v62, 0.0  ;;  %v724_v4 = vsel %vm279_vm0, %v171_v63, 0.0  ;;  %v215_v8 = vld [vmem:[%s6361_s0 + $0x600] sm:$0xff] }
  0xc1   :  { %v1472_v17 = vrot.slane %v363_v10, %v4187_v19  ;;  %v1467_v18 = vrot.slane %v360_v13, %v4199_v25  ;;  %v202_v10 = vld [vmem:[%s6361_s0 + $0x598] sm:$0xff] }
  0xc3   :  { %v1468_v22 = vsel %vm6366_vm10, %v1467_v18, %v1463_v12  ;;  %815 = vadd.xlane.f32.xlu1 %v814_v15  ;;  %764 = vadd.xlane.f32.xlu0 %v763_v16  ;;  %v817_v18 = vsel %vm279_vm0, %v202_v10, 0.0 }
  0xc4   :  { %v369_v23 = vpop.xlane.xlu1 %368  ;;  %v1473_v24 = vsel %vm1385_vm11, %v1472_v17, %v1468_v22  ;;  %v366_v29 = vpop.xlane.xlu0 %365  ;;  %v856_v17 = vsel %vm279_vm0, %v215_v8, 0.0  ;;  %v233_v22 = vld [vmem:[%s6361_s0 + $0x690] sm:$0xff] }
  0xc5   :  { %v1482_v33 = vrot.slane %v369_v23, %v4207_v38  ;;  %v1477_v34 = vrot.slane %v366_v29, %v4213_v42  ;;  %v216_v23 = vld [vmem:[%s6361_s0 + $0x608] sm:$0xff] }
  0xc7   :  { %v1478_v39 = vsel %vm6365_vm12, %v1477_v34, %v1473_v24  ;;  %908 = vadd.xlane.f32.xlu1 %v907_v30  ;;  %905 = vadd.xlane.f32.xlu0 %v904_v32  ;;  %v859_v34 = vsel %vm279_vm0, %v216_v23, 0.0 }
  0xc8   :  { %v375_v40 = vpop.xlane.xlu1 %374  ;;  %v1483_v41 = vsel %vm1399_vm13, %v1482_v33, %v1478_v39  ;;  %v372_v43 = vpop.xlane.xlu0 %371  ;;  %v910_v33 = vsel %vm279_vm0, %v233_v22, 0.0  ;;  %v264_v39 = vld [vmem:[%s6361_s0 + $0x788] sm:$0xff] }
  0xc9   :  { %v1492_v47 = vrot.slane %v375_v40, %v4229_v11  ;;  %v1487_v48 = vrot.slane %v372_v43, %v4232_v57  ;;  %v263_v40 = vld [vmem:[%s6361_s0 + $0x780] sm:$0xff] }
  0xcb   :  { %v1488_v51 = vsel %vm1406_vm14, %v1487_v48, %v1483_v41  ;;  %581 = vadd.xlane.f32.xlu1 %v580_v45  ;;  %539 = vadd.xlane.f32.xlu0 %v538_v46  ;;  %v1000_v48 = vsel %vm279_vm0, %v263_v40, 0.0 }
  0xcc   :  { %v4351_v54 = vsel %vm1413_vm15, %v1492_v47, %v1488_v51  ;;  %v381_v55 = vpop.xlane.xlu1 %380  ;;  %v378_v56 = vpop.xlane.xlu0 %377  ;;  %v1003_v47 = vsel %vm279_vm0, %v264_v39, 0.0  ;;  %v124_v51 = vld [vmem:[%s6361_s0 + $0x328] sm:$0xff] }
  0xcd   :  { %v1501_v60 = vrot.slane %v381_v55, %v4112_v28  ;;  %v1497_v61 = vrot.slane %v378_v56, %v4106_v26  ;;  %v110_v55 = vld [vmem:[%s6361_s0 + $0x2b8] sm:$0xff] }
  0xce   :  { %v541_v62 = vsel %vm279_vm0, %v110_v55, 0.0 }
  0xcf   :  { %v1502_v14 = vsel %vm1315_vm1, %v1501_v60, %v1497_v61  ;;  %674 = vadd.xlane.f32.xlu1 %v673_v58  ;;  %632 = vadd.xlane.f32.xlu0 %v631_v59  ;;  %v583_v61 = vsel %vm279_vm0, %v124_v51, 0.0 }
  0xd0   :  { %v387_v0 = vpop.xlane.xlu1 %386  ;;  %v384_v1 = vpop.xlane.xlu0 %383 }
  0xd1   :  { %v1511_v5 = vrot.slane %v387_v0, %v4109_v27  ;;  %v1506_v6 = vrot.slane %v384_v1, %v4119_v31  ;;  %v155_v0 = vld [vmem:[%s6361_s0 + $0x420] sm:$0xff]  ;;  %v141_v1 = vld [vmem:[%s6361_s0 + $0x3b0] sm:$0xff] }
  0xd2   :  { %v676_v8 = vsel %vm279_vm0, %v155_v0, 0.0  ;;  %v634_v10 = vsel %vm279_vm0, %v141_v1, 0.0 }
  0xd3   :  { %v1507_v12 = vsel %vm1322_vm2, %v1506_v6, %v1502_v14  ;;  %767 = vadd.xlane.f32.xlu1 %v766_v2  ;;  %725 = vadd.xlane.f32.xlu0 %v724_v4 }
  0xd4   :  { %v393_v13 = vpop.xlane.xlu1 %392  ;;  %v1512_v15 = vsel %vm1329_vm3, %v1511_v5, %v1507_v12  ;;  %v390_v16 = vpop.xlane.xlu0 %389 }
  0xd5   :  { %v1521_v20 = vrot.slane %v393_v13, %v4124_v36  ;;  %v1516_v21 = vrot.slane %v390_v16, %v4138_v44  ;;  %v172_v16 = vld [vmem:[%s6361_s0 + $0x4a8] sm:$0xff] }
  0xd6   :  { %v727_v23 = vsel %vm279_vm0, %v172_v16, 0.0 }
  0xd7   :  { %v1517_v24 = vsel %vm1336_vm4, %v1516_v21, %v1512_v15  ;;  %857 = vadd.xlane.f32.xlu1 %v856_v17  ;;  %818 = vadd.xlane.f32.xlu0 %v817_v18  ;;  %v186_v15 = vld [vmem:[%s6361_s0 + $0x518] sm:$0xff] }
  0xd8   :  { %v399_v29 = vpop.xlane.xlu1 %398  ;;  %v1522_v30 = vsel %vm1343_vm5, %v1521_v20, %v1517_v24  ;;  %v396_v32 = vpop.xlane.xlu0 %395  ;;  %v769_v22 = vsel %vm279_vm0, %v186_v15, 0.0 }
  0xd9   :  { %v1531_v35 = vrot.slane %v399_v29, %v4146_v52  ;;  %v1526_v37 = vrot.slane %v396_v32, %v4149_v53  ;;  %v203_v32 = vld [vmem:[%s6361_s0 + $0x5a0] sm:$0xff] }
  0xda   :  { %v820_v40 = vsel %vm279_vm0, %v203_v32, 0.0 }
  0xdb   :  { %v1527_v41 = vsel %vm1350_vm6, %v1526_v37, %v1522_v30  ;;  %911 = vadd.xlane.f32.xlu1 %v910_v33  ;;  %860 = vadd.xlane.f32.xlu0 %v859_v34  ;;  %v217_v30 = vld [vmem:[%s6361_s0 + $0x610] sm:$0xff] }
  0xdc   :  { %v405_v43 = vpop.xlane.xlu1 %404  ;;  %v1532_v45 = vsel %vm1357_vm7, %v1531_v35, %v1527_v41  ;;  %v402_v46 = vpop.xlane.xlu0 %401  ;;  %v862_v39 = vsel %vm279_vm0, %v217_v30, 0.0 }
  0xdd   :  { %v1541_v49 = vrot.slane %v405_v43, %v4167_v3  ;;  %v1536_v50 = vrot.slane %v402_v46, %v4179_v9  ;;  %v234_v46 = vld [vmem:[%s6361_s0 + $0x698] sm:$0xff] }
  0xde   :  { %v913_v55 = vsel %vm279_vm0, %v234_v46, 0.0 }
  0xdf   :  { %v1537_v56 = vsel %vm1364_vm8, %v1536_v50, %v1532_v45  ;;  %1004 = vadd.xlane.f32.xlu1 %v1003_v47  ;;  %1001 = vadd.xlane.f32.xlu0 %v1000_v48  ;;  %v247_v45 = vld [vmem:[%s6361_s0 + $0x700] sm:$0xff] }
  0xe0   :  { %v411_v58 = vpop.xlane.xlu1 %410  ;;  %v1542_v59 = vsel %vm1371_vm9, %v1541_v49, %v1537_v56  ;;  %v408_v60 = vpop.xlane.xlu0 %407  ;;  %v952_v51 = vsel %vm279_vm0, %v247_v45, 0.0 }
  0xe1   :  { %v1551_v63 = vrot.slane %v411_v58, %v4187_v19  ;;  %v1546_v14 = vrot.slane %v408_v60, %v4199_v25 }
  0xe3   :  { %v1547_v2 = vsel %vm6366_vm10, %v1546_v14, %v1542_v59  ;;  %584 = vadd.xlane.f32.xlu1 %v583_v61  ;;  %542 = vadd.xlane.f32.xlu0 %v541_v62  ;;  %v265_v59 = vld [vmem:[%s6361_s0 + $0x790] sm:$0xff] }
  0xe4   :  { %v417_v4 = vpop.xlane.xlu1 %416  ;;  %v1552_v5 = vsel %vm1385_vm11, %v1551_v63, %v1547_v2  ;;  %v414_v6 = vpop.xlane.xlu0 %413  ;;  %v1006_v14 = vsel %vm279_vm0, %v265_v59, 0.0 }
  0xe5   :  { %v1561_v12 = vrot.slane %v417_v4, %v4207_v38  ;;  %v1556_v13 = vrot.slane %v414_v6, %v4213_v42  ;;  %v111_v4 = vld [vmem:[%s6361_s0 + $0x2c0] sm:$0xff] }
  0xe7   :  { %v1557_v17 = vsel %vm6365_vm12, %v1556_v13, %v1552_v5  ;;  %677 = vadd.xlane.f32.xlu1 %v676_v8  ;;  %635 = vadd.xlane.f32.xlu0 %v634_v10  ;;  %vm2600_vm12 = vcmask 1041409   ;;  %v94_v5 = vld [vmem:[%s6361_s0 + $0x238] sm:$0xff]  ;;  %v544_v13 = vsel %vm279_vm0, %v111_v4, 0.0 }
  0xe8   :  { %v423_v18 = vpop.xlane.xlu1 %422  ;;  %v1562_v20 = vsel %vm1399_vm13, %v1561_v12, %v1557_v17  ;;  %v420_v21 = vpop.xlane.xlu0 %419  ;;  %v493_v15 = vsel %vm279_vm0, %v94_v5, 0.0 }
  0xe9   :  { %v1571_v24 = vrot.slane %v423_v18, %v4229_v11  ;;  %v1566_v29 = vrot.slane %v420_v21, %v4232_v57  ;;  %v142_v18 = vld [vmem:[%s6361_s0 + $0x3b8] sm:$0xff] }
  0xeb   :  { %v1567_v33 = vsel %vm1406_vm14, %v1566_v29, %v1562_v20  ;;  %770 = vadd.xlane.f32.xlu1 %v769_v22  ;;  %728 = vadd.xlane.f32.xlu0 %v727_v23  ;;  %v125_v20 = vld [vmem:[%s6361_s0 + $0x330] sm:$0xff]  ;;  %v637_v29 = vsel %vm279_vm0, %v142_v18, 0.0 }
  0xec   :  { %v1572_v34 = vsel %vm1413_vm15, %v1571_v24, %v1567_v33  ;;  %v429_v35 = vpop.xlane.xlu1 %428  ;;  %v426_v37 = vpop.xlane.xlu0 %425  ;;  %v586_v30 = vsel %vm279_vm0, %v125_v20, 0.0 }
  0xed   :  { %v1580_v41 = vrot.slane %v429_v35, %v4112_v28  ;;  %v1576_v43 = vrot.slane %v426_v37, %v4106_v26  ;;  %v4460_v47 = vsel %vm2600_vm12, %v1572_v34, %v4254_v7  ;;  %v248_v7 = vld [vmem:[%s6361_s0 + $0x708] sm:$0xff]  ;;  %v173_v34 = vld [vmem:[%s6361_s0 + $0x4b0] sm:$0xff] }
  0xee   :  { %v955_v0 = vsel %vm279_vm0, %v248_v7, 0.0  ;;  %v156_v35 = vld [vmem:[%s6361_s0 + $0x428] sm:$0xff] }
  0xef   :  { %v1581_v48 = vsel %vm1315_vm1, %v1580_v41, %v1576_v43  ;;  %863 = vadd.xlane.f32.xlu1 %v862_v39  ;;  %821 = vadd.xlane.f32.xlu0 %v820_v40  ;;  %v730_v43 = vsel %vm279_vm0, %v173_v34, 0.0  ;;  %v679_v45 = vsel %vm279_vm0, %v156_v35, 0.0 }
  0xf0   :  { %v435_v49 = vpop.xlane.xlu1 %434  ;;  %v432_v50 = vpop.xlane.xlu0 %431 }
  0xf1   :  { %v1590_v56 = vrot.slane %v435_v49, %v4109_v27  ;;  %v1585_v58 = vrot.slane %v432_v50, %v4119_v31  ;;  %v204_v49 = vld [vmem:[%s6361_s0 + $0x5a8] sm:$0xff]  ;;  %v187_v50 = vld [vmem:[%s6361_s0 + $0x520] sm:$0xff] }
  0xf2   :  { %v823_v59 = vsel %vm279_vm0, %v204_v49, 0.0  ;;  %v772_v7 = vsel %vm279_vm0, %v187_v50, 0.0 }
  0xf3   :  { %v1586_v60 = vsel %vm1322_vm2, %v1585_v58, %v1581_v48  ;;  %953 = vadd.xlane.f32.xlu1 %v952_v51  ;;  %914 = vadd.xlane.f32.xlu0 %v913_v55 }
  0xf4   :  { %v441_v61 = vpop.xlane.xlu1 %440  ;;  %v1591_v62 = vsel %vm1329_vm3, %v1590_v56, %v1586_v60  ;;  %v438_v63 = vpop.xlane.xlu0 %437 }
  0xf5   :  { %v1600_v1 = vrot.slane %v441_v61, %v4124_v36  ;;  %v1595_v2 = vrot.slane %v438_v63, %v4138_v44  ;;  %v218_v63 = vld [vmem:[%s6361_s0 + $0x618] sm:$0xff] }
  0xf6   :  { %v865_v5 = vsel %vm279_vm0, %v218_v63, 0.0 }
  0xf7   :  { %v1596_v6 = vsel %vm1336_vm4, %v1595_v2, %v1591_v62  ;;  %1007 = vadd.xlane.f32.xlu1 %v1006_v14  ;;  %956 = vadd.xlane.f32.xlu0 %v955_v0  ;;  %v235_v62 = vld [vmem:[%s6361_s0 + $0x6a0] sm:$0xff] }
  0xf8   :  { %v447_v8 = vpop.xlane.xlu1 %446  ;;  %v1601_v10 = vsel %vm1343_vm5, %v1600_v1, %v1596_v6  ;;  %v444_v12 = vpop.xlane.xlu0 %443  ;;  %v916_v4 = vsel %vm279_vm0, %v235_v62, 0.0 }
  0xf9   :  { %v1610_v16 = vrot.slane %v447_v8, %v4146_v52  ;;  %v1605_v17 = vrot.slane %v444_v12, %v4149_v53  ;;  %v249_v12 = vld [vmem:[%s6361_s0 + $0x710] sm:$0xff] }
  0xfa   :  { %v958_v20 = vsel %vm279_vm0, %v249_v12, 0.0 }
  0xfb   :  { %v1606_v21 = vsel %vm1350_vm6, %v1605_v17, %v1601_v10  ;;  %545 = vadd.xlane.f32.xlu1 %v544_v13  ;;  %494 = vadd.xlane.f32.xlu0 %v493_v15  ;;  %v266_v10 = vld [vmem:[%s6361_s0 + $0x798] sm:$0xff] }
  0xfc   :  { %v453_v22 = vpop.xlane.xlu1 %452  ;;  %v1611_v23 = vsel %vm1357_vm7, %v1610_v16, %v1606_v21  ;;  %v450_v24 = vpop.xlane.xlu0 %449  ;;  %v1009_v18 = vsel %vm279_vm0, %v266_v10, 0.0 }
  0xfd   :  { %v1620_v32 = vrot.slane %v453_v22, %v4167_v3  ;;  %v1615_v33 = vrot.slane %v450_v24, %v4179_v9  ;;  %v95_v24 = vld [vmem:[%s6361_s0 + $0x240] sm:$0xff] }
  0xfe   :  { %v496_v35 = vsel %vm279_vm0, %v95_v24, 0.0 }
  0xff   :  { %v1616_v37 = vsel %vm1364_vm8, %v1615_v33, %v1611_v23  ;;  %638 = vadd.xlane.f32.xlu1 %v637_v29  ;;  %587 = vadd.xlane.f32.xlu0 %v586_v30  ;;  %v112_v23 = vld [vmem:[%s6361_s0 + $0x2c8] sm:$0xff] }
 0x100   :  { %v459_v39 = vpop.xlane.xlu1 %458  ;;  %v1621_v40 = vsel %vm1371_vm9, %v1620_v32, %v1616_v37  ;;  %v456_v41 = vpop.xlane.xlu0 %455  ;;  %v547_v34 = vsel %vm279_vm0, %v112_v23, 0.0 }
 0x101   :  { %v1630_v46 = vrot.slane %v459_v39, %v4187_v19  ;;  %v1625_v48 = vrot.slane %v456_v41, %v4199_v25 }
 0x103   :  { %v1626_v51 = vsel %vm6366_vm10, %v1625_v48, %v1621_v40  ;;  %731 = vadd.xlane.f32.xlu1 %v730_v43  ;;  %680 = vadd.xlane.f32.xlu0 %v679_v45  ;;  %vm6467_vm10 = vcmask 851712   ;;  %v143_v40 = vld [vmem:[%s6361_s0 + $0x3c0] sm:$0xff] }
 0x104   :  { %v465_v55 = vpop.xlane.xlu1 %464  ;;  %v1631_v56 = vsel %vm1385_vm11, %v1630_v46, %v1626_v51  ;;  %v462_v58 = vpop.xlane.xlu0 %461  ;;  %v640_v48 = vsel %vm279_vm0, %v143_v40, 0.0 }
 0x105   :  { %v1640_v60 = vrot.slane %v465_v55, %v4207_v38  ;;  %v1635_v61 = vrot.slane %v462_v58, %v4213_v42  ;;  %v174_v55 = vld [vmem:[%s6361_s0 + $0x4b8] sm:$0xff] }
 0x107   :  { %v1636_v14 = vsel %vm6467_vm10, %v1635_v61, %v1631_v56  ;;  %824 = vadd.xlane.f32.xlu1 %v823_v59  ;;  %773 = vadd.xlane.f32.xlu0 %v772_v7  ;;  %v157_v56 = vld [vmem:[%s6361_s0 + $0x430] sm:$0xff]  ;;  %v733_v61 = vsel %vm279_vm0, %v174_v55, 0.0 }
 0x108   :  { %v471_v0 = vpop.xlane.xlu1 %470  ;;  %v1641_v1 = vsel %vm1399_vm13, %v1640_v60, %v1636_v14  ;;  %v468_v2 = vpop.xlane.xlu0 %467  ;;  %v682_v62 = vsel %vm279_vm0, %v157_v56, 0.0  ;;  %v205_v14 = vld [vmem:[%s6361_s0 + $0x5b0] sm:$0xff]  ;;  %v144_v56 = vld [vmem:[%s6361_s0 + $0x3c8] sm:$0xff] }
 0x109   :  { %v1650_v6 = vrot.slane %v471_v0, %v4229_v11  ;;  %v1645_v8 = vrot.slane %v468_v2, %v4232_v57  ;;  %v188_v0 = vld [vmem:[%s6361_s0 + $0x528] sm:$0xff] }
 0x10b   :  { %v1646_v13 = vsel %vm1406_vm14, %v1645_v8, %v1641_v1  ;;  %917 = vadd.xlane.f32.xlu1 %v916_v4  ;;  %866 = vadd.xlane.f32.xlu0 %v865_v5  ;;  %v826_v5 = vsel %vm279_vm0, %v205_v14, 0.0 }
 0x10c   :  { %v1651_v15 = vsel %vm1413_vm15, %v1650_v6, %v1646_v13  ;;  %v477_v16 = vpop.xlane.xlu1 %476  ;;  %v474_v17 = vpop.xlane.xlu0 %473  ;;  %v775_v6 = vsel %vm279_vm0, %v188_v0, 0.0  ;;  %v236_v13 = vld [vmem:[%s6361_s0 + $0x6a8] sm:$0xff] }
 0x10d   :  { %v1659_v21 = vrot.slane %v477_v16, %v4112_v28  ;;  %v1655_v22 = vrot.slane %v474_v17, %v4106_v26  ;;  %v4559_v29 = vsel %vm2600_vm12, %v1651_v15, %v4351_v54  ;;  %v126_v54 = vld [vmem:[%s6361_s0 + $0x338] sm:$0xff]  ;;  %v219_v15 = vld [vmem:[%s6361_s0 + $0x620] sm:$0xff] }
 0x10e   :  { %v589_v49 = vsel %vm279_vm0, %v126_v54, 0.0  ;;  %v113_v54 = vld [vmem:[%s6361_s0 + $0x2d0] sm:$0xff] }
 0x10f   :  { %v1660_v30 = vsel %vm1315_vm1, %v1659_v21, %v1655_v22  ;;  %1010 = vadd.xlane.f32.xlu1 %v1009_v18  ;;  %959 = vadd.xlane.f32.xlu0 %v958_v20  ;;  %v919_v20 = vsel %vm279_vm0, %v236_v13, 0.0  ;;  %v868_v21 = vsel %vm279_vm0, %v219_v15, 0.0 }
 0x110   :  { %v483_v32 = vpop.xlane.xlu1 %482  ;;  %v480_v33 = vpop.xlane.xlu0 %479 }
 0x111   :  { %v1669_v37 = vrot.slane %v483_v32, %v4109_v27  ;;  %v1664_v39 = vrot.slane %v480_v33, %v4119_v31  ;;  %v250_v32 = vld [vmem:[%s6361_s0 + $0x718] sm:$0xff] }
 0x113   :  { %v1665_v41 = vsel %vm1322_vm2, %v1664_v39, %v1660_v30  ;;  %548 = vadd.xlane.f32.xlu1 %v547_v34  ;;  %497 = vadd.xlane.f32.xlu0 %v496_v35  ;;  %v267_v30 = vld [vmem:[%s6361_s0 + $0x7a0] sm:$0xff]  ;;  %v961_v39 = vsel %vm279_vm0, %v250_v32, 0.0  ;;  %v237_v32 = vld [vmem:[%s6361_s0 + $0x6b0] sm:$0xff] }
 0x114   :  { %v489_v43 = vpop.xlane.xlu1 %488  ;;  %v1670_v45 = vsel %vm1329_vm3, %v1669_v37, %v1665_v41  ;;  %v486_v46 = vpop.xlane.xlu0 %485  ;;  %v1012_v37 = vsel %vm279_vm0, %v267_v30, 0.0  ;;  %v96_v41 = vld [vmem:[%s6361_s0 + $0x248] sm:$0xff] }
 0x115   :  { %v1679_v50 = vrot.slane %v489_v43, %v4124_v36  ;;  %v1674_v51 = vrot.slane %v486_v46, %v4138_v44 }
 0x117   :  { %v1675_v58 = vsel %vm1336_vm4, %v1674_v51, %v1670_v45  ;;  %641 = vadd.xlane.f32.xlu1 %v640_v48  ;;  %590 = vadd.xlane.f32.xlu0 %v589_v49  ;;  %v550_v48 = vsel %vm279_vm0, %v113_v54, 0.0  ;;  %v499_v49 = vsel %vm279_vm0, %v96_v41, 0.0 }
 0x118   :  { %v522_v59 = vpop.xlane.xlu1 %521  ;;  %v1680_v7 = vsel %vm1343_vm5, %v1679_v50, %v1675_v58  ;;  %v492_v60 = vpop.xlane.xlu0 %491  ;;  %v127_v58 = vld [vmem:[%s6361_s0 + $0x340] sm:$0xff] }
 0x119   :  { %v1684_v63 = vrot.slane %v492_v60, %v4149_v53  ;;  %v1734_v8 = vrot.slane %v522_v59, %v4106_v26 }
 0x11b   :  { %v4596_v1 = vsel %vm1350_vm6, %v1684_v63, %v1680_v7  ;;  %734 = vadd.xlane.f32.xlu1 %v733_v61  ;;  %683 = vadd.xlane.f32.xlu0 %v682_v62  ;;  %v643_v62 = vsel %vm279_vm0, %v144_v56, 0.0  ;;  %v592_v63 = vsel %vm279_vm0, %v127_v58, 0.0 }
 0x11c   :  { %v528_v2 = vpop.xlane.xlu1 %527  ;;  %v525_v4 = vpop.xlane.xlu0 %524 }
 0x11d   :  { %v1743_v10 = vrot.slane %v528_v2, %v4119_v31  ;;  %v1738_v12 = vrot.slane %v525_v4, %v4112_v28  ;;  %v175_v2 = vld [vmem:[%s6361_s0 + $0x4c0] sm:$0xff]  ;;  %v158_v4 = vld [vmem:[%s6361_s0 + $0x438] sm:$0xff] }
 0x11f   :  { %v1739_v16 = vsel %vm1315_vm1, %v1738_v12, %v1734_v8  ;;  %827 = vadd.xlane.f32.xlu1 %v826_v5  ;;  %776 = vadd.xlane.f32.xlu0 %v775_v6  ;;  %v685_v12 = vsel %vm279_vm0, %v158_v4, 0.0 }
 0x120   :  { %v621_v17 = vpop.xlane.xlu1 %620  ;;  %v618_v18 = vpop.xlane.xlu0 %617  ;;  %v1744_v22 = vsel %vm1322_vm2, %v1743_v10, %v1739_v16  ;;  %v736_v10 = vsel %vm279_vm0, %v175_v2, 0.0  ;;  %v206_v16 = vld [vmem:[%s6361_s0 + $0x5b8] sm:$0xff] }
 0x121   :  { %v1896_v23 = vrot.slane %v621_v17, %v4112_v28  ;;  %v1892_v24 = vrot.slane %v618_v18, %v4106_v26  ;;  %v189_v17 = vld [vmem:[%s6361_s0 + $0x530] sm:$0xff] }
 0x123   :  { %v1897_v33 = vsel %vm1315_vm1, %v1896_v23, %v1892_v24  ;;  %920 = vadd.xlane.f32.xlu1 %v919_v20  ;;  %869 = vadd.xlane.f32.xlu0 %v868_v21  ;;  %v829_v23 = vsel %vm279_vm0, %v206_v16, 0.0  ;;  %v778_v24 = vsel %vm279_vm0, %v189_v17, 0.0 }
 0x124   :  { %v570_v34 = vpop.xlane.xlu1 %569  ;;  %v531_v35 = vpop.xlane.xlu0 %530 }
 0x125   :  { %v1748_v40 = vrot.slane %v531_v35, %v4109_v27  ;;  %v1813_v50 = vrot.slane %v570_v34, %v4106_v26 }
 0x127   :  { %v1749_v43 = vsel %vm1329_vm3, %v1748_v40, %v1744_v22  ;;  %1013 = vadd.xlane.f32.xlu1 %v1012_v37  ;;  %962 = vadd.xlane.f32.xlu0 %v961_v39  ;;  %v922_v39 = vsel %vm279_vm0, %v237_v32, 0.0 }
 0x128   :  { %v624_v45 = vpop.xlane.xlu1 %623  ;;  %v573_v46 = vpop.xlane.xlu0 %572 }
 0x129   :  { %v1901_v51 = vrot.slane %v624_v45, %v4119_v31  ;;  %v1817_v55 = vrot.slane %v573_v46, %v4112_v28  ;;  %v268_v45 = vld [vmem:[%s6361_s0 + $0x7a8] sm:$0xff]  ;;  %v251_v46 = vld [vmem:[%s6361_s0 + $0x720] sm:$0xff] }
 0x12a   :  { %v964_v56 = vsel %vm279_vm0, %v251_v46, 0.0 }
 0x12b   :  { %v1902_v59 = vsel %vm1322_vm2, %v1901_v51, %v1897_v33  ;;  %v1818_v7 = vsel %vm1315_vm1, %v1817_v55, %v1813_v50  ;;  %551 = vadd.xlane.f32.xlu1 %v550_v48  ;;  %500 = vadd.xlane.f32.xlu0 %v499_v49  ;;  %v220_v33 = vld [vmem:[%s6361_s0 + $0x628] sm:$0xff]  ;;  %v1015_v55 = vsel %vm279_vm0, %v268_v45, 0.0 }
 0x12c   :  { %v717_v60 = vpop.xlane.xlu1 %716  ;;  %v714_v61 = vpop.xlane.xlu0 %713  ;;  %v871_v40 = vsel %vm279_vm0, %v220_v33, 0.0 }
 0x12d   :  { %v2054_v14 = vrot.slane %v717_v60, %v4112_v28  ;;  %v2050_v0 = vrot.slane %v714_v61, %v4106_v26  ;;  %v97_v60 = vld [vmem:[%s6361_s0 + $0x250] sm:$0xff] }
 0x12f   :  { %v2055_v5 = vsel %vm1315_vm1, %v2054_v14, %v2050_v0  ;;  %644 = vadd.xlane.f32.xlu1 %v643_v62  ;;  %593 = vadd.xlane.f32.xlu0 %v592_v63  ;;  %v502_v0 = vsel %vm279_vm0, %v97_v60, 0.0 }
 0x130   :  { %v576_v6 = vpop.xlane.xlu1 %575  ;;  %v534_v8 = vpop.xlane.xlu0 %533 }
 0x131   :  { %v1822_v13 = vrot.slane %v576_v6, %v4119_v31  ;;  %v1753_v15 = vrot.slane %v534_v8, %v4138_v44  ;;  %v128_v6 = vld [vmem:[%s6361_s0 + $0x348] sm:$0xff] }
 0x132   :  { %v595_v16 = vsel %vm279_vm0, %v128_v6, 0.0 }
 0x133   :  { %v1823_v18 = vsel %vm1322_vm2, %v1822_v13, %v1818_v7  ;;  %v1754_v20 = vsel %vm1336_vm4, %v1753_v15, %v1749_v43  ;;  %737 = vadd.xlane.f32.xlu1 %v736_v10  ;;  %686 = vadd.xlane.f32.xlu0 %v685_v12  ;;  %v114_v7 = vld [vmem:[%s6361_s0 + $0x2d8] sm:$0xff] }
 0x134   :  { %v666_v21 = vpop.xlane.xlu1 %665  ;;  %v627_v22 = vpop.xlane.xlu0 %626  ;;  %v553_v14 = vsel %vm279_vm0, %v114_v7, 0.0 }
 0x135   :  { %v1906_v30 = vrot.slane %v627_v22, %v4109_v27  ;;  %v1971_v54 = vrot.slane %v666_v21, %v4106_v26  ;;  %v176_v22 = vld [vmem:[%s6361_s0 + $0x4c8] sm:$0xff] }
 0x136   :  { %v739_v32 = vsel %vm279_vm0, %v176_v22, 0.0 }
 0x137   :  { %v1907_v34 = vsel %vm1329_vm3, %v1906_v30, %v1902_v59  ;;  %830 = vadd.xlane.f32.xlu1 %v829_v23  ;;  %779 = vadd.xlane.f32.xlu0 %v778_v24 }
 0x138   :  { %v720_v35 = vpop.xlane.xlu1 %719  ;;  %v669_v37 = vpop.xlane.xlu0 %668 }
 0x139   :  { %v2059_v41 = vrot.slane %v720_v35, %v4119_v31  ;;  %v1975_v43 = vrot.slane %v669_v37, %v4112_v28  ;;  %v207_v37 = vld [vmem:[%s6361_s0 + $0x5c0] sm:$0xff] }
 0x13b   :  { %v2060_v48 = vsel %vm1322_vm2, %v2059_v41, %v2055_v5  ;;  %v1976_v49 = vsel %vm1315_vm1, %v1975_v43, %v1971_v54  ;;  %923 = vadd.xlane.f32.xlu1 %v922_v39  ;;  %872 = vadd.xlane.f32.xlu0 %v871_v40  ;;  %v145_v5 = vld [vmem:[%s6361_s0 + $0x3d0] sm:$0xff]  ;;  %v190_v39 = vld [vmem:[%s6361_s0 + $0x538] sm:$0xff]  ;;  %v832_v41 = vsel %vm279_vm0, %v207_v37, 0.0 }
 0x13c   :  { %v813_v50 = vpop.xlane.xlu1 %812  ;;  %v810_v51 = vpop.xlane.xlu0 %809  ;;  %v646_v15 = vsel %vm279_vm0, %v145_v5, 0.0  ;;  %v781_v43 = vsel %vm279_vm0, %v190_v39, 0.0 }
 0x13d   :  { %v2212_v58 = vrot.slane %v813_v50, %v4112_v28  ;;  %v2208_v59 = vrot.slane %v810_v51, %v4106_v26  ;;  %v238_v50 = vld [vmem:[%s6361_s0 + $0x6b8] sm:$0xff] }
 0x13f   :  { %v2213_v61 = vsel %vm1315_vm1, %v2212_v58, %v2208_v59  ;;  %1016 = vadd.xlane.f32.xlu1 %v1015_v55  ;;  %965 = vadd.xlane.f32.xlu0 %v964_v56  ;;  %v925_v59 = vsel %vm279_vm0, %v238_v50, 0.0 }
 0x140   :  { %v579_v62 = vpop.xlane.xlu1 %578  ;;  %v537_v63 = vpop.xlane.xlu0 %536 }
 0x141   :  { %v1827_v2 = vrot.slane %v579_v62, %v4109_v27  ;;  %v1758_v4 = vrot.slane %v537_v63, %v4124_v36  ;;  %v269_v63 = vld [vmem:[%s6361_s0 + $0x7b0] sm:$0xff] }
 0x143   :  { %v1828_v8 = vsel %vm1329_vm3, %v1827_v2, %v1823_v18  ;;  %v1759_v10 = vsel %vm1343_vm5, %v1758_v4, %v1754_v20  ;;  %554 = vadd.xlane.f32.xlu1 %v553_v14  ;;  %503 = vadd.xlane.f32.xlu0 %v502_v0  ;;  %v159_v18 = vld [vmem:[%s6361_s0 + $0x440] sm:$0xff]  ;;  %v1018_v4 = vsel %vm279_vm0, %v269_v63, 0.0 }
 0x144   :  { %v672_v12 = vpop.xlane.xlu1 %671  ;;  %v630_v13 = vpop.xlane.xlu0 %629  ;;  %v688_v33 = vsel %vm279_vm0, %v159_v18, 0.0 }
 0x145   :  { %v1980_v17 = vrot.slane %v672_v12, %v4119_v31  ;;  %v1911_v21 = vrot.slane %v630_v13, %v4138_v44  ;;  %v115_v13 = vld [vmem:[%s6361_s0 + $0x2e0] sm:$0xff] }
 0x146   :  { %v556_v18 = vsel %vm279_vm0, %v115_v13, 0.0 }
 0x147   :  { %v1981_v20 = vsel %vm1322_vm2, %v1980_v17, %v1976_v49  ;;  %v1912_v23 = vsel %vm1336_vm4, %v1911_v21, %v1907_v34  ;;  %647 = vadd.xlane.f32.xlu1 %v646_v15  ;;  %596 = vadd.xlane.f32.xlu0 %v595_v16  ;;  %v98_v15 = vld [vmem:[%s6361_s0 + $0x258] sm:$0xff] }
 0x148   :  { %v762_v24 = vpop.xlane.xlu1 %761  ;;  %v723_v30 = vpop.xlane.xlu0 %722 }
 0x149   :  { %v2064_v35 = vrot.slane %v723_v30, %v4109_v27  ;;  %v2129_v45 = vrot.slane %v762_v24, %v4106_v26  ;;  %v505_v24 = vsel %vm279_vm0, %v98_v15, 0.0 }
 0x14b   :  { %v2065_v34 = vsel %vm1329_vm3, %v2064_v35, %v2060_v48  ;;  %740 = vadd.xlane.f32.xlu1 %v739_v32  ;;  %689 = vadd.xlane.f32.xlu0 %v688_v33  ;;  %v221_v48 = vld [vmem:[%s6361_s0 + $0x630] sm:$0xff] }
 0x14c   :  { %v816_v40 = vpop.xlane.xlu1 %815  ;;  %v765_v54 = vpop.xlane.xlu0 %764  ;;  %v874_v7 = vsel %vm279_vm0, %v221_v48, 0.0 }
 0x14d   :  { %v2217_v46 = vrot.slane %v816_v40, %v4119_v31  ;;  %v2133_v49 = vrot.slane %v765_v54, %v4112_v28 }
 0x14f   :  { %v2218_v51 = vsel %vm1322_vm2, %v2217_v46, %v2213_v61  ;;  %v2134_v55 = vsel %vm1315_vm1, %v2133_v49, %v2129_v45  ;;  %833 = vadd.xlane.f32.xlu1 %v832_v41  ;;  %782 = vadd.xlane.f32.xlu0 %v781_v43  ;;  %v252_v61 = vld [vmem:[%s6361_s0 + $0x728] sm:$0xff] }
 0x150   :  { %v909_v56 = vpop.xlane.xlu1 %908  ;;  %v906_v58 = vpop.xlane.xlu0 %905  ;;  %v967_v5 = vsel %vm279_vm0, %v252_v61, 0.0 }
 0x151   :  { %v2370_v60 = vrot.slane %v909_v56, %v4112_v28  ;;  %v2366_v62 = vrot.slane %v906_v58, %v4106_v26 }
 0x153   :  { %v2371_v14 = vsel %vm1315_vm1, %v2370_v60, %v2366_v62  ;;  %926 = vadd.xlane.f32.xlu1 %v925_v59  ;;  %875 = vadd.xlane.f32.xlu0 %v874_v7  ;;  %v208_v59 = vld [vmem:[%s6361_s0 + $0x5c8] sm:$0xff] }
 0x154   :  { %v582_v0 = vpop.xlane.xlu1 %581  ;;  %v540_v2 = vpop.xlane.xlu0 %539  ;;  %v835_v62 = vsel %vm279_vm0, %v208_v59, 0.0 }
 0x155   :  { %v1832_v6 = vrot.slane %v582_v0, %v4138_v44  ;;  %v1763_v12 = vrot.slane %v540_v2, %v4149_v53 }
 0x157   :  { %v4771_v16 = vsel %vm1336_vm4, %v1832_v6, %v1828_v8  ;;  %v4774_v17 = vsel %vm1350_vm6, %v1763_v12, %v1759_v10  ;;  %1019 = vadd.xlane.f32.xlu1 %v1018_v4  ;;  %968 = vadd.xlane.f32.xlu0 %v967_v5  ;;  %v146_v8 = vld [vmem:[%s6361_s0 + $0x3d8] sm:$0xff]  ;;  %v129_v10 = vld [vmem:[%s6361_s0 + $0x350] sm:$0xff]  ;;  %v239_v4 = vld [vmem:[%s6361_s0 + $0x6c0] sm:$0xff] }
 0x158   :  { %v675_v21 = vpop.xlane.xlu1 %674  ;;  %v633_v22 = vpop.xlane.xlu0 %632  ;;  %v649_v40 = vsel %vm279_vm0, %v146_v8, 0.0  ;;  %v598_v54 = vsel %vm279_vm0, %v129_v10, 0.0  ;;  %v928_v15 = vsel %vm279_vm0, %v239_v4, 0.0 }
 0x159   :  { %v1985_v30 = vrot.slane %v675_v21, %v4109_v27  ;;  %v1916_v32 = vrot.slane %v633_v22, %v4124_v36 }
 0x15b   :  { %v4787_v33 = vsel %vm1329_vm3, %v1985_v30, %v1981_v20  ;;  %v4790_v35 = vsel %vm1343_vm5, %v1916_v32, %v1912_v23  ;;  %557 = vadd.xlane.f32.xlu1 %v556_v18  ;;  %506 = vadd.xlane.f32.xlu0 %v505_v24  ;;  %v177_v20 = vld [vmem:[%s6361_s0 + $0x4d0] sm:$0xff]  ;;  %v160_v23 = vld [vmem:[%s6361_s0 + $0x448] sm:$0xff]  ;;  %v270_v24 = vld [vmem:[%s6361_s0 + $0x7b8] sm:$0xff] }
 0x15c   :  { %v768_v37 = vpop.xlane.xlu1 %767  ;;  %v726_v39 = vpop.xlane.xlu0 %725  ;;  %v742_v48 = vsel %vm279_vm0, %v177_v20, 0.0  ;;  %v691_v56 = vsel %vm279_vm0, %v160_v23, 0.0  ;;  %v1021_v10 = vsel %vm279_vm0, %v270_v24, 0.0 }
 0x15d   :  { %v2138_v41 = vrot.slane %v768_v37, %v4119_v31  ;;  %v2069_v43 = vrot.slane %v726_v39, %v4138_v44 }
 0x15f   :  { %v4803_v45 = vsel %vm1322_vm2, %v2138_v41, %v2134_v55  ;;  %v4806_v46 = vsel %vm1336_vm4, %v2069_v43, %v2065_v34  ;;  %650 = vadd.xlane.f32.xlu1 %v649_v40  ;;  %599 = vadd.xlane.f32.xlu0 %v598_v54  ;;  %v191_v55 = vld [vmem:[%s6361_s0 + $0x540] sm:$0xff]  ;;  %v116_v54 = vld [vmem:[%s6361_s0 + $0x2e8] sm:$0xff] }
 0x160   :  { %v858_v49 = vpop.xlane.xlu1 %857  ;;  %v819_v50 = vpop.xlane.xlu0 %818  ;;  %v784_v63 = vsel %vm279_vm0, %v191_v55, 0.0  ;;  %v99_v41 = vld [vmem:[%s6361_s0 + $0x260] sm:$0xff] }
 0x161   :  { %v2222_v58 = vrot.slane %v819_v50, %v4109_v27  ;;  %v2287_v61 = vrot.slane %v858_v49, %v4106_v26  ;;  %v559_v50 = vsel %vm279_vm0, %v116_v54, 0.0 }
 0x163   :  { %v4818_v34 = vsel %vm1329_vm3, %v2222_v58, %v2218_v51  ;;  %743 = vadd.xlane.f32.xlu1 %v742_v48  ;;  %692 = vadd.xlane.f32.xlu0 %v691_v56  ;;  %v222_v51 = vld [vmem:[%s6361_s0 + $0x638] sm:$0xff]  ;;  %v508_v48 = vsel %vm279_vm0, %v99_v41, 0.0 }
 0x164   :  { %v912_v7 = vpop.xlane.xlu1 %911  ;;  %v861_v60 = vpop.xlane.xlu0 %860  ;;  %v877_v21 = vsel %vm279_vm0, %v222_v51, 0.0 }
 0x165   :  { %v2375_v0 = vrot.slane %v912_v7, %v4119_v31  ;;  %v2291_v2 = vrot.slane %v861_v60, %v4112_v28 }
 0x167   :  { %v4832_v5 = vsel %vm1322_vm2, %v2375_v0, %v2371_v14  ;;  %v2292_v6 = vsel %vm1315_vm1, %v2291_v2, %v2287_v61  ;;  %836 = vadd.xlane.f32.xlu1 %v835_v62  ;;  %785 = vadd.xlane.f32.xlu0 %v784_v63  ;;  %v253_v14 = vld [vmem:[%s6361_s0 + $0x730] sm:$0xff] }
 0x168   :  { %v1005_v12 = vpop.xlane.xlu1 %1004  ;;  %v1002_v13 = vpop.xlane.xlu0 %1001  ;;  %v970_v37 = vsel %vm279_vm0, %v253_v14, 0.0 }
 0x169   :  { %v2528_v22 = vrot.slane %v1005_v12, %v4112_v28  ;;  %v2524_v18 = vrot.slane %v1002_v13, %v4106_v26 }
 0x16b   :  { %v4846_v30 = vsel %vm1315_vm1, %v2528_v22, %v2524_v18  ;;  %929 = vadd.xlane.f32.xlu1 %v928_v15  ;;  %878 = vadd.xlane.f32.xlu0 %v877_v21 }
 0x16c   :  { %v585_v32 = vpop.xlane.xlu1 %584  ;;  %v543_v8 = vpop.xlane.xlu0 %542 }
 0x16d   :  { %v1837_v39 = vrot.slane %v585_v32, %v4124_v36  ;;  %v1768_v40 = vrot.slane %v543_v8, %v4146_v52 }
 0x16f   :  { %v4860_v43 = vsel %vm1343_vm5, %v1837_v39, %v4771_v16  ;;  %v4864_v20 = vsel %vm1357_vm7, %v1768_v40, %v4774_v17  ;;  %1022 = vadd.xlane.f32.xlu1 %v1021_v10  ;;  %971 = vadd.xlane.f32.xlu0 %v970_v37  ;;  %v147_v16 = vld [vmem:[%s6361_s0 + $0x3e0] sm:$0xff]  ;;  %v130_v17 = vld [vmem:[%s6361_s0 + $0x358] sm:$0xff]  ;;  %v240_v39 = vld [vmem:[%s6361_s0 + $0x6c8] sm:$0xff] }
 0x170   :  { %v678_v23 = vpop.xlane.xlu1 %677  ;;  %v636_v49 = vpop.xlane.xlu0 %635  ;;  %v652_v62 = vsel %vm279_vm0, %v147_v16, 0.0  ;;  %v601_v63 = vsel %vm279_vm0, %v130_v17, 0.0  ;;  %v931_v41 = vsel %vm279_vm0, %v240_v39, 0.0 }
 0x171   :  { %v1990_v56 = vrot.slane %v678_v23, %v4138_v44  ;;  %v1921_v58 = vrot.slane %v636_v49, %v4149_v53 }
 0x173   :  { %v4878_v59 = vsel %vm1336_vm4, %v1990_v56, %v4787_v33  ;;  %v4882_v55 = vsel %vm1350_vm6, %v1921_v58, %v4790_v35  ;;  %560 = vadd.xlane.f32.xlu1 %v559_v50  ;;  %509 = vadd.xlane.f32.xlu0 %v508_v48  ;;  %v178_v33 = vld [vmem:[%s6361_s0 + $0x4d8] sm:$0xff]  ;;  %v161_v35 = vld [vmem:[%s6361_s0 + $0x450] sm:$0xff]  ;;  %v271_v56 = vld [vmem:[%s6361_s0 + $0x7c0] sm:$0xff] }
 0x174   :  { %v771_v7 = vpop.xlane.xlu1 %770  ;;  %v729_v60 = vpop.xlane.xlu0 %728  ;;  %v745_v13 = vsel %vm279_vm0, %v178_v33, 0.0  ;;  %v694_v15 = vsel %vm279_vm0, %v161_v35, 0.0 }
 0x175   :  { %v2143_v61 = vrot.slane %v771_v7, %v4109_v27  ;;  %v2074_v0 = vrot.slane %v729_v60, %v4124_v36 }
 0x177   :  { %v4896_v2 = vsel %vm1329_vm3, %v2143_v61, %v4803_v45  ;;  %v4900_v4 = vsel %vm1343_vm5, %v2074_v0, %v4806_v46  ;;  %653 = vadd.xlane.f32.xlu1 %v652_v62  ;;  %602 = vadd.xlane.f32.xlu0 %v601_v63  ;;  %v209_v45 = vld [vmem:[%s6361_s0 + $0x5d0] sm:$0xff]  ;;  %v192_v46 = vld [vmem:[%s6361_s0 + $0x548] sm:$0xff] }
 0x178   :  { %v864_v51 = vpop.xlane.xlu1 %863  ;;  %v822_v12 = vpop.xlane.xlu0 %821  ;;  %v838_v8 = vsel %vm279_vm0, %v209_v45, 0.0  ;;  %v787_v10 = vsel %vm279_vm0, %v192_v46, 0.0  ;;  %v100_v63 = vld [vmem:[%s6361_s0 + $0x268] sm:$0xff] }
 0x179   :  { %v2296_v21 = vrot.slane %v864_v51, %v4119_v31  ;;  %v2227_v22 = vrot.slane %v822_v12, %v4138_v44  ;;  %v511_v12 = vsel %vm279_vm0, %v100_v63, 0.0 }
 0x17b   :  { %v4913_v18 = vsel %vm1322_vm2, %v2296_v21, %v2292_v6  ;;  %v4917_v24 = vsel %vm1336_vm4, %v2227_v22, %v4818_v34  ;;  %746 = vadd.xlane.f32.xlu1 %v745_v13  ;;  %695 = vadd.xlane.f32.xlu0 %v694_v15  ;;  %v223_v6 = vld [vmem:[%s6361_s0 + $0x640] sm:$0xff] }
 0x17c   :  { %v954_v14 = vpop.xlane.xlu1 %953  ;;  %v915_v32 = vpop.xlane.xlu0 %914  ;;  %v880_v23 = vsel %vm279_vm0, %v223_v6, 0.0 }
 0x17d   :  { %v2380_v37 = vrot.slane %v915_v32, %v4109_v27  ;;  %v2445_v49 = vrot.slane %v954_v14, %v4106_v26 }
 0x17f   :  { %v4930_v34 = vsel %vm1329_vm3, %v2380_v37, %v4832_v5  ;;  %839 = vadd.xlane.f32.xlu1 %v838_v8  ;;  %788 = vadd.xlane.f32.xlu0 %v787_v10  ;;  %v254_v5 = vld [vmem:[%s6361_s0 + $0x738] sm:$0xff] }
 0x180   :  { %v1008_v40 = vpop.xlane.xlu1 %1007  ;;  %v957_v54 = vpop.xlane.xlu0 %956  ;;  %v973_v7 = vsel %vm279_vm0, %v254_v5, 0.0 }
 0x181   :  { %v2533_v50 = vrot.slane %v1008_v40, %v4119_v31  ;;  %v2449_v48 = vrot.slane %v957_v54, %v4112_v28  ;;  %v1024_v28 = vsel %vm279_vm0, %v271_v56, 0.0 }
 0x183   :  { %v4945_v58 = vsel %vm1322_vm2, %v2533_v50, %v4846_v30  ;;  %v4948_v16 = vsel %vm1315_vm1, %v2449_v48, %v2445_v49  ;;  %932 = vadd.xlane.f32.xlu1 %v931_v41  ;;  %881 = vadd.xlane.f32.xlu0 %v880_v23  ;;  %v117_v30 = vld [vmem:[%s6361_s0 + $0x2f0] sm:$0xff]  ;;  %vm6468_vm1 = vcmask 720512  }
 0x184   :  { %v546_v26 = vpop.xlane.xlu1 %545  ;;  %v495_v17 = vpop.xlane.xlu0 %494  ;;  %v562_v51 = vsel %vm279_vm0, %v117_v30, 0.0  ;;  %vm6503_vm12 = vmmov %vm6468_vm1 }
 0x185   :  { %v1773_v60 = vrot.slane %v546_v26, %v4179_v9  ;;  %v1689_v62 = vrot.slane %v495_v17, %v4146_v52 }
 0x187   :  { %v4962_v61 = vsel %vm1364_vm8, %v1773_v60, %v4864_v20  ;;  %v4966_v0 = vsel %vm1357_vm7, %v1689_v62, %v4596_v1  ;;  %1025 = vadd.xlane.f32.xlu1 %v1024_v28  ;;  %974 = vadd.xlane.f32.xlu0 %v973_v7  ;;  %v148_v20 = vld [vmem:[%s6361_s0 + $0x3e8] sm:$0xff]  ;;  %v131_v1 = vld [vmem:[%s6361_s0 + $0x360] sm:$0xff] }
 0x188   :  { %v639_v33 = vpop.xlane.xlu1 %638  ;;  %v588_v35 = vpop.xlane.xlu0 %587  ;;  %v655_v14 = vsel %vm279_vm0, %v148_v20, 0.0  ;;  %v604_v32 = vsel %vm279_vm0, %v131_v1, 0.0 }
 0x189   :  { %v1926_v13 = vrot.slane %v639_v33, %v4146_v52  ;;  %v1842_v15 = vrot.slane %v588_v35, %v4149_v53 }
 0x18b   :  { %v4980_v21 = vsel %vm1357_vm7, %v1926_v13, %v4882_v55  ;;  %v4984_v22 = vsel %vm1350_vm6, %v1842_v15, %v4860_v43  ;;  %563 = vadd.xlane.f32.xlu1 %v562_v51  ;;  %512 = vadd.xlane.f32.xlu0 %v511_v12  ;;  %v179_v55 = vld [vmem:[%s6361_s0 + $0x4e0] sm:$0xff]  ;;  %v162_v43 = vld [vmem:[%s6361_s0 + $0x458] sm:$0xff] }
 0x18c   :  { %v732_v45 = vpop.xlane.xlu1 %731  ;;  %v681_v46 = vpop.xlane.xlu0 %680  ;;  %v748_v54 = vsel %vm279_vm0, %v179_v55, 0.0  ;;  %v697_v41 = vsel %vm279_vm0, %v162_v43, 0.0 }
 0x18d   :  { %v2079_v8 = vrot.slane %v732_v45, %v4149_v53  ;;  %v1995_v10 = vrot.slane %v681_v46, %v4124_v36 }
 0x18f   :  { %v4998_v37 = vsel %vm1350_vm6, %v2079_v8, %v4900_v4  ;;  %v5002_v39 = vsel %vm1343_vm5, %v1995_v10, %v4878_v59  ;;  %656 = vadd.xlane.f32.xlu1 %v655_v14  ;;  %605 = vadd.xlane.f32.xlu0 %v604_v32  ;;  %v210_v4 = vld [vmem:[%s6361_s0 + $0x5d8] sm:$0xff]  ;;  %v193_v59 = vld [vmem:[%s6361_s0 + $0x550] sm:$0xff] }
 0x190   :  { %v825_v6 = vpop.xlane.xlu1 %824  ;;  %v774_v40 = vpop.xlane.xlu0 %773  ;;  %v841_v26 = vsel %vm279_vm0, %v210_v4, 0.0  ;;  %v790_v17 = vsel %vm279_vm0, %v193_v59, 0.0 }
 0x191   :  { %v2232_v23 = vrot.slane %v825_v6, %v4124_v36  ;;  %v2148_v49 = vrot.slane %v774_v40, %v4138_v44 }
 0x193   :  { %v5016_v50 = vsel %vm1343_vm5, %v2232_v23, %v4917_v24  ;;  %v5020_v48 = vsel %vm1336_vm4, %v2148_v49, %v4896_v2  ;;  %749 = vadd.xlane.f32.xlu1 %v748_v54  ;;  %698 = vadd.xlane.f32.xlu0 %v697_v41  ;;  %v241_v24 = vld [vmem:[%s6361_s0 + $0x6d0] sm:$0xff]  ;;  %v224_v2 = vld [vmem:[%s6361_s0 + $0x648] sm:$0xff] }
 0x194   :  { %v918_v56 = vpop.xlane.xlu1 %917  ;;  %v867_v5 = vpop.xlane.xlu0 %866  ;;  %v934_v33 = vsel %vm279_vm0, %v241_v24, 0.0  ;;  %v883_v35 = vsel %vm279_vm0, %v224_v2, 0.0 }
 0x195   :  { %v2385_v28 = vrot.slane %v918_v56, %v4138_v44  ;;  %v2301_v7 = vrot.slane %v867_v5, %v4109_v27 }
 0x197   :  { %v5034_v60 = vsel %vm1336_vm4, %v2385_v28, %v4930_v34  ;;  %v5038_v62 = vsel %vm1329_vm3, %v2301_v7, %v4913_v18  ;;  %842 = vadd.xlane.f32.xlu1 %v841_v26  ;;  %791 = vadd.xlane.f32.xlu0 %v790_v17  ;;  %v272_v34 = vld [vmem:[%s6361_s0 + $0x7c8] sm:$0xff]  ;;  %v255_v18 = vld [vmem:[%s6361_s0 + $0x740] sm:$0xff] }
 0x198   :  { %v1011_v30 = vpop.xlane.xlu1 %1010  ;;  %v960_v63 = vpop.xlane.xlu0 %959  ;;  %v1027_v1 = vsel %vm279_vm0, %v272_v34, 0.0  ;;  %v976_v45 = vsel %vm279_vm0, %v255_v18, 0.0 }
 0x199   :  { %v2538_v51 = vrot.slane %v1011_v30, %v4109_v27  ;;  %v2454_v12 = vrot.slane %v960_v63, %v4119_v31 }
 0x19b   :  { %v5052_v13 = vsel %vm1329_vm3, %v2538_v51, %v4945_v58  ;;  %v5056_v15 = vsel %vm1322_vm2, %v2454_v12, %v4948_v16  ;;  %935 = vadd.xlane.f32.xlu1 %v934_v33  ;;  %884 = vadd.xlane.f32.xlu0 %v883_v35  ;;  %v118_v58 = vld [vmem:[%s6361_s0 + $0x2f8] sm:$0xff]  ;;  %v101_v16 = vld [vmem:[%s6361_s0 + $0x270] sm:$0xff]  ;;  %vm6469_vm2 = vmmov %vm6468_vm1 }
 0x19c   :  { %v549_v20 = vpop.xlane.xlu1 %548  ;;  %v498_v31 = vpop.xlane.xlu0 %497  ;;  %v565_v43 = vsel %vm279_vm0, %v118_v58, 0.0  ;;  %v514_v6 = vsel %vm279_vm0, %v101_v16, 0.0 }
 0x19d   :  { %v1778_v46 = vrot.slane %v549_v20, %v4167_v3  ;;  %v1694_v14 = vrot.slane %v498_v31, %v4179_v9 }
 0x19f   :  { %v5070_v32 = vsel %vm1371_vm9, %v1778_v46, %v4962_v61  ;;  %v5074_v8 = vsel %vm1364_vm8, %v1694_v14, %v4966_v0  ;;  %1028 = vadd.xlane.f32.xlu1 %v1027_v1  ;;  %977 = vadd.xlane.f32.xlu0 %v976_v45  ;;  %v149_v61 = vld [vmem:[%s6361_s0 + $0x3f0] sm:$0xff]  ;;  %v132_v0 = vld [vmem:[%s6361_s0 + $0x368] sm:$0xff] }
 0x1a0   :  { %v642_v10 = vpop.xlane.xlu1 %641  ;;  %v591_v55 = vpop.xlane.xlu0 %590  ;;  %v658_v59 = vsel %vm279_vm0, %v149_v61, 0.0  ;;  %v607_v56 = vsel %vm279_vm0, %v132_v0, 0.0 }
 0x1a1   :  { %v1931_v40 = vrot.slane %v642_v10, %v4179_v9  ;;  %v1847_v54 = vrot.slane %v591_v55, %v4146_v52 }
 0x1a3   :  { %v5088_v41 = vsel %vm1364_vm8, %v1931_v40, %v4980_v21  ;;  %v5092_v23 = vsel %vm1357_vm7, %v1847_v54, %v4984_v22  ;;  %566 = vadd.xlane.f32.xlu1 %v565_v43  ;;  %515 = vadd.xlane.f32.xlu0 %v514_v6  ;;  %v180_v21 = vld [vmem:[%s6361_s0 + $0x4e8] sm:$0xff]  ;;  %v163_v22 = vld [vmem:[%s6361_s0 + $0x460] sm:$0xff] }
 0x1a4   :  { %v735_v49 = vpop.xlane.xlu1 %734  ;;  %v684_v4 = vpop.xlane.xlu0 %683  ;;  %v751_v2 = vsel %vm279_vm0, %v180_v21, 0.0  ;;  %v700_v30 = vsel %vm279_vm0, %v163_v22, 0.0 }
 0x1a5   :  { %v2084_v5 = vrot.slane %v735_v49, %v4146_v52  ;;  %v2000_v26 = vrot.slane %v684_v4, %v4149_v53 }
 0x1a7   :  { %v5106_v17 = vsel %vm1357_vm7, %v2084_v5, %v4998_v37  ;;  %v5110_v28 = vsel %vm1350_vm6, %v2000_v26, %v5002_v39  ;;  %659 = vadd.xlane.f32.xlu1 %v658_v59  ;;  %608 = vadd.xlane.f32.xlu0 %v607_v56  ;;  %v211_v37 = vld [vmem:[%s6361_s0 + $0x5e0] sm:$0xff]  ;;  %v194_v39 = vld [vmem:[%s6361_s0 + $0x558] sm:$0xff] }
 0x1a8   :  { %v828_v7 = vpop.xlane.xlu1 %827  ;;  %v777_v24 = vpop.xlane.xlu0 %776  ;;  %v844_v18 = vsel %vm279_vm0, %v211_v37, 0.0  ;;  %v793_v20 = vsel %vm279_vm0, %v194_v39, 0.0 }
 0x1a9   :  { %v2237_v63 = vrot.slane %v828_v7, %v4149_v53  ;;  %v2153_v33 = vrot.slane %v777_v24, %v4124_v36 }
 0x1ab   :  { %v5124_v35 = vsel %vm1350_vm6, %v2237_v63, %v5016_v50  ;;  %v5128_v51 = vsel %vm1343_vm5, %v2153_v33, %v5020_v48  ;;  %752 = vadd.xlane.f32.xlu1 %v751_v2  ;;  %701 = vadd.xlane.f32.xlu0 %v700_v30  ;;  %v242_v50 = vld [vmem:[%s6361_s0 + $0x6d8] sm:$0xff]  ;;  %v225_v48 = vld [vmem:[%s6361_s0 + $0x650] sm:$0xff] }
 0x1ac   :  { %v921_v12 = vpop.xlane.xlu1 %920  ;;  %v870_v34 = vpop.xlane.xlu0 %869  ;;  %v937_v16 = vsel %vm279_vm0, %v242_v50, 0.0  ;;  %v886_v10 = vsel %vm279_vm0, %v225_v48, 0.0 }
 0x1ad   :  { %v2390_v31 = vrot.slane %v921_v12, %v4124_v36  ;;  %v2306_v1 = vrot.slane %v870_v34, %v4138_v44 }
 0x1af   :  { %v5142_v45 = vsel %vm1343_vm5, %v2390_v31, %v5034_v60  ;;  %v5146_v46 = vsel %vm1336_vm4, %v2306_v1, %v5038_v62  ;;  %845 = vadd.xlane.f32.xlu1 %v844_v18  ;;  %794 = vadd.xlane.f32.xlu0 %v793_v20  ;;  %v273_v60 = vld [vmem:[%s6361_s0 + $0x7d0] sm:$0xff]  ;;  %v256_v62 = vld [vmem:[%s6361_s0 + $0x748] sm:$0xff] }
 0x1b0   :  { %v1014_v14 = vpop.xlane.xlu1 %1013  ;;  %v963_v58 = vpop.xlane.xlu0 %962  ;;  %v1030_v61 = vsel %vm279_vm0, %v273_v60, 0.0  ;;  %v979_v0 = vsel %vm279_vm0, %v256_v62, 0.0 }
 0x1b1   :  { %v2543_v55 = vrot.slane %v1014_v14, %v4138_v44  ;;  %v2459_v43 = vrot.slane %v963_v58, %v4109_v27 }
 0x1b3   :  { %v5160_v6 = vsel %vm1336_vm4, %v2543_v55, %v5052_v13  ;;  %v5164_v40 = vsel %vm1329_vm3, %v2459_v43, %v5056_v15  ;;  %938 = vadd.xlane.f32.xlu1 %v937_v16  ;;  %887 = vadd.xlane.f32.xlu0 %v886_v10  ;;  %v133_v13 = vld [vmem:[%s6361_s0 + $0x370] sm:$0xff]  ;;  %v102_v15 = vld [vmem:[%s6361_s0 + $0x278] sm:$0xff]  ;;  %vm6470_vm3 = vmmov %vm6468_vm1 }
 0x1b4   :  { %v552_v54 = vpop.xlane.xlu1 %551  ;;  %v501_v27 = vpop.xlane.xlu0 %500  ;;  %v610_v21 = vsel %vm279_vm0, %v133_v13, 0.0  ;;  %v517_v22 = vsel %vm279_vm0, %v102_v15, 0.0 }
 0x1b5   :  { %v1783_v49 = vrot.slane %v552_v54, %v4199_v25  ;;  %v1699_v4 = vrot.slane %v501_v27, %v4167_v3 }
 0x1b7   :  { %v5178_v59 = vsel %vm6468_vm1, %v1783_v49, %v5070_v32  ;;  %v5182_v56 = vsel %vm1371_vm9, %v1699_v4, %v5074_v8  ;;  %1031 = vadd.xlane.f32.xlu1 %v1030_v61  ;;  %980 = vadd.xlane.f32.xlu0 %v979_v0  ;;  %v164_v32 = vld [vmem:[%s6361_s0 + $0x468] sm:$0xff]  ;;  %v150_v8 = vld [vmem:[%s6361_s0 + $0x3f8] sm:$0xff] }
 0x1b8   :  { %v645_v5 = vpop.xlane.xlu1 %644  ;;  %v594_v26 = vpop.xlane.xlu0 %593  ;;  %v703_v37 = vsel %vm279_vm0, %v164_v32, 0.0  ;;  %v661_v39 = vsel %vm279_vm0, %v150_v8, 0.0 }
 0x1b9   :  { %v1936_v7 = vrot.slane %v645_v5, %v4167_v3  ;;  %v1852_v24 = vrot.slane %v594_v26, %v4179_v9 }
 0x1bb   :  { %v5196_v2 = vsel %vm1371_vm9, %v1936_v7, %v5088_v41  ;;  %v5200_v30 = vsel %vm1364_vm8, %v1852_v24, %v5092_v23  ;;  %611 = vadd.xlane.f32.xlu1 %v610_v21  ;;  %518 = vadd.xlane.f32.xlu0 %v517_v22  ;;  %v195_v41 = vld [vmem:[%s6361_s0 + $0x560] sm:$0xff]  ;;  %v181_v23 = vld [vmem:[%s6361_s0 + $0x4f0] sm:$0xff] }
 0x1bc   :  { %v738_v63 = vpop.xlane.xlu1 %737  ;;  %v687_v33 = vpop.xlane.xlu0 %686  ;;  %v796_v50 = vsel %vm279_vm0, %v195_v41, 0.0  ;;  %v754_v48 = vsel %vm279_vm0, %v181_v23, 0.0 }
 0x1bd   :  { %v2089_v12 = vrot.slane %v738_v63, %v4179_v9  ;;  %v2005_v34 = vrot.slane %v687_v33, %v4146_v52 }
 0x1bf   :  { %v5214_v18 = vsel %vm1364_vm8, %v2089_v12, %v5106_v17  ;;  %v5218_v20 = vsel %vm1357_vm7, %v2005_v34, %v5110_v28  ;;  %704 = vadd.xlane.f32.xlu1 %v703_v37  ;;  %662 = vadd.xlane.f32.xlu0 %v661_v39  ;;  %v226_v17 = vld [vmem:[%s6361_s0 + $0x658] sm:$0xff]  ;;  %v212_v28 = vld [vmem:[%s6361_s0 + $0x5e8] sm:$0xff] }
 0x1c0   :  { %v831_v31 = vpop.xlane.xlu1 %830  ;;  %v780_v1 = vpop.xlane.xlu0 %779  ;;  %v889_v60 = vsel %vm279_vm0, %v226_v17, 0.0  ;;  %v847_v62 = vsel %vm279_vm0, %v212_v28, 0.0 }
 0x1c1   :  { %v2242_v14 = vrot.slane %v831_v31, %v4146_v52  ;;  %v2158_v58 = vrot.slane %v780_v1, %v4149_v53 }
 0x1c3   :  { %v5232_v16 = vsel %vm1357_vm7, %v2242_v14, %v5124_v35  ;;  %v5236_v10 = vsel %vm1350_vm6, %v2158_v58, %v5128_v51  ;;  %797 = vadd.xlane.f32.xlu1 %v796_v50  ;;  %755 = vadd.xlane.f32.xlu0 %v754_v48  ;;  %v257_v35 = vld [vmem:[%s6361_s0 + $0x750] sm:$0xff]  ;;  %v243_v51 = vld [vmem:[%s6361_s0 + $0x6e0] sm:$0xff] }
 0x1c4   :  { %v924_v55 = vpop.xlane.xlu1 %923  ;;  %v873_v43 = vpop.xlane.xlu0 %872  ;;  %v982_v13 = vsel %vm279_vm0, %v257_v35, 0.0  ;;  %v940_v15 = vsel %vm279_vm0, %v243_v51, 0.0 }
 0x1c5   :  { %v2395_v54 = vrot.slane %v924_v55, %v4149_v53  ;;  %v2311_v27 = vrot.slane %v873_v43, %v4124_v36 }
 0x1c7   :  { %v5250_v61 = vsel %vm1350_vm6, %v2395_v54, %v5142_v45  ;;  %v5254_v0 = vsel %vm1343_vm5, %v2311_v27, %v5146_v46  ;;  %890 = vadd.xlane.f32.xlu1 %v889_v60  ;;  %848 = vadd.xlane.f32.xlu0 %v847_v62  ;;  %v134_v45 = vld [vmem:[%s6361_s0 + $0x378] sm:$0xff] }
 0x1c8   :  { %v1017_v49 = vpop.xlane.xlu1 %1016  ;;  %v966_v4 = vpop.xlane.xlu0 %965  ;;  %v274_v46 = vld [vmem:[%s6361_s0 + $0x7d8] sm:$0xff]  ;;  %v613_v24 = vsel %vm279_vm0, %v134_v45, 0.0 }
 0x1c9   :  { %v2548_v5 = vrot.slane %v1017_v49, %v4124_v36  ;;  %v2464_v26 = vrot.slane %v966_v4, %v4138_v44  ;;  %v1033_v32 = vsel %vm279_vm0, %v274_v46, 0.0 }
 0x1cb   :  { %v5268_v21 = vsel %vm1343_vm5, %v2548_v5, %v5160_v6  ;;  %v5272_v22 = vsel %vm1336_vm4, %v2464_v26, %v5164_v40  ;;  %983 = vadd.xlane.f32.xlu1 %v982_v13  ;;  %941 = vadd.xlane.f32.xlu0 %v940_v15  ;;  %v182_v6 = vld [vmem:[%s6361_s0 + $0x4f8] sm:$0xff]  ;;  %v165_v40 = vld [vmem:[%s6361_s0 + $0x470] sm:$0xff]  ;;  %vm6471_vm4 = vmmov %vm6467_vm10 }
 0x1cc   :  { %v555_v7 = vpop.xlane.xlu1 %554  ;;  %v504_v44 = vpop.xlane.xlu0 %503  ;;  %v757_v34 = vsel %vm279_vm0, %v182_v6, 0.0  ;;  %v706_v41 = vsel %vm279_vm0, %v165_v40, 0.0  ;;  %vm6476_vm10 = vmmov %vm6468_vm1 }
 0x1cd   :  { %v1788_v8 = vrot.slane %v555_v7, %v4187_v19  ;;  %v1704_v63 = vrot.slane %v504_v44, %v4199_v25 }
 0x1cf   :  { %v5286_v33 = vsel %vm1385_vm11, %v1788_v8, %v5178_v59  ;;  %v5290_v37 = vsel %vm6469_vm2, %v1704_v63, %v5182_v56  ;;  %614 = vadd.xlane.f32.xlu1 %v613_v24  ;;  %1034 = vadd.xlane.f32.xlu0 %v1033_v32  ;;  %v213_v59 = vld [vmem:[%s6361_s0 + $0x5f0] sm:$0xff]  ;;  %v196_v56 = vld [vmem:[%s6361_s0 + $0x568] sm:$0xff] }
 0x1d0   :  { %v648_v39 = vpop.xlane.xlu1 %647  ;;  %v597_v12 = vpop.xlane.xlu0 %596  ;;  %v850_v58 = vsel %vm279_vm0, %v213_v59, 0.0  ;;  %v799_v17 = vsel %vm279_vm0, %v196_v56, 0.0 }
 0x1d1   :  { %v1941_v23 = vrot.slane %v648_v39, %v4199_v25  ;;  %v1857_v31 = vrot.slane %v597_v12, %v4167_v3  ;;  %v259_v12 = vld [vmem:[%s6361_s0 + $0x760] sm:$0xff] }
 0x1d3   :  { %v5304_v1 = vsel %vm6470_vm3, %v1941_v23, %v5196_v2  ;;  %v5308_v50 = vsel %vm1371_vm9, %v1857_v31, %v5200_v30  ;;  %758 = vadd.xlane.f32.xlu1 %v757_v34  ;;  %707 = vadd.xlane.f32.xlu0 %v706_v41  ;;  %v244_v2 = vld [vmem:[%s6361_s0 + $0x6e8] sm:$0xff]  ;;  %v227_v30 = vld [vmem:[%s6361_s0 + $0x660] sm:$0xff]  ;;  %v198_v23 = vld [vmem:[%s6361_s0 + $0x578] sm:$0xff] }
 0x1d4   :  { %v741_v48 = vpop.xlane.xlu1 %740  ;;  %v690_v14 = vpop.xlane.xlu0 %689  ;;  %v943_v27 = vsel %vm279_vm0, %v244_v2, 0.0  ;;  %v892_v35 = vsel %vm279_vm0, %v227_v30, 0.0  ;;  %v276_v31 = vld [vmem:[%s6361_s0 + $0x7e8] sm:$0xff]  ;;  %v988_v2 = vsel %vm279_vm0, %v259_v12, 0.0  ;;  %vm6532_vm3 = vmmov %vm6468_vm1 }
 0x1d5   :  { %v2094_v28 = vrot.slane %v741_v48, %v4167_v3  ;;  %v2010_v55 = vrot.slane %v690_v14, %v4179_v9  ;;  %v246_v48 = vld [vmem:[%s6361_s0 + $0x6f8] sm:$0xff]  ;;  %v2663_v12 = vld [vmem:[%s6362_s1 + $0xe8] sm:$0xff] }
 0x1d7   :  { %v5322_v43 = vsel %vm1371_vm9, %v2094_v28, %v5214_v18  ;;  %v5326_v60 = vsel %vm1364_vm8, %v2010_v55, %v5218_v20  ;;  %851 = vadd.xlane.f32.xlu1 %v850_v58  ;;  %800 = vadd.xlane.f32.xlu0 %v799_v17  ;;  %v275_v18 = vld [vmem:[%s6361_s0 + $0x7e0] sm:$0xff]  ;;  %v258_v20 = vld [vmem:[%s6361_s0 + $0x758] sm:$0xff]  ;;  %v229_v17 = vld [vmem:[%s6361_s0 + $0x670] sm:$0xff] }
 0x1d8   :  { %v834_v62 = vpop.xlane.xlu1 %833  ;;  %v783_v54 = vpop.xlane.xlu0 %782  ;;  %v1036_v26 = vsel %vm279_vm0, %v275_v18, 0.0  ;;  %v985_v45 = vsel %vm279_vm0, %v258_v20, 0.0  ;;  %v277_v28 = vld [vmem:[%s6361_s0 + $0x7f0] sm:$0xff]  ;;  %v260_v55 = vld [vmem:[%s6361_s0 + $0x768] sm:$0xff]  ;;  %v230_v20 = vld [vmem:[%s6361_s0 + $0x678] sm:$0xff] }
 0x1d9   :  { %v2247_v51 = vrot.slane %v834_v62, %v4179_v9  ;;  %v2163_v49 = vrot.slane %v783_v54, %v4146_v52  ;;  %v805_v62 = vsel %vm279_vm0, %v198_v23, 0.0  ;;  %v1039_v54 = vsel %vm279_vm0, %v276_v31, 0.0  ;;  %v261_v18 = vld [vmem:[%s6361_s0 + $0x770] sm:$0xff] }
 0x1db   :  { %v5340_v4 = vsel %vm1364_vm8, %v2247_v51, %v5232_v16  ;;  %v5344_v13 = vsel %vm1357_vm7, %v2163_v49, %v5236_v10  ;;  %944 = vadd.xlane.f32.xlu1 %v943_v27  ;;  %893 = vadd.xlane.f32.xlu0 %v892_v35  ;;  %v197_v16 = vld [vmem:[%s6361_s0 + $0x570] sm:$0xff]  ;;  %v166_v10 = vld [vmem:[%s6361_s0 + $0x478] sm:$0xff]  ;;  %v5426_v49 = vsel %vm279_vm0, %v246_v48, 0.0 }
 0x1dc   :  { %v927_v15 = vpop.xlane.xlu1 %926  ;;  %v876_v5 = vpop.xlane.xlu0 %875  ;;  %v802_v63 = vsel %vm279_vm0, %v197_v16, 0.0  ;;  %v709_v6 = vsel %vm279_vm0, %v166_v10, 0.0  ;;  %v2665_v27 = vld [vmem:[%s6362_s1 + $0xf8] sm:$0xff]  ;;  %v2664_v16 = vld [vmem:[%s6362_s1 + $0xf0] sm:$0xff] }
 0x1dd   :  { %v2400_v46 = vrot.slane %v927_v15, %v4146_v52  ;;  %v2316_v7 = vrot.slane %v876_v5, %v4149_v53  ;;  %v5434_v15 = vand.u32 4294901760, %v2665_v27 }
 0x1df   :  { %v5358_v44 = vsel %vm1357_vm7, %v2400_v46, %v5250_v61  ;;  %v5362_v24 = vsel %vm1350_vm6, %v2316_v7, %v5254_v0  ;;  %1037 = vadd.xlane.f32.xlu1 %v1036_v26  ;;  %986 = vadd.xlane.f32.xlu0 %v985_v45  ;;  %v228_v61 = vld [vmem:[%s6361_s0 + $0x668] sm:$0xff]  ;;  %v214_v0 = vld [vmem:[%s6361_s0 + $0x5f8] sm:$0xff]  ;;  %6472 = vst [vmem:[#allocation6_spill] sm:$0xff] %v5434_v15  ;;  %v5440_v26 = vsel %vm279_vm0, %v229_v17, 0.0  ;;  %v5443_v45 = vsel %vm279_vm0, %v277_v28, 0.0 }
 0x1e0   :  { %v1020_v32 = vpop.xlane.xlu1 %1019  ;;  %v969_v8 = vpop.xlane.xlu0 %968  ;;  %v895_v56 = vsel %vm279_vm0, %v228_v61, 0.0  ;;  %v5446_v46 = vsel %vm279_vm0, %v260_v55, 0.0  ;;  %3551 = vmatprep.subr.mxu0 %v5434_v15 }
 0x1e1   :  { %v2553_v40 = vrot.slane %v1020_v32, %v4149_v53  ;;  %v2469_v39 = vrot.slane %v969_v8, %v4124_v36  ;;  %v245_v36 = vld [vmem:[%s6361_s0 + $0x6f0] sm:$0xff]  ;;  %v5456_v8 = vsub.f32 %v2665_v27, %v5434_v15 }
 0x1e2   :  { %v946_v30 = vsel %vm279_vm0, %v245_v36, 0.0 }
 0x1e3   :  { %v5379_v34 = vsel %vm1350_vm6, %v2553_v40, %v5268_v21  ;;  %v5383_v41 = vsel %vm1343_vm5, %v2469_v39, %v5272_v22  ;;  %803 = vadd.xlane.f32.xlu1 %v802_v63  ;;  %710 = vadd.xlane.f32.xlu0 %v709_v6  ;;  %v853_v22 = vsel %vm279_vm0, %v214_v0, 0.0  ;;  %6473 = vst [vmem:[#allocation7_spill] sm:$0xff] %v5456_v8  ;;  %v5458_v63 = vand.u32 4294901760, %v2664_v16  ;;  %v2648_v6 = vld [vmem:[%s6362_s1 + $0x70] sm:$0xff]  ;;  %vm6474_vm5 = vmmov %vm6468_vm1 }
 0x1e4   :  { %v558_v21 = vpop.xlane.xlu1 %557  ;;  %v507_v59 = vpop.xlane.xlu0 %506  ;;  %v5465_v40 = vsel %vm279_vm0, %v261_v18, 0.0  ;;  %v5468_v39 = vsel %vm279_vm0, %v230_v20, 0.0  ;;  %v5473_v0 = vand.u32 4294901760, %v2648_v6  ;;  %v6372_v31 = vand.u32 4294901760, %v5456_v8  ;;  %v2662_v20 = vld [vmem:[%s6362_s1 + $0xe0] sm:$0xff] }
 0x1e5   :  { %v1793_v14 = vrot.slane %v558_v21, %v4213_v42  ;;  %v1709_v58 = vrot.slane %v507_v59, %v4187_v19  ;;  %v5489_v21 = vsub.f32 %v2664_v16, %v5458_v63  ;;  %v2647_v59 = vld [vmem:[%s6362_s1 + $0x68] sm:$0xff] }
 0x1e6   :  { %v5496_v48 = vsub.f32 %v2648_v6, %v5473_v0  ;;  %v2901_v28 = vsub.f32 %v5456_v8, %v6372_v31 }
 0x1e7   :  { %v5419_v35 = vsel %vm6471_vm4, %v1793_v14, %v5286_v33  ;;  %v5423_v51 = vsel %vm1385_vm11, %v1709_v58, %v5290_v37  ;;  %896 = vadd.xlane.f32.xlu1 %v895_v56  ;;  %854 = vadd.xlane.f32.xlu0 %v853_v22  ;;  %v2649_v33 = vld [vmem:[%s6362_s1 + $0x78] sm:$0xff]  ;;  %v5500_v14 = vand.u32 4294901760, %v2647_v59  ;;  %v6370_v55 = vand.u32 4294901760, %v5489_v21 }
 0x1e8   :  { %v651_v37 = vpop.xlane.xlu1 %650  ;;  %v600_v5 = vpop.xlane.xlu0 %599  ;;  %v5448_v7 = vand.u32 4294901760, %v2649_v33 }
 0x1e9   :  { %v1946_v10 = vrot.slane %v651_v37, %v4187_v19  ;;  %v1862_v32 = vrot.slane %v600_v5, %v4199_v25  ;;  %v5518_v18 = vsub.f32 %v2647_v59, %v5500_v14  ;;  %v2902_v5 = vand.u32 4294901760, %v2901_v28 }
 0x1ea   :  { %v5471_v61 = vsub.f32 %v2649_v33, %v5448_v7  ;;  %3552 = vmatpush3.msra.mxu0 %v5448_v7  ;;  %v2908_v16 = vsub.f32 %v5489_v21, %v6370_v55 }
 0x1eb   :  { %v5481_v36 = vsel %vm1385_vm11, %v1946_v10, %v5304_v1  ;;  %v5485_v23 = vsel %vm6474_vm5, %v1862_v32, %v5308_v50  ;;  %989 = vadd.xlane.f32.xlu1 %v988_v2  ;;  %947 = vadd.xlane.f32.xlu0 %v946_v30  ;;  %v5498_v50 = vand.u32 4294901760, %v2663_v12  ;;  %v6367_v30 = vand.u32 4294901760, %v5496_v48  ;;  %6475 = vst [vmem:[#allocation8_spill] sm:$0xff] %v5518_v18  ;;  %v2646_v10 = vld [vmem:[%s6362_s1 + $0x60] sm:$0xff] }
 0x1ec   :  { %v744_v56 = vpop.xlane.xlu1 %743  ;;  %v693_v22 = vpop.xlane.xlu0 %692  ;;  %v6371_v1 = vand.u32 4294901760, %v5471_v61  ;;  %3553 = vmatprep.subr.mxu0 %v5458_v63  ;;  %3586 = vmatprep.subr.mxu1 %v2902_v5  ;;  %v2645_v5 = vld [vmem:[%s6362_s1 + $0x58] sm:$0xff]  ;;  %vm2602_vm5 = vcmask 1042434  }
 0x1ed   :  { %v2099_v58 = vrot.slane %v744_v56, %v4199_v25  ;;  %v2015_v17 = vrot.slane %v693_v22, %v4167_v3  ;;  %3554 = vmatpush3.msra.mxu0 %v5473_v0  ;;  %v5515_v27 = vsub.f32 %v2663_v12, %v5498_v50  ;;  %v2909_v22 = vand.u32 4294901760, %v2908_v16 }
 0x1ee   :  { %v2789_v2 = vsub.f32 %v5471_v61, %v6371_v1  ;;  %3555 = vmatprep.subr.mxu0 %v5498_v50 }
 0x1ef   :  { %v5526_v33 = vsel %vm6476_vm10, %v2099_v58, %v5322_v43  ;;  %v5530_v37 = vsel %vm1371_vm9, %v2015_v17, %v5326_v60  ;;  %806 = vadd.xlane.f32.xlu1 %v805_v62  ;;  %1040 = vadd.xlane.f32.xlu0 %v1039_v54  ;;  %v262_v43 = vld [vmem:[%s6361_s0 + $0x778] sm:$0xff]  ;;  %v2796_v60 = vsub.f32 %v5496_v48, %v6367_v30  ;;  %v6369_v62 = vand.u32 4294901760, %v5515_v27 }
 0x1f0   :  { %v837_v32 = vpop.xlane.xlu1 %836  ;;  %v786_v6 = vpop.xlane.xlu0 %785  ;;  %v2790_v12 = vand.u32 4294901760, %v2789_v2  ;;  %v6368_v54 = vand.u32 4294901760, %v5518_v18  ;;  %3556 = vmatpush3.msra.mxu0 %v5500_v14  ;;  %v5549_v58 = vand.u32 4294901760, %v2662_v20  ;;  %v2661_v17 = vld [vmem:[%s6362_s1 + $0xd8] sm:$0xff]  ;;  %v5560_v30 = vand.u32 4294901760, %v2646_v10 }
 0x1f1   :  { %v2252_v59 = vrot.slane %v837_v32, %v4167_v3  ;;  %v2168_v56 = vrot.slane %v786_v6, %v4179_v9  ;;  %v2797_v28 = vand.u32 4294901760, %v2796_v60  ;;  %v2915_v2 = vsub.f32 %v5515_v27, %v6369_v62 }
 0x1f2   :  { %3587 = vmatpush3.msra.mxu1 %v2790_v12  ;;  %v2803_v32 = vsub.f32 %v5518_v18, %v6368_v54  ;;  %v5576_v12 = vsel %vm279_vm0, %v262_v43, 0.0  ;;  %v5579_v60 = vsub.f32 %v2662_v20, %v5549_v58  ;;  %v2660_v54 = vld [vmem:[%s6362_s1 + $0xd0] sm:$0xff]  ;;  %v5590_v43 = vand.u32 4294901760, %v2661_v17  ;;  %v2659_v20 = vld [vmem:[%s6362_s1 + $0xc8] sm:$0xff]  ;;  %3557 = vmatprep.subr.mxu0 %v5549_v58 }
 0x1f3   :  { %v5567_v16 = vsel %vm1371_vm9, %v2252_v59, %v5340_v4  ;;  %v5571_v6 = vsel %vm1364_vm8, %v2168_v56, %v5344_v13  ;;  %950 = vadd.xlane.f32.xlu1 %v5426_v49  ;;  %899 = vadd.xlane.f32.xlu0 %v5440_v26  ;;  %v2644_v4 = vld [vmem:[%s6362_s1 + $0x50] sm:$0xff]  ;;  %v2916_v49 = vand.u32 4294901760, %v2915_v2  ;;  %v5588_v26 = vsub.f32 %v2646_v10, %v5560_v30 }
 0x1f4   :  { %6477 = vst [vmem:[#allocation9_spill] sm:$0xff] %v5579_v60  ;;  %v930_v13 = vpop.xlane.xlu1 %929  ;;  %v879_v59 = vpop.xlane.xlu0 %878  ;;  %3588 = vmatprep.subr.mxu1 %v2909_v22  ;;  %v2804_v56 = vand.u32 4294901760, %v2803_v32  ;;  %v6373_v22 = vand.u32 4294901760, %v5579_v60  ;;  %v5599_v2 = vand.u32 4294901760, %v2645_v5  ;;  %3558 = vmatpush3.msra.mxu0 %v5560_v30  ;;  %v5604_v32 = vsub.f32 %v2661_v17, %v5590_v43 }
 0x1f5   :  { %6478 = vst [vmem:[#allocation10_spill] sm:$0xff] %v5588_v26  ;;  %v2405_v62 = vrot.slane %v930_v13, %v4179_v9  ;;  %v2321_v55 = vrot.slane %v879_v59, %v4146_v52  ;;  %3589 = vmatpush3.msra.mxu1 %v2797_v28  ;;  %v5606_v1 = vand.u32 4294901760, %v2660_v54  ;;  %v5608_v31 = vand.u32 4294901760, %v2644_v4  ;;  %3559 = vmatprep.subr.mxu0 %v5590_v43 }
 0x1f6   :  { %3590 = vmatprep.subr.mxu1 %v2916_v49  ;;  %6479 = vst [vmem:[#allocation11_spill] sm:$0xff] %v5604_v32  ;;  %v2922_v17 = vsub.f32 %v5579_v60, %v6373_v22  ;;  %v5624_v59 = vand.u32 4294901760, %v2659_v20  ;;  %3560 = vmatpush3.msra.mxu0 %v5599_v2 }
 0x1f7   :  { %v5613_v28 = vsel %vm1364_vm8, %v2405_v62, %v5358_v44  ;;  %v5617_v13 = vsel %vm1357_vm7, %v2321_v55, %v5362_v24  ;;  %1043 = vadd.xlane.f32.xlu1 %v5443_v45  ;;  %992 = vadd.xlane.f32.xlu0 %v5446_v46  ;;  %v6480_v44 = vand.u32 4294901760, %v5588_v26  ;;  %v6378_v24 = vand.u32 4294901760, %v5604_v32 }
 0x1f8   :  { %v1023_v49 = vpop.xlane.xlu1 %1022  ;;  %v972_v10 = vpop.xlane.xlu0 %971  ;;  %3591 = vmatpush3.msra.mxu1 %v2804_v56  ;;  %v5631_v55 = vsub.f32 %v2645_v5, %v5599_v2  ;;  %v5634_v45 = vsub.f32 %v2660_v54, %v5606_v1  ;;  %v278_v56 = vld [vmem:[%s6361_s0 + $0x7f8] sm:$0xff]  ;;  %v2923_v60 = vand.u32 4294901760, %v2922_v17  ;;  %3561 = vmatprep.subr.mxu0 %v5606_v1  ;;  %v5664_v17 = vsub.f32 %v2659_v20, %v5624_v59 }
 0x1f9   :  { %v2810_v62 = vsub.f32 %v5588_v26, %v6480_v44  ;;  %v2558_v46 = vrot.slane %v1023_v49, %v4146_v52  ;;  %v2474_v22 = vrot.slane %v972_v10, %v4149_v53  ;;  %v5643_v44 = vsub.f32 %v2644_v4, %v5608_v31  ;;  %3562 = vmatpush3.msra.mxu0 %v5608_v31 }
 0x1fa   :  { %6481 = vst [vmem:[#allocation12_spill] sm:$0xff] %v5631_v55  ;;  %6482 = vst [vmem:[#allocation13_spill] sm:$0xff] %v5634_v45  ;;  %v2929_v54 = vsub.f32 %v5604_v32, %v6378_v24  ;;  %v6382_v26 = vand.u32 4294901760, %v5631_v55  ;;  %v6381_v49 = vand.u32 4294901760, %v5634_v45  ;;  %3592 = vmatprep.subr.mxu1 %v2923_v60  ;;  %3563 = vmatprep.subr.mxu0 %v5624_v59 }
 0x1fb   :  { %6483 = vst [vmem:[#allocation14_spill] sm:$0xff] %v5643_v44  ;;  %v2811_v5 = vand.u32 4294901760, %v2810_v62  ;;  %v5654_v53 = vsel %vm1357_vm7, %v2558_v46, %v5379_v34  ;;  %v5658_v4 = vsel %vm1350_vm6, %v2474_v22, %v5383_v41  ;;  %995 = vadd.xlane.f32.xlu1 %v5465_v40  ;;  %902 = vadd.xlane.f32.xlu0 %v5468_v39  ;;  %6484 = vst [vmem:[#allocation15_spill] sm:$0xff] %v5664_v17  ;;  %v2643_v62 = vld [vmem:[%s6362_s1 + $0x48] sm:$0xff]  ;;  %v2658_v34 = vld [vmem:[%s6362_s1 + $0xc0] sm:$0xff] }
 0x1fc   :  { %v561_v46 = vpop.xlane.xlu1 %560  ;;  %v510_v41 = vpop.xlane.xlu0 %509  ;;  %v1045_v22 = vsel %vm279_vm0, %v278_v56, 0.0  ;;  %v2930_v40 = vand.u32 4294901760, %v2929_v54  ;;  %v2817_v39 = vsub.f32 %v5631_v55, %v6382_v26  ;;  %v2936_v20 = vsub.f32 %v5634_v45, %v6381_v49  ;;  %v2642_v54 = vld [vmem:[%s6362_s1 + $0x40] sm:$0xff]  ;;  %v2657_v49 = vld [vmem:[%s6362_s1 + $0xb8] sm:$0xff]  ;;  %vm6488_vm0 = vmmov %vm6471_vm4 }
 0x1fd   :  { %v1798_v24 = vrot.slane %v561_v46, %v4207_v38  ;;  %v1714_v10 = vrot.slane %v510_v41, %v4213_v42  ;;  %3593 = vmatpush3.msra.mxu1 %v2811_v5  ;;  %v6485_v32 = vand.u32 4294901760, %v5643_v44  ;;  %v5692_v45 = vand.u32 4294901760, %v2643_v62  ;;  %vm6497_vm6 = vmmov %vm6488_vm0 }
 0x1fe   :  { %3594 = vmatprep.subr.mxu1 %v2930_v40  ;;  %v2818_v26 = vand.u32 4294901760, %v2817_v39  ;;  %v2937_v46 = vand.u32 4294901760, %v2936_v20  ;;  %v5694_v5 = vand.u32 4294901760, %v2658_v34  ;;  %v6489_v39 = vand.u32 4294901760, %v5664_v17  ;;  %vm6531_vm2 = vmmov %vm6488_vm0 }
 0x1ff   :  { %v2824_v60 = vsub.f32 %v5643_v44, %v6485_v32  ;;  %6486 = vst [vmem:[#allocation16_spill] sm:$0xff] %v5692_v45  ;;  %v2641_v32 = vld [vmem:[%s6362_s1 + $0x38] sm:$0xff]  ;;  %v5701_v41 = vsel %vm1399_vm13, %v1798_v24, %v5419_v35  ;;  %v5705_v56 = vsel %vm6488_vm0, %v1714_v10, %v5423_v51  ;;  %998 = vadd.xlane.f32.xlu1 %v5576_v12  ;;  %v5717_v24 = vand.u32 4294901760, %v2642_v54  ;;  %v2656_v12 = vld [vmem:[%s6362_s1 + $0xb0] sm:$0xff]  ;;  %vm6533_vm4 = vmmov %vm6468_vm1 }
 0x200   :  { %6487 = vst [vmem:[#allocation17_spill] sm:$0xff] %v5694_v5  ;;  %1046 = vadd.xlane.f32.xlu0 %v1045_v22  ;;  %v2943_v20 = vsub.f32 %v5664_v17, %v6489_v39  ;;  %v654_v44 = vpop.xlane.xlu1 %653  ;;  %v603_v55 = vpop.xlane.xlu0 %602  ;;  %3595 = vmatpush3.msra.mxu1 %v2818_v26  ;;  %v5712_v18 = vsub.f32 %v2643_v62, %v5692_v45  ;;  %v5719_v51 = vand.u32 4294901760, %v2657_v49  ;;  %v5727_v22 = vand.u32 4294901760, %v2641_v32  ;;  %vm6535_vm10 = vmmov %vm6488_vm0 }
 0x201   :  { %v2825_v40 = vand.u32 4294901760, %v2824_v60  ;;  %v5715_v35 = vsub.f32 %v2658_v34, %v5694_v5  ;;  %6492 = vst [vmem:[#allocation20_spill] sm:$0xff] %v5717_v24  ;;  %3564 = vmatpush3.msra.mxu0 %v5692_v45  ;;  %v1951_v10 = vrot.slane %v654_v44, %v4213_v42  ;;  %v1867_v26 = vrot.slane %v603_v55, %v4187_v19 }
 0x202   :  { %6490 = vst [vmem:[#allocation18_spill] sm:$0xff] %v5712_v18  ;;  %6493 = vst [vmem:[#allocation21_spill] sm:$0xff] %v5719_v51  ;;  %3596 = vmatprep.subr.mxu1 %v2937_v46  ;;  %v2944_v62 = vand.u32 4294901760, %v2943_v20  ;;  %3565 = vmatprep.subr.mxu0 %v5694_v5  ;;  %v6395_v34 = vand.u32 4294901760, %v5712_v18  ;;  %v5733_v39 = vsub.f32 %v2642_v54, %v5717_v24 }
 0x203   :  { %6491 = vst [vmem:[#allocation19_spill] sm:$0xff] %v5715_v35  ;;  %6494 = vst [vmem:[#allocation22_spill] sm:$0xff] %v5727_v22  ;;  %3597 = vmatpush3.msra.mxu1 %v2825_v40  ;;  %v6396_v60 = vand.u32 4294901760, %v5715_v35  ;;  %v5736_v17 = vsub.f32 %v2657_v49, %v5719_v51  ;;  %3566 = vmatpush3.msra.mxu0 %v5717_v24  ;;  %v5741_v55 = vsel %vm6497_vm6, %v1951_v10, %v5481_v36 }
 0x204   :  { %6495 = vst [vmem:[#allocation23_spill] sm:$0xff] %v5733_v39  ;;  %v5745_v44 = vsel %vm1385_vm11, %v1867_v26, %v5485_v23  ;;  %3598 = vmatprep.subr.mxu1 %v2944_v62  ;;  %v5748_v46 = vsub.f32 %v2641_v32, %v5727_v22  ;;  %v5750_v40 = vand.u32 4294901760, %v2656_v12  ;;  %3567 = vmatprep.subr.mxu0 %v5719_v51  ;;  %v747_v49 = vpop.xlane.xlu1 %746  ;;  %v696_v54 = vpop.xlane.xlu0 %695 }
 0x205   :  { %6496 = vst [vmem:[#allocation24_spill] sm:$0xff] %v5736_v17  ;;  %v2831_v20 = vsub.f32 %v5712_v18, %v6395_v34  ;;  %v2950_v36 = vsub.f32 %v5715_v35, %v6396_v60  ;;  %3568 = vmatpush3.msra.mxu0 %v5727_v22  ;;  %v2104_v32 = vrot.slane %v747_v49, %v4187_v19  ;;  %v2640_v34 = vld [vmem:[%s6362_s1 + $0x30] sm:$0xff]  ;;  %v2655_v60 = vld [vmem:[%s6362_s1 + $0xa8] sm:$0xff]  ;;  %v6501_v49 = vand.u32 4294901760, %v5733_v39 }
 0x206   :  { %6498 = vst [vmem:[#allocation25_spill] sm:$0xff] %v5748_v46  ;;  %6499 = vst [vmem:[#allocation26_spill] sm:$0xff] %v5750_v40  ;;  %v2020_v26 = vrot.slane %v696_v54, %v4199_v25  ;;  %v5766_v51 = vsub.f32 %v2656_v12, %v5750_v40  ;;  %3569 = vmatprep.subr.mxu0 %v5750_v40  ;;  %v6502_v62 = vand.u32 4294901760, %v5736_v17  ;;  %v6504_v40 = vand.u32 4294901760, %v5748_v46 }
 0x207   :  { %v2832_v10 = vand.u32 4294901760, %v2831_v20  ;;  %v2951_v23 = vand.u32 4294901760, %v2950_v36  ;;  %v2838_v54 = vsub.f32 %v5733_v39, %v6501_v49  ;;  %v5783_v35 = vsel %vm1385_vm11, %v2104_v32, %v5526_v33  ;;  %v2639_v49 = vld [vmem:[%s6362_s1 + $0x28] sm:$0xff] }
 0x208   :  { %6500 = vst [vmem:[#allocation27_spill] sm:$0xff] %v5766_v51  ;;  %v2957_v12 = vsub.f32 %v5736_v17, %v6502_v62  ;;  %v5787_v18 = vsel %vm6503_vm12, %v2020_v26, %v5530_v37  ;;  %v2845_v20 = vsub.f32 %v5748_v46, %v6504_v40  ;;  %v2654_v62 = vld [vmem:[%s6362_s1 + $0xa0] sm:$0xff]  ;;  %v840_v33 = vpop.xlane.xlu1 %839  ;;  %v789_v32 = vpop.xlane.xlu0 %788  ;;  %v5799_v26 = vand.u32 4294901760, %v2640_v34 }
 0x209   :  { %3599 = vmatpush3.msra.mxu1 %v2832_v10  ;;  %v2839_v17 = vand.u32 4294901760, %v2838_v54  ;;  %v5801_v39 = vand.u32 4294901760, %v2655_v60  ;;  %v2638_v40 = vld [vmem:[%s6362_s1 + $0x20] sm:$0xff]  ;;  %v2257_v36 = vrot.slane %v840_v33, %v4199_v25  ;;  %v2173_v46 = vrot.slane %v789_v32, %v4167_v3 }
 0x20a   :  { %v2958_v37 = vand.u32 4294901760, %v2957_v12  ;;  %3600 = vmatprep.subr.mxu1 %v2951_v23  ;;  %v2846_v22 = vand.u32 4294901760, %v2845_v20  ;;  %v6506_v24 = vand.u32 4294901760, %v5766_v51  ;;  %v5812_v54 = vsub.f32 %v2640_v34, %v5799_v26  ;;  %3570 = vmatpush3.msra.mxu0 %v5799_v26 }
 0x20b   :  { %6505 = vst [vmem:[#allocation28_spill] sm:$0xff] %v5801_v39  ;;  %3601 = vmatpush3.msra.mxu1 %v2839_v17  ;;  %v5815_v12 = vsub.f32 %v2655_v60, %v5801_v39  ;;  %v5817_v5 = vand.u32 4294901760, %v2639_v49  ;;  %v5819_v45 = vand.u32 4294901760, %v2654_v62  ;;  %v5824_v23 = vsel %vm6468_vm1, %v2257_v36, %v5567_v16  ;;  %3571 = vmatprep.subr.mxu0 %v5801_v39 }
 0x20c   :  { %v2964_v10 = vsub.f32 %v5766_v51, %v6506_v24  ;;  %6507 = vst [vmem:[#allocation29_spill] sm:$0xff] %v5812_v54  ;;  %v5828_v24 = vsel %vm1371_vm9, %v2173_v46, %v5571_v6  ;;  %3602 = vmatprep.subr.mxu1 %v2958_v37  ;;  %v5830_v34 = vand.u32 4294901760, %v2638_v40  ;;  %v933_v60 = vpop.xlane.xlu1 %932  ;;  %v882_v20 = vpop.xlane.xlu0 %881  ;;  %v6417_v33 = vand.u32 4294901760, %v5812_v54  ;;  %v2653_v6 = vld [vmem:[%s6362_s1 + $0x98] sm:$0xff] }
 0x20d   :  { %6508 = vst [vmem:[#allocation30_spill] sm:$0xff] %v5815_v12  ;;  %6509 = vst [vmem:[#allocation31_spill] sm:$0xff] %v5817_v5  ;;  %3603 = vmatpush3.msra.mxu1 %v2846_v22  ;;  %v6418_v32 = vand.u32 4294901760, %v5815_v12  ;;  %v5836_v16 = vsub.f32 %v2639_v49, %v5817_v5  ;;  %v5839_v36 = vsub.f32 %v2654_v62, %v5819_v45  ;;  %3572 = vmatpush3.msra.mxu0 %v5817_v5  ;;  %vm2604_vm12 = vcmask 1043459  }
 0x20e   :  { %6510 = vst [vmem:[#allocation32_spill] sm:$0xff] %v5819_v45  ;;  %v2965_v17 = vand.u32 4294901760, %v2964_v10  ;;  %6511 = vst [vmem:[#allocation33_spill] sm:$0xff] %v5830_v34  ;;  %v2410_v46 = vrot.slane %v933_v60, %v4167_v3  ;;  %v2326_v22 = vrot.slane %v882_v20, %v4179_v9  ;;  %v5848_v37 = vsub.f32 %v2638_v40, %v5830_v34  ;;  %v2652_v60 = vld [vmem:[%s6362_s1 + $0x90] sm:$0xff] }
 0x20f   :  { %6512 = vst [vmem:[#allocation34_spill] sm:$0xff] %v5836_v16  ;;  %6513 = vst [vmem:[#allocation35_spill] sm:$0xff] %v5839_v36  ;;  %3573 = vmatprep.subr.mxu0 %v5819_v45  ;;  %v2852_v49 = vsub.f32 %v5812_v54, %v6417_v33  ;;  %v2971_v62 = vsub.f32 %v5815_v12, %v6418_v32  ;;  %v5869_v33 = vand.u32 4294901760, %v2653_v6  ;;  %v2637_v32 = vld [vmem:[%s6362_s1 + $0x18] sm:$0xff]  ;;  %v6516_v54 = vand.u32 4294901760, %v5836_v16 }
 0x210   :  { %3604 = vmatprep.subr.mxu1 %v2965_v17  ;;  %6514 = vst [vmem:[#allocation36_spill] sm:$0xff] %v5848_v37  ;;  %3574 = vmatpush3.msra.mxu0 %v5830_v34  ;;  %v5862_v40 = vsel %vm1371_vm9, %v2410_v46, %v5613_v28  ;;  %v5866_v17 = vsel %vm1364_vm8, %v2326_v22, %v5617_v13  ;;  %v1026_v10 = vpop.xlane.xlu1 %1025  ;;  %v975_v12 = vpop.xlane.xlu0 %974  ;;  %v6517_v22 = vand.u32 4294901760, %v5839_v36  ;;  %v6518_v45 = vand.u32 4294901760, %v5848_v37 }
 0x211   :  { %6515 = vst [vmem:[#allocation37_spill] sm:$0xff] %v5869_v33  ;;  %v2853_v28 = vand.u32 4294901760, %v2852_v49  ;;  %v2972_v46 = vand.u32 4294901760, %v2971_v62  ;;  %v2859_v13 = vsub.f32 %v5836_v16, %v6516_v54  ;;  %v2563_v51 = vrot.slane %v1026_v10, %v4179_v9  ;;  %v2636_v49 = vld [vmem:[%s6362_s1 + $0x10] sm:$0xff]  ;;  %v2651_v54 = vld [vmem:[%s6362_s1 + $0x88] sm:$0xff]  ;;  %3575 = vmatprep.subr.mxu0 %v5869_v33 }
 0x212   :  { %v2978_v20 = vsub.f32 %v5839_v36, %v6517_v22  ;;  %v2479_v34 = vrot.slane %v975_v12, %v4146_v52  ;;  %v2866_v5 = vsub.f32 %v5848_v37, %v6518_v45  ;;  %v5889_v39 = vsub.f32 %v2653_v6, %v5869_v33  ;;  %v2635_v45 = vld [vmem:[%s6362_s1 + $0x8] sm:$0xff] }
 0x213   :  { %3605 = vmatpush3.msra.mxu1 %v2853_v28  ;;  %v2860_v62 = vand.u32 4294901760, %v2859_v13  ;;  %v5898_v12 = vand.u32 4294901760, %v2637_v32  ;;  %v5900_v10 = vand.u32 4294901760, %v2652_v60  ;;  %v5907_v6 = vsel %vm1364_vm8, %v2563_v51, %v5654_v53 }
 0x214   :  { %6519 = vst [vmem:[#allocation38_spill] sm:$0xff] %v5889_v39  ;;  %v2979_v52 = vand.u32 4294901760, %v2978_v20  ;;  %v5911_v22 = vsel %vm1357_vm7, %v2479_v34, %v5658_v4  ;;  %3606 = vmatprep.subr.mxu1 %v2972_v46  ;;  %v2867_v28 = vand.u32 4294901760, %v2866_v5  ;;  %v6441_v20 = vand.u32 4294901760, %v5889_v39  ;;  %v564_v13 = vpop.xlane.xlu1 %563  ;;  %v513_v37 = vpop.xlane.xlu0 %512  ;;  %vm6528_vm7 = vmmov %vm6488_vm0 }
 0x215   :  { %3607 = vmatpush3.msra.mxu1 %v2860_v62  ;;  %v5915_v36 = vsub.f32 %v2637_v32, %v5898_v12  ;;  %v5918_v16 = vsub.f32 %v2652_v60, %v5900_v10  ;;  %v5920_v33 = vand.u32 4294901760, %v2636_v49  ;;  %v5922_v53 = vand.u32 4294901760, %v2651_v54  ;;  %3576 = vmatpush3.msra.mxu0 %v5898_v12 }
 0x216   :  { %v1803_v4 = vrot.slane %v564_v13, %v4232_v57  ;;  %v1719_v5 = vrot.slane %v513_v37, %v4207_v38  ;;  %3608 = vmatprep.subr.mxu1 %v2979_v52  ;;  %v2985_v51 = vsub.f32 %v5889_v39, %v6441_v20  ;;  %v5930_v34 = vand.u32 4294901760, %v2635_v45  ;;  %3577 = vmatprep.subr.mxu0 %v5900_v10  ;;  %v2650_v37 = vld [vmem:[%s6362_s1 + $0x80] sm:$0xff] }
 0x217   :  { %6520 = vst [vmem:[#allocation39_spill] sm:$0xff] %v5915_v36  ;;  %6521 = vst [vmem:[#allocation40_spill] sm:$0xff] %v5918_v16  ;;  %3609 = vmatpush3.msra.mxu1 %v2867_v28  ;;  %v6446_v32 = vand.u32 4294901760, %v5915_v36  ;;  %v5936_v46 = vsub.f32 %v2636_v49, %v5920_v33  ;;  %v5939_v62 = vsub.f32 %v2651_v54, %v5922_v53  ;;  %3578 = vmatpush3.msra.mxu0 %v5920_v33 }
 0x218   :  { %6522 = vst [vmem:[#allocation41_spill] sm:$0xff] %v5922_v53  ;;  %v5947_v52 = vsel %vm1406_vm14, %v1803_v4, %v5701_v41  ;;  %v5951_v28 = vsel %vm1399_vm13, %v1719_v5, %v5705_v56  ;;  %v2986_v13 = vand.u32 4294901760, %v2985_v51  ;;  %v5954_v49 = vsub.f32 %v2635_v45, %v5930_v34  ;;  %3579 = vmatprep.subr.mxu0 %v5922_v53  ;;  %v657_v54 = vpop.xlane.xlu1 %656  ;;  %v606_v20 = vpop.xlane.xlu0 %605 }
 0x219   :  { %6523 = vst [vmem:[#allocation42_spill] sm:$0xff] %v5936_v46  ;;  %6524 = vst [vmem:[#allocation43_spill] sm:$0xff] %v5939_v62  ;;  %v2873_v60 = vsub.f32 %v5915_v36, %v6446_v32  ;;  %v6526_v39 = vand.u32 4294901760, %v5918_v16  ;;  %v6451_v4 = vand.u32 4294901760, %v5936_v46  ;;  %3580 = vmatpush3.msra.mxu0 %v5930_v34  ;;  %v1956_v45 = vrot.slane %v657_v54, %v4207_v38  ;;  %v2634_v32 = vld [vmem:[%s6362_s1] sm:$0xff] }
 0x21a   :  { %6525 = vst [vmem:[#allocation44_spill] sm:$0xff] %v5954_v49  ;;  %v1872_v5 = vrot.slane %v606_v20, %v4213_v42  ;;  %3610 = vmatprep.subr.mxu1 %v2986_v13  ;;  %v6456_v51 = vand.u32 4294901760, %v5954_v49  ;;  %v5969_v53 = vand.u32 4294901760, %v2650_v37  ;;  %v6527_v36 = vand.u32 4294901760, %v5939_v62 }
 0x21b   :  { %v2992_v41 = vsub.f32 %v5918_v16, %v6526_v39  ;;  %v2874_v39 = vand.u32 4294901760, %v2873_v60  ;;  %v2880_v56 = vsub.f32 %v5936_v46, %v6451_v4  ;;  %v5982_v20 = vsel %vm1399_vm13, %v1956_v45, %v5741_v55 }
 0x21c   :  { %v2999_v54 = vsub.f32 %v5939_v62, %v6527_v36  ;;  %v5986_v13 = vsel %vm6528_vm7, %v1872_v5, %v5745_v44  ;;  %v2887_v60 = vsub.f32 %v5954_v49, %v6456_v51  ;;  %3581 = vmatprep.subr.mxu0 %v5969_v53  ;;  %v750_v4 = vpop.xlane.xlu1 %749  ;;  %v699_v46 = vpop.xlane.xlu0 %698  ;;  %v5995_v55 = vand.u32 4294901760, %v2634_v32  ;;  %vm6538_vm7 = vmmov %vm6531_vm2 }
 0x21d   :  { %v2993_v16 = vand.u32 4294901760, %v2992_v41  ;;  %v5992_v41 = vsub.f32 %v2650_v37, %v5969_v53  ;;  %3611 = vmatpush3.msra.mxu1 %v2874_v39  ;;  %v2881_v36 = vand.u32 4294901760, %v2880_v56  ;;  %v2109_v45 = vrot.slane %v750_v4, %v4213_v42 }
 0x21e   :  { %v3000_v62 = vand.u32 4294901760, %v2999_v54  ;;  %v2025_v44 = vrot.slane %v699_v46, %v4187_v19  ;;  %v2888_v5 = vand.u32 4294901760, %v2887_v60  ;;  %v6001_v37 = vsub.f32 %v2634_v32, %v5995_v55  ;;  %3582 = vmatpush3.msra.mxu0 %v5995_v55 }
 0x21f   :  { %6529 = vst [vmem:[#allocation45_spill] sm:$0xff] %v5992_v41  ;;  %3612 = vmatprep.subr.mxu1 %v2993_v16  ;;  %v6457_v51 = vand.u32 4294901760, %v5992_v41  ;;  %v2110_v56 = vsel %vm6531_vm2, %v2109_v45, %v5783_v35  ;;  %3621 = vmatprep.subr.mxu0 %v5456_v8 }
 0x220   :  { %3613 = vmatpush3.msra.mxu1 %v2881_v36  ;;  %6530 = vst [vmem:[#allocation46_spill] sm:$0xff] %v6001_v37  ;;  %v2026_v39 = vsel %vm1385_vm11, %v2025_v44, %v5787_v18  ;;  %v843_v46 = vpop.xlane.xlu1 %842  ;;  %v792_v4 = vpop.xlane.xlu0 %791  ;;  %v6458_v32 = vand.u32 4294901760, %v6001_v37 }
 0x221   :  { %3614 = vmatprep.subr.mxu1 %v3000_v62  ;;  %v3006_v16 = vsub.f32 %v5992_v41, %v6457_v51  ;;  %v2262_v54 = vrot.slane %v843_v46, %v4187_v19  ;;  %v2178_v60 = vrot.slane %v792_v4, %v4199_v25 }
 0x222   :  { %3615 = vmatpush3.msra.mxu1 %v2888_v5  ;;  %v2894_v18 = vsub.f32 %v6001_v37, %v6458_v32 }
 0x223   :  { %v3007_v35 = vand.u32 4294901760, %v3006_v16  ;;  %v2263_v62 = vsel %vm1385_vm11, %v2262_v54, %v5824_v23  ;;  %v2179_v36 = vsel %vm6532_vm3, %v2178_v60, %v5828_v24  ;;  %vm2610_vm3 = vcmask 1046534  }
 0x224   :  { %v936_v45 = vpop.xlane.xlu1 %935  ;;  %v885_v44 = vpop.xlane.xlu0 %884  ;;  %v2895_v5 = vand.u32 4294901760, %v2894_v18 }
 0x225   :  { %3616 = vmatprep.subr.mxu1 %v3007_v35  ;;  %v2415_v51 = vrot.slane %v936_v45, %v4199_v25  ;;  %v2331_v46 = vrot.slane %v885_v44, %v4167_v3 }
 0x226   :  { %3617 = vmatpush3.msra.mxu1 %v2895_v5 }
 0x227   :  { %v2416_v16 = vsel %vm6533_vm4, %v2415_v51, %v5862_v40  ;;  %v2332_v4 = vsel %vm1371_vm9, %v2331_v46, %v5866_v17  ;;  %3656 = vmatprep.subr.mxu1 %v5434_v15  ;;  %vm6539_vm4 = vmmov %vm6531_vm2 }
 0x228   :  { %v1029_v23 = vpop.xlane.xlu1 %1028  ;;  %v978_v54 = vpop.xlane.xlu0 %977 }
 0x229   :  { %v2568_v24 = vrot.slane %v1029_v23, %v4167_v3  ;;  %v2484_v60 = vrot.slane %v978_v54, %v4179_v9 }
 0x22b   :  { %v2569_v35 = vsel %vm1371_vm9, %v2568_v24, %v5907_v6  ;;  %v2485_v18 = vsel %vm1364_vm8, %v2484_v60, %v5911_v22  ;;  %vm6534_vm8 = vmmov %vm6488_vm0 }
 0x22c   :  { %v567_v45 = vpop.xlane.xlu1 %566  ;;  %v516_v44 = vpop.xlane.xlu0 %515  ;;  %vm6536_vm0 = vmmov %vm6468_vm1  ;;  %vm2608_vm1 = vcmask 1045509  }
 0x22d   :  { %v1808_v40 = vrot.slane %v567_v45, %v4229_v11  ;;  %v1724_v17 = vrot.slane %v516_v44, %v4232_v57  ;;  %vm6537_vm6 = vmmov %vm6536_vm0 }
 0x22f   :  { %v1809_v51 = vsel %vm1413_vm15, %v1808_v40, %v5947_v52  ;;  %v1725_v5 = vsel %vm1406_vm14, %v1724_v17, %v5951_v28 }
 0x230   :  { %v2615_v9 = vsel %vm2602_vm5, %v1809_v51, %v4559_v29  ;;  %v660_v6 = vpop.xlane.xlu1 %659  ;;  %v609_v46 = vpop.xlane.xlu0 %608 }
 0x231   :  { %v1961_v22 = vrot.slane %v660_v6, %v4232_v57  ;;  %v1877_v23 = vrot.slane %v609_v46, %v4207_v38 }
 0x233   :  { %v1962_v54 = vsel %vm1406_vm14, %v1961_v22, %v5982_v20  ;;  %v1878_v24 = vsel %vm1399_vm13, %v1877_v23, %v5986_v13 }
 0x234   :  { %v753_v60 = vpop.xlane.xlu1 %752  ;;  %v702_v52 = vpop.xlane.xlu0 %701 }
 0x235   :  { %v2114_v45 = vrot.slane %v753_v60, %v4207_v38  ;;  %v2030_v28 = vrot.slane %v702_v52, %v4213_v42 }
 0x237   :  { %v2115_v29 = vsel %vm1399_vm13, %v2114_v45, %v2110_v56  ;;  %v2031_v44 = vsel %vm6534_vm8, %v2030_v28, %v2026_v39  ;;  %vm6541_vm8 = vmmov %vm6531_vm2 }
 0x238   :  { %v846_v40 = vpop.xlane.xlu1 %845  ;;  %v795_v17 = vpop.xlane.xlu0 %794 }
 0x239   :  { %v2267_v51 = vrot.slane %v846_v40, %v4213_v42  ;;  %v2183_v6 = vrot.slane %v795_v17, %v4187_v19 }
 0x23b   :  { %v6056_v20 = vsel %vm6535_vm10, %v2267_v51, %v2263_v62  ;;  %v6059_v13 = vsel %vm1385_vm11, %v2183_v6, %v2179_v36  ;;  %vm6542_vm10 = vmmov %vm6531_vm2 }
 0x23c   :  { %v939_v46 = vpop.xlane.xlu1 %938  ;;  %v888_v22 = vpop.xlane.xlu0 %887 }
 0x23d   :  { %v2420_v23 = vrot.slane %v939_v46, %v4187_v19  ;;  %v2336_v56 = vrot.slane %v888_v22, %v4199_v25 }
 0x23f   :  { %v6064_v39 = vsel %vm1385_vm11, %v2420_v23, %v2416_v16  ;;  %v6067_v60 = vsel %vm6536_vm0, %v2336_v56, %v2332_v4 }
 0x240   :  { %v1032_v52 = vpop.xlane.xlu1 %1031  ;;  %v981_v45 = vpop.xlane.xlu0 %980 }
 0x241   :  { %v2573_v62 = vrot.slane %v1032_v52, %v4199_v25  ;;  %v2489_v28 = vrot.slane %v981_v45, %v4167_v3 }
 0x243   :  { %v6072_v36 = vsel %vm6537_vm6, %v2573_v62, %v2569_v35  ;;  %v6075_v40 = vsel %vm1371_vm9, %v2489_v28, %v2485_v18  ;;  %vm2606_vm9 = vcmask 1044484  }
 0x244   :  { %v612_v17 = vpop.xlane.xlu1 %611  ;;  %v519_v51 = vpop.xlane.xlu0 %518 }
 0x245   :  { %v1729_v16 = vrot.slane %v519_v51, %v4229_v11  ;;  %v1882_v28 = vrot.slane %v612_v17, %v4232_v57 }
 0x247   :  { %v1730_v6 = vsel %vm1413_vm15, %v1729_v16, %v1725_v5 }
 0x248   :  { %v2603_v4 = vsel %vm2602_vm5, %v1730_v6, %v4460_v47  ;;  %v705_v46 = vpop.xlane.xlu1 %704  ;;  %v663_v22 = vpop.xlane.xlu0 %662  ;;  %v1883_v6 = vsel %vm1406_vm14, %v1882_v28, %v1878_v24  ;;  %vm6540_vm5 = vmmov %vm6536_vm0  ;;  %vm2612_vm0 = vcmask 1047559  }
 0x249   :  { %v1966_v3 = vrot.slane %v663_v22, %v4229_v11 }
 0x24b   :  { %v1967_v35 = vsel %vm1413_vm15, %v1966_v3, %v1962_v54 }
 0x24c   :  { %v2616_v23 = vsel %vm2604_vm12, %v1967_v35, %v2615_v9  ;;  %v798_v18 = vpop.xlane.xlu1 %797  ;;  %v756_v56 = vpop.xlane.xlu0 %755 }
 0x24d   :  { %v2119_v54 = vrot.slane %v756_v56, %v4232_v57 }
 0x24f   :  { %v2120_v17 = vsel %vm1406_vm14, %v2119_v54, %v2115_v29 }
 0x250   :  { %v6084_v52 = vpop.xlane.xlu1 %890  ;;  %v849_v45 = vpop.xlane.xlu0 %848 }
 0x254   :  { %v6086_v62 = vpop.xlane.xlu1 %983  ;;  %v942_v5 = vpop.xlane.xlu0 %941 }
 0x258   :  { %v615_v47 = vpop.xlane.xlu1 %614  ;;  %v6089_v51 = vpop.xlane.xlu0 %1034 }
 0x259   :  { %v1887_v16 = vrot.slane %v615_v47, %v4229_v11 }
 0x25b   :  { %v1888_v9 = vsel %vm1413_vm15, %v1887_v16, %v1883_v6 }
 0x25c   :  { %v2605_v22 = vsel %vm2604_vm12, %v1888_v9, %v2603_v4  ;;  %v759_v3 = vpop.xlane.xlu1 %758  ;;  %v708_v35 = vpop.xlane.xlu0 %707  ;;  %v2035_v4 = vrot.slane %v705_v46, %v4207_v38 }
 0x25d   :  { %v2124_v32 = vrot.slane %v759_v3, %v4229_v11  ;;  %v2040_v6 = vrot.slane %v708_v35, %v4232_v57 }
 0x25e   :  { %v2036_v29 = vsel %vm1399_vm13, %v2035_v4, %v2031_v44 }
 0x25f   :  { %v2125_v8 = vsel %vm1413_vm15, %v2124_v32, %v2120_v17  ;;  %v2272_v32 = vrot.slane %v849_v45, %v4207_v38 }
 0x260   :  { %v2617_v37 = vsel %vm2606_vm9, %v2125_v8, %v2616_v23  ;;  %v852_v47 = vpop.xlane.xlu1 %851  ;;  %v801_v41 = vpop.xlane.xlu0 %800  ;;  %v2041_v23 = vsel %vm1406_vm14, %v2040_v6, %v2036_v29  ;;  %v2188_v6 = vrot.slane %v798_v18, %v4213_v42 }
 0x261   :  { %v2277_v54 = vrot.slane %v852_v47, %v4232_v57  ;;  %v2273_v35 = vsel %vm1399_vm13, %v2272_v32, %v6056_v20  ;;  %v2425_v32 = vrot.slane %v942_v5, %v4213_v42 }
 0x262   :  { %v2189_v20 = vsel %vm6538_vm7, %v2188_v6, %v6059_v13  ;;  %v2341_v6 = vrot.slane %v6084_v52, %v4187_v19  ;;  %v2578_v52 = vrot.slane %v6089_v51, %v4187_v19 }
 0x263   :  { %v2278_v45 = vsel %vm1406_vm14, %v2277_v54, %v2273_v35 }
 0x264   :  { %v945_v24 = vpop.xlane.xlu1 %944  ;;  %v894_v28 = vpop.xlane.xlu0 %893 }
 0x268   :  { %v6100_v56 = vpop.xlane.xlu1 %1037  ;;  %v6102_v16 = vpop.xlane.xlu0 %986 }
 0x26c   :  { %v804_v9 = vpop.xlane.xlu1 %803  ;;  %v711_v3 = vpop.xlane.xlu0 %710 }
 0x26d   :  { %v2045_v8 = vrot.slane %v711_v3, %v4229_v11 }
 0x26f   :  { %v2046_v17 = vsel %vm1413_vm15, %v2045_v8, %v2041_v23  ;;  %v2198_v8 = vrot.slane %v804_v9, %v4232_v57  ;;  %v2426_v9 = vsel %vm6531_vm2, %v2425_v32, %v6064_v39  ;;  %v2494_v32 = vrot.slane %v6086_v62, %v4199_v25 }
 0x270   :  { %v2607_v49 = vsel %vm2606_vm9, %v2046_v17, %v2605_v22  ;;  %v897_v15 = vpop.xlane.xlu1 %896  ;;  %v855_v46 = vpop.xlane.xlu0 %854  ;;  %v2193_v22 = vrot.slane %v801_v41, %v4207_v38 }
 0x271   :  { %v2282_v44 = vrot.slane %v855_v46, %v4229_v11  ;;  %v2430_v46 = vrot.slane %v945_v24, %v4207_v38 }
 0x272   :  { %v2194_v54 = vsel %vm1399_vm13, %v2193_v22, %v2189_v20  ;;  %v2346_v22 = vrot.slane %v894_v28, %v4213_v42  ;;  %v2351_v20 = vrot.slane %v897_v15, %v4207_v38  ;;  %v2499_v28 = vrot.slane %v6102_v16, %v4187_v19 }
 0x273   :  { %v2283_v4 = vsel %vm1413_vm15, %v2282_v44, %v2278_v45  ;;  %v2431_v45 = vsel %vm1399_vm13, %v2430_v46, %v2426_v9  ;;  %v2583_v46 = vrot.slane %v6100_v56, %v4213_v42  ;;  %v2495_v19 = vsel %vm6540_vm5, %v2494_v32, %v6075_v40 }
 0x274   :  { %v2618_v47 = vsel %vm2608_vm1, %v2283_v4, %v2617_v37  ;;  %v990_v3 = vpop.xlane.xlu1 %989  ;;  %v948_v29 = vpop.xlane.xlu0 %947  ;;  %v2199_v37 = vsel %vm1406_vm14, %v2198_v8, %v2194_v54  ;;  %v2342_v54 = vsel %vm1385_vm11, %v2341_v6, %v6067_v60 }
 0x275   :  { %v2435_v35 = vrot.slane %v948_v29, %v4232_v57  ;;  %v2504_v15 = vrot.slane %v990_v3, %v4213_v42  ;;  %v2579_v42 = vsel %vm1385_vm11, %v2578_v52, %v6072_v36  ;;  %v2500_v3 = vsel %vm1385_vm11, %v2499_v28, %v2495_v19  ;;  %v6550_v19 = vld [vmem:[#allocation21_spill] sm:$0xff] }
 0x277   :  { %v2436_v4 = vsel %vm1406_vm14, %v2435_v35, %v2431_v45 }
 0x278   :  { %v807_v23 = vpop.xlane.xlu1 %806  ;;  %v1041_v17 = vpop.xlane.xlu0 %1040 }
 0x279   :  { %v2203_v18 = vrot.slane %v807_v23, %v4229_v11 }
 0x27b   :  { %v2204_v41 = vsel %vm1413_vm15, %v2203_v18, %v2199_v37  ;;  %v2588_v37 = vrot.slane %v1041_v17, %v4207_v38 }
 0x27c   :  { %v2609_v13 = vsel %vm2608_vm1, %v2204_v41, %v2607_v49  ;;  %v951_v5 = vpop.xlane.xlu1 %950  ;;  %v900_v44 = vpop.xlane.xlu0 %899  ;;  %v2505_v41 = vsel %vm6542_vm10, %v2504_v15, %v2500_v3  ;;  %v6543_v15 = vld [vmem:[#allocation8_spill] sm:$0xff]  ;;  %v6555_v3 = vld [vmem:[#allocation14_spill] sm:$0xff] }
 0x27d   :  { %v2440_v24 = vrot.slane %v951_v5, %v4229_v11  ;;  %v2356_v23 = vrot.slane %v900_v44, %v4232_v57 }
 0x27f   :  { %v2441_v29 = vsel %vm1413_vm15, %v2440_v24, %v2436_v4 }
 0x280   :  { %v2619_v39 = vsel %vm2610_vm3, %v2441_v29, %v2618_v47  ;;  %v1044_v8 = vpop.xlane.xlu1 %1043  ;;  %v993_v49 = vpop.xlane.xlu0 %992  ;;  %v2347_v47 = vsel %vm6539_vm4, %v2346_v22, %v2342_v54 }
 0x281   :  { %v2352_v62 = vsel %vm1399_vm13, %v2351_v20, %v2347_v47  ;;  %v2509_v60 = vrot.slane %v993_v49, %v4207_v38  ;;  %v2593_v35 = vrot.slane %v1044_v8, %v4232_v57  ;;  %v2584_v38 = vsel %vm6541_vm8, %v2583_v46, %v2579_v42  ;;  %v6554_v42 = vld [vmem:[#allocation26_spill] sm:$0xff] }
 0x282   :  { %v2357_v16 = vsel %vm1406_vm14, %v2356_v23, %v2352_v62  ;;  %v2589_v44 = vsel %vm1399_vm13, %v2588_v37, %v2584_v38  ;;  %v6546_v62 = vld [vmem:[#allocation17_spill] sm:$0xff]  ;;  %v6547_v37 = vld [vmem:[#allocation10_spill] sm:$0xff]  ;;  %v6557_v38 = vld [vmem:[#allocation28_spill] sm:$0xff] }
 0x283   :  { %v2594_v24 = vsel %vm1406_vm14, %v2593_v35, %v2589_v44  ;;  %v6552_v35 = vld [vmem:[#allocation22_spill] sm:$0xff]  ;;  %v6562_v44 = vld [vmem:[#allocation23_spill] sm:$0xff] }
 0x284   :  { %v996_v18 = vpop.xlane.xlu1 %995  ;;  %v903_v25 = vpop.xlane.xlu0 %902 }
 0x285   :  { %v2361_v51 = vrot.slane %v903_v25, %v4229_v11  ;;  %v2514_v56 = vrot.slane %v996_v18, %v4232_v57  ;;  %v2510_v57 = vsel %vm1399_vm13, %v2509_v60, %v2505_v41  ;;  %v6544_v18 = vld [vmem:[#allocation16_spill] sm:$0xff]  ;;  %v6545_v25 = vld [vmem:[#allocation9_spill] sm:$0xff]  ;;  %v6558_v41 = vld [vmem:[#allocation18_spill] sm:$0xff] }
 0x286   :  { %v6548_v60 = vld [vmem:[#allocation20_spill] sm:$0xff] }
 0x287   :  { %v2362_v17 = vsel %vm1413_vm15, %v2361_v51, %v2357_v16  ;;  %v2515_v4 = vsel %vm1406_vm14, %v2514_v56, %v2510_v57  ;;  %v6549_v51 = vld [vmem:[#allocation11_spill] sm:$0xff]  ;;  %v6551_v16 = vld [vmem:[#allocation12_spill] sm:$0xff]  ;;  %v6553_v56 = vld [vmem:[#allocation13_spill] sm:$0xff] }
 0x288   :  { %v2611_v9 = vsel %vm2610_vm3, %v2362_v17, %v2609_v13  ;;  %v999_v40 = vpop.xlane.xlu1 %998  ;;  %v6556_v17 = vld [vmem:[#allocation15_spill] sm:$0xff]  ;;  %v6563_v57 = vld [vmem:[#allocation33_spill] sm:$0xff] }
 0x289   :  { %v1047_v5 = vpop.xlane.xlu0 %1046  ;;  %v2519_v45 = vrot.slane %v999_v40, %v4229_v11  ;;  %v6560_v40 = vld [vmem:[#allocation19_spill] sm:$0xff] }
 0x28a   :  { %v2598_v36 = vrot.slane %v1047_v5, %v4229_v11  ;;  %v6561_v5 = vld [vmem:[#allocation32_spill] sm:$0xff] }
 0x28b   :  { %v2520_v6 = vsel %vm1413_vm15, %v2519_v45, %v2515_v4  ;;  %v6564_v45 = vld [vmem:[#allocation24_spill] sm:$0xff]  ;;  %v6567_v4 = vld [vmem:[#allocation27_spill] sm:$0xff] }
 0x28c   :  { %v2599_v29 = vsel %vm1413_vm15, %v2598_v36, %v2594_v24  ;;  %v2613_v13 = vsel %vm2612_vm0, %v2520_v6, %v2611_v9  ;;  %v6559_v9 = vld [vmem:[#allocation31_spill] sm:$0xff]  ;;  %v6565_v36 = vld [vmem:[#allocation37_spill] sm:$0xff] }
 0x28d   :  { %v2620_v22 = vsel %vm2612_vm0, %v2599_v29, %v2619_v39  ;;  %v2632_v8 = vmul.f32 0.015625, %v2613_v13  ;;  %v6566_v24 = vld [vmem:[#allocation25_spill] sm:$0xff]  ;;  %v6569_v29 = vld [vmem:[#allocation30_spill] sm:$0xff] }
 0x28e   :  { %v2633_v49 = vmul.f32 0.015625, %v2620_v22  ;;  %v6568_v6 = vld [vmem:[#allocation29_spill] sm:$0xff]  ;;  %v6571_v22 = vld [vmem:[#allocation34_spill] sm:$0xff] }
 0x28f   :  { %v6182_v32 = vand.u32 4294901760, %v2632_v8  ;;  %v6570_v13 = vld [vmem:[#allocation41_spill] sm:$0xff] }
 0x290   :  { %v6180_v20 = vand.u32 4294901760, %v2633_v49 }
 0x291   :  { %v6187_v23 = vsub.f32 %v2632_v8, %v6182_v32  ;;  %v6572_v8 = vld [vmem:[#allocation35_spill] sm:$0xff] }
 0x292   :  { %3010 = vmatprep.mubr.f32.mxu1 %v6180_v20  ;;  %v2770_v11 = vsub.f32 %v2633_v49, %v6180_v20  ;;  %v6573_v49 = vld [vmem:[#allocation36_spill] sm:$0xff] }
 0x293   :  { %3012 = vmatmul.mubr.f32.vlgmr.msra.gmra.mxu1 %v6182_v32  ;;  %v2777_v39 = vand.u32 4294901760, %v6187_v23 }
 0x294   :  { %3657 = vmatpush3.msra.mxu1 %v5448_v7  ;;  %v2771_v54 = vand.u32 4294901760, %v2770_v11 }
 0x295   :  { %3658 = vmatprep.subr.mxu1 %v5458_v63  ;;  %v2778_v28 = vsub.f32 %v6187_v23, %v2777_v39 }
 0x296   :  { %3659 = vmatpush3.msra.mxu1 %v5473_v0  ;;  %3254 = vmatprep.mubr.f32.mxu1 %v2771_v54  ;;  %v2772_v52 = vsub.f32 %v2770_v11, %v2771_v54  ;;  %v6575_v54 = vld [vmem:[#allocation6_spill] sm:$0xff] }
 0x297   :  { %3660 = vmatprep.subr.mxu1 %v5498_v50  ;;  %v2779_v46 = vand.u32 4294901760, %v2778_v28  ;;  %v6577_v28 = vld [vmem:[#allocation40_spill] sm:$0xff] }
 0x298   :  { %3661 = vmatpush3.msra.mxu1 %v5500_v14  ;;  %v2773_v47 = vand.u32 4294901760, %v2772_v52  ;;  %v6576_v52 = vld [vmem:[#allocation39_spill] sm:$0xff] }
 0x299   :  { %3662 = vmatprep.subr.mxu1 %v5549_v58 }
 0x29a   :  { %3663 = vmatpush3.msra.mxu1 %v5560_v30  ;;  %2774 = vmatprep.mubr.f32.mxu0 %v2773_v47  ;;  %v6578_v47 = vld [vmem:[#allocation42_spill] sm:$0xff] }
 0x29b   :  { %3664 = vmatprep.subr.mxu1 %v5590_v43  ;;  %2780 = vmatmul.mubr.f32.vlgmr.msra.gmra.mxu0 %v2779_v46  ;;  %v6579_v46 = vld [vmem:[#allocation43_spill] sm:$0xff] }
 0x29c   :  { %3622 = vmatpush3.msra.mxu0 %v5471_v61  ;;  %3665 = vmatpush3.msra.mxu1 %v5599_v2 }
 0x29d   :  { %3623 = vmatprep.subr.mxu0 %v5489_v21  ;;  %3147 = vmatprep.mubr.f32.mxu0 %v2770_v11  ;;  %v6574_v11 = vld [vmem:[#allocation38_spill] sm:$0xff] }
 0x29e   :  { %3666 = vmatprep.subr.mxu1 %v5606_v1  ;;  %3624 = vmatpush3.msra.mxu0 %v5496_v48 }
 0x29f   :  { %3667 = vmatpush3.msra.mxu1 %v5608_v31  ;;  %3625 = vmatprep.subr.mxu0 %v5515_v27 }
 0x2a0   :  { %3668 = vmatprep.subr.mxu1 %v5624_v59  ;;  %3626 = vmatpush3.msra.mxu0 %v6543_v15 }
 0x2a1   :  { %3669 = vmatpush3.msra.mxu1 %v6544_v18  ;;  %3627 = vmatprep.subr.mxu0 %v6545_v25 }
 0x2a2   :  { %3670 = vmatprep.subr.mxu1 %v6546_v62  ;;  %3628 = vmatpush3.msra.mxu0 %v6547_v37 }
 0x2a3   :  { %3671 = vmatpush3.msra.mxu1 %v6548_v60  ;;  %3629 = vmatprep.subr.mxu0 %v6549_v51 }
 0x2a4   :  { %3672 = vmatprep.subr.mxu1 %v6550_v19  ;;  %3630 = vmatpush3.msra.mxu0 %v6551_v16 }
 0x2a5   :  { %3673 = vmatpush3.msra.mxu1 %v6552_v35  ;;  %3631 = vmatprep.subr.mxu0 %v6553_v56 }
 0x2a6   :  { %3674 = vmatprep.subr.mxu1 %v6554_v42  ;;  %3632 = vmatpush3.msra.mxu0 %v6555_v3 }
 0x2a7   :  { %3675 = vmatpush3.msra.mxu1 %v5799_v26  ;;  %3633 = vmatprep.subr.mxu0 %v6556_v17 }
 0x2a8   :  { %3676 = vmatprep.subr.mxu1 %v6557_v38  ;;  %3634 = vmatpush3.msra.mxu0 %v6558_v41 }
 0x2a9   :  { %3677 = vmatpush3.msra.mxu1 %v6559_v9  ;;  %3635 = vmatprep.subr.mxu0 %v6560_v40 }
 0x2aa   :  { %3678 = vmatprep.subr.mxu1 %v6561_v5  ;;  %3636 = vmatpush3.msra.mxu0 %v6562_v44 }
 0x2ab   :  { %3679 = vmatpush3.msra.mxu1 %v6563_v57  ;;  %3637 = vmatprep.subr.mxu0 %v6564_v45 }
 0x2ac   :  { %3680 = vmatprep.subr.mxu1 %v6565_v36  ;;  %3638 = vmatpush3.msra.mxu0 %v6566_v24 }
 0x2ad   :  { %3681 = vmatpush3.msra.mxu1 %v5898_v12  ;;  %3639 = vmatprep.subr.mxu0 %v6567_v4 }
 0x2ae   :  { %3682 = vmatprep.subr.mxu1 %v5900_v10  ;;  %3640 = vmatpush3.msra.mxu0 %v6568_v6 }
 0x2af   :  { %3683 = vmatpush3.msra.mxu1 %v5920_v33  ;;  %3641 = vmatprep.subr.mxu0 %v6569_v29 }
 0x2b0   :  { %3684 = vmatprep.subr.mxu1 %v6570_v13  ;;  %3642 = vmatpush3.msra.mxu0 %v6571_v22 }
 0x2b1   :  { %3685 = vmatpush3.msra.mxu1 %v5930_v34  ;;  %3643 = vmatprep.subr.mxu0 %v6572_v8 }
 0x2b2   :  { %3686 = vmatprep.subr.mxu1 %v5969_v53  ;;  %3644 = vmatpush3.msra.mxu0 %v6573_v49 }
 0x2b3   :  { %3687 = vmatpush3.msra.mxu1 %v5995_v55  ;;  %3645 = vmatprep.subr.mxu0 %v6574_v11 }
 0x2b4   :  { %3258 = vmatmul.mubr.f32.vlgmr.msra.gmra.mxu1 %v2777_v39  ;;  %3726 = vmatprep.subr.mxu1 %v6575_v54  ;;  %v6580_v39 = vld [vmem:[#allocation44_spill] sm:$0xff]  ;;  %v6581_v54 = vld [vmem:[#allocation45_spill] sm:$0xff] }
 0x2b5   :  { %3646 = vmatpush3.msra.mxu0 %v6576_v52  ;;  %3727 = vmatpush3.msra.mxu1 %v5448_v7  ;;  %v6582_v7 = vld [vmem:[#allocation46_spill] sm:$0xff] }
 0x2b6   :  { %3528 = vmatprep.mubr.f32.mxu1 %v6180_v20  ;;  %3647 = vmatprep.subr.mxu0 %v6577_v28 }
 0x2b7   :  { %3728 = vmatprep.subr.mxu1 %v5458_v63  ;;  %3648 = vmatpush3.msra.mxu0 %v6578_v47  ;;  %v6583_v63 = vld [vmem:[#allocation7_spill] sm:$0xff] }
 0x2b8   :  { %3729 = vmatpush3.msra.mxu1 %v5473_v0  ;;  %3649 = vmatprep.subr.mxu0 %v6579_v46  ;;  %v6584_v0 = vand.u32 4294901760, %v6583_v63 }
 0x2b9   :  { %3730 = vmatprep.subr.mxu1 %v5498_v50  ;;  %3650 = vmatpush3.msra.mxu0 %v6580_v39  ;;  %v6585_v50 = vand.u32 4294901760, %v5471_v61  ;;  %v6589_v61 = vand.u32 4294901760, %v6543_v15  ;;  %v6601_v15 = vand.u32 4294901760, %v6566_v24 }
 0x2ba   :  { %3731 = vmatpush3.msra.mxu1 %v5500_v14  ;;  %3651 = vmatprep.subr.mxu0 %v6581_v54  ;;  %v6586_v14 = vand.u32 4294901760, %v5489_v21  ;;  %v6590_v21 = vand.u32 4294901760, %v6545_v25  ;;  %v6603_v25 = vand.u32 4294901760, %v6568_v6 }
 0x2bb   :  { %3732 = vmatprep.subr.mxu1 %v5549_v58  ;;  %3652 = vmatpush3.msra.mxu0 %v6582_v7  ;;  %v6588_v58 = vand.u32 4294901760, %v5515_v27  ;;  %v6594_v27 = vand.u32 4294901760, %v6553_v56 }
 0x2bc   :  { %3733 = vmatpush3.msra.mxu1 %v5560_v30  ;;  %3150 = vmatmul.mubr.f32.vlgmr.msra.gmra.mxu0 %v6187_v23  ;;  %v6587_v30 = vand.u32 4294901760, %v5496_v48  ;;  %v6593_v48 = vand.u32 4294901760, %v6551_v16  ;;  %v6599_v23 = vand.u32 4294901760, %v6562_v44  ;;  %v6615_v16 = vand.u32 4294901760, %v6582_v7 }
 0x2bd   :  { %3691 = vmatprep.subr.mxu0 %v6584_v0  ;;  %3734 = vmatprep.subr.mxu1 %v5590_v43  ;;  %v6595_v43 = vand.u32 4294901760, %v6555_v3 }
 0x2be   :  { %3692 = vmatpush3.msra.mxu0 %v6585_v50  ;;  %3424 = vmatprep.mubr.f32.mxu0 %v6180_v20  ;;  %v6598_v20 = vand.u32 4294901760, %v6560_v40 }
 0x2bf   :  { %3735 = vmatpush3.msra.mxu1 %v5599_v2  ;;  %3693 = vmatprep.subr.mxu0 %v6586_v14  ;;  %v6596_v2 = vand.u32 4294901760, %v6556_v17 }
 0x2c0   :  { %3736 = vmatprep.subr.mxu1 %v5606_v1  ;;  %3694 = vmatpush3.msra.mxu0 %v6587_v30  ;;  %v6591_v1 = vand.u32 4294901760, %v6547_v37  ;;  %v6605_v37 = vand.u32 4294901760, %v6571_v22 }
 0x2c1   :  { %3737 = vmatpush3.msra.mxu1 %v5608_v31  ;;  %3695 = vmatprep.subr.mxu0 %v6588_v58  ;;  %v6592_v31 = vand.u32 4294901760, %v6549_v51  ;;  %v6611_v51 = vand.u32 4294901760, %v6578_v47 }
 0x2c2   :  { %3738 = vmatprep.subr.mxu1 %v5624_v59  ;;  %3696 = vmatpush3.msra.mxu0 %v6589_v61  ;;  %v6597_v59 = vand.u32 4294901760, %v6558_v41  ;;  %v3550_v41 = vld [vmem:[%s6363_s2] ss:$0 sm:$0xff]  ;;  %s3762_s2 = scalar_lea.vmem %s3543_s21, 128 }
 0x2c3   :  { %3739 = vmatpush3.msra.mxu1 %v6544_v18  ;;  %3697 = vmatprep.subr.mxu0 %v6590_v21  ;;  %v6602_v18 = vand.u32 4294901760, %v6567_v4  ;;  %p3763_p0 = scmp.ne.s32.totalorder %s3543_s21, %s3762_s2  ;;  %p3768_p2 = scmp.lt.s32.totalorder %s3762_s2, %s3762_s2 }
 0x2c4   :  { %3740 = vmatprep.subr.mxu1 %v6546_v62  ;;  %3698 = vmatpush3.msra.mxu0 %v6591_v1  ;;  %v6604_v62 = vand.u32 4294901760, %v6569_v29 }
 0x2c5   :  { %3741 = vmatpush3.msra.mxu1 %v6548_v60  ;;  %3699 = vmatprep.subr.mxu0 %v6592_v31  ;;  %v6609_v60 = vand.u32 4294901760, %v6576_v52  ;;  %p3769_p3 = por %p3768_p2, %p3767_p1 }
 0x2c6   :  { %3742 = vmatprep.subr.mxu1 %v6550_v19  ;;  %3700 = vmatpush3.msra.mxu0 %v6593_v48  ;;  %v6613_v19 = vand.u32 4294901760, %v6580_v39 }
 0x2c7   :  { %3743 = vmatpush3.msra.mxu1 %v6552_v35  ;;  %3701 = vmatprep.subr.mxu0 %v6594_v27  ;;  %p3770_p4 = pnand %p3769_p3, %p3763_p0 }
 0x2c8   :  { %3744 = vmatprep.subr.mxu1 %v6554_v42  ;;  %3702 = vmatpush3.msra.mxu0 %v6595_v43 }
 0x2c9   :  { %3745 = vmatpush3.msra.mxu1 %v5799_v26  ;;  %3703 = vmatprep.subr.mxu0 %v6596_v2  ;;  %v6600_v26 = vand.u32 4294901760, %v6564_v45 }
 0x2ca   :  { %3746 = vmatprep.subr.mxu1 %v6557_v38  ;;  %3704 = vmatpush3.msra.mxu0 %v6597_v59 }
 0x2cb   :  { %3747 = vmatpush3.msra.mxu1 %v6559_v9  ;;  %3705 = vmatprep.subr.mxu0 %v6598_v20 }
 0x2cc   :  { %3748 = vmatprep.subr.mxu1 %v6561_v5  ;;  %3706 = vmatpush3.msra.mxu0 %v6599_v23 }
 0x2cd   :  { %3749 = vmatpush3.msra.mxu1 %v6563_v57  ;;  %3707 = vmatprep.subr.mxu0 %v6600_v26 }
 0x2ce   :  { %3750 = vmatprep.subr.mxu1 %v6565_v36  ;;  %3708 = vmatpush3.msra.mxu0 %v6601_v15 }
 0x2cf   :  { %3751 = vmatpush3.msra.mxu1 %v5898_v12  ;;  %3709 = vmatprep.subr.mxu0 %v6602_v18  ;;  %v6606_v12 = vand.u32 4294901760, %v6572_v8 }
 0x2d0   :  { %3752 = vmatprep.subr.mxu1 %v5900_v10  ;;  %3710 = vmatpush3.msra.mxu0 %v6603_v25  ;;  %v6607_v10 = vand.u32 4294901760, %v6573_v49 }
 0x2d1   :  { %3753 = vmatpush3.msra.mxu1 %v5920_v33  ;;  %3711 = vmatprep.subr.mxu0 %v6604_v62  ;;  %v6608_v33 = vand.u32 4294901760, %v6574_v11 }
 0x2d2   :  { %3754 = vmatprep.subr.mxu1 %v6570_v13  ;;  %3712 = vmatpush3.msra.mxu0 %v6605_v37 }
 0x2d3   :  { %3755 = vmatpush3.msra.mxu1 %v5930_v34  ;;  %3713 = vmatprep.subr.mxu0 %v6606_v12  ;;  %v6610_v34 = vand.u32 4294901760, %v6577_v28 }
 0x2d4   :  { %3756 = vmatprep.subr.mxu1 %v5969_v53  ;;  %3714 = vmatpush3.msra.mxu0 %v6607_v10  ;;  %v6612_v53 = vand.u32 4294901760, %v6579_v46 }
 0x2d5   :  { %3757 = vmatpush3.msra.mxu1 %v5995_v55  ;;  %3715 = vmatprep.subr.mxu0 %v6608_v33  ;;  %v6614_v55 = vand.u32 4294901760, %v6581_v54 }
 0x2d6   :  { %3530 = vmatmul.mubr.f32.vlgmr.msra.gmra.mxu1 %v6182_v32  ;;  %3716 = vmatpush3.msra.mxu0 %v6609_v60 }
 0x2d7   :  { %3717 = vmatprep.subr.mxu0 %v6610_v34 }
 0x2d8   :  { %3718 = vmatpush3.msra.mxu0 %v6611_v51 }
 0x2d9   :  { %3719 = vmatprep.subr.mxu0 %v6612_v53 }
 0x2da   :  { %3720 = vmatpush3.msra.mxu0 %v6613_v19 }
 0x2db   :  { %3721 = vmatprep.subr.mxu0 %v6614_v55 }
 0x2dc   :  { %3722 = vmatpush3.msra.mxu0 %v6615_v16 }
 0x2dd   :  { %3426 = vmatmul.mubr.f32.vlgmr.msra.gmra.mxu0 %v6182_v32 }
 0x353   :  { %v3618_v56 = vpop.f32.mrf.mxu1 }
 0x355   :  { %v3619_v38 = vpop.f32.mrf.mxu1 }
 0x356   :  { %v3620_v44 = vadd.f32 %v3619_v38, %v3618_v56 }
 0x35b   :  { %v3583_v35 = vpop.f32.mrf.mxu0 }
 0x35d   :  { %v3584_v42 = vpop.f32.mrf.mxu0 }
 0x35e   :  { %v3585_v17 = vadd.f32 %v3584_v42, %v3583_v35 }
 0x360   :  { %v2782_v5 = vadd.f32 %v3585_v17, %v3550_v41 }
 0x362   :  { %v3014_v36 = vadd.f32 %v3620_v44, %v2782_v5 }
 0x374   :  { %v3688_v9 = vpop.f32.mrf.mxu1 }
 0x376   :  { %v3689_v45 = vpop.f32.mrf.mxu1 }
 0x377   :  { %v3690_v6 = vadd.f32 %v3689_v45, %v3688_v9 }
 0x37c   :  { %v3653_v3 = vpop.f32.mrf.mxu0 }
 0x37e   :  { %v3654_v40 = vpop.f32.mrf.mxu0 }
 0x37f   :  { %v3655_v57 = vadd.f32 %v3654_v40, %v3653_v3 }
 0x381   :  { %v3152_v4 = vadd.f32 %v3655_v57, %v3014_v36 }
 0x383   :  { %v3260_v22 = vadd.f32 %v3690_v6, %v3152_v4 }
 0x396   :  { %v3758_v24 = vpop.f32.mrf.mxu1 }
 0x398   :  { %v3759_v29 = vpop.f32.mrf.mxu1 }
 0x399   :  { %v3760_v49 = vadd.f32 %v3759_v29, %v3758_v24 }
 0x39d   :  { %v3723_v32 = vpop.f32.mrf.mxu0 }
 0x39f   :  { %v3724_v13 = vpop.f32.mrf.mxu0 }
 0x3a0   :  { %v3725_v8 = vadd.f32 %v3724_v13, %v3723_v32 }
 0x3a2   :  { %v3428_v11 = vadd.f32 %v3725_v8, %v3260_v22 }
 0x3a4   :  { %v3532_v52 = vadd.f32 %v3760_v49, %v3428_v11 }
 0x3a6   :  { %3535 = vst [vmem:[#allocation3] sm:$0xff] %v3532_v52 }
 0x3a7   :  { %3773 = shalt.err (!%p3770_p4)
}
 0x3a8   :  { %3545 = dma.vmem_to_hbm [thread:$0]  %s3543_s21, 128, %s6364_s3, [#allocation4]  }
 0x3a9   :  { %3782 = dma.done.wait [#allocation4], 128  }
 0x3aa   :  { %3783 = vsyncadd [#allocation4], 4294967168 }
 0x3ab   :  { %3549 = vsyncpa [#allocation4], 1 }

</bundles_post_ra>
